<compile_context>
chip_gen: v6e
topology: v6e:2x2x1
jax: 0.10.0
libtpu: 0.0.40
codegen_flags: <defaults>
</compile_context>

<pallas_src>
import functools

import jax
import jax.numpy as jnp
from jax.experimental import pallas as pl
from jax.experimental.pallas import tpu as pltpu

EPS = 1e-5
LANE = 128
_VMEM_LIMIT = 32 * 1024 * 1024        # scoped VMEM limit; safe on v5e/v6e/v7x
_TILE_BYTE_BUDGET = 6 * 1024 * 1024   # per-step block budget (x2 double-buffer << limit)


def _round_up(x, m):
    return ((x + m - 1) // m) * m


def _pick_tile(n, target, mult=8):
    """Largest divisor of n that is <= target and a multiple of `mult`.
    Falls back to n (a full-extent block is always layout-legal)."""
    target = int(max(1, min(n, target)))
    for d in range(target, 0, -1):
        if n % d == 0 and d % mult == 0:
            return d
    return n


def _pad_channels(x, c_target):
    c = x.shape[-1]
    if c == c_target:
        return x
    pad = [(0, 0)] * (x.ndim - 1) + [(0, c_target - c)]
    return jnp.pad(x, pad)


# ---------------------------------------------------------------------------
# Kernel 1: ConvTranspose2d(kernel=2, stride=2) as a row-tiled matmul + bias.
#   out[n, 2i+dy, 2j+dx, :] = x[n, i, j, :] @ W[:, dy, dx, :] + b
# The weight is laid out (Cin, 4*Cout_pad) so one lane-dense bf16 matmul emits
# all 4 output positions per input pixel; pixel scatter is a cheap XLA reshape.
# ---------------------------------------------------------------------------
def _matmul_bias_kernel(x_ref, w_ref, b_ref, o_ref):
    y = jnp.dot(x_ref[...], w_ref[...], preferred_element_type=jnp.float32)
    o_ref[...] = (y + b_ref[...]).astype(o_ref.dtype)


def up_conv_transpose(x_nhwc, w_up, b_up):
    n, hin, win, cin = x_nhwc.shape
    kout = w_up.shape[-1]                      # 4 * Cout_pad
    cout_pad = kout // 4
    m = n * hin * win
    x2 = x_nhwc.reshape(m, cin).astype(jnp.bfloat16)

    per_row = cin * 2 + kout * 2
    tm = _pick_tile(m, min(_TILE_BYTE_BUDGET // per_row, max(1, m // 2)))

    out = pl.pallas_call(
        _matmul_bias_kernel,
        out_shape=jax.ShapeDtypeStruct((m, kout), jnp.bfloat16),
        grid=(m // tm,),
        in_specs=[
            pl.BlockSpec((tm, cin), lambda i: (i, 0)),
            pl.BlockSpec((cin, kout), lambda i: (0, 0)),
            pl.BlockSpec((1, kout), lambda i: (0, 0)),
        ],
        out_specs=pl.BlockSpec((tm, kout), lambda i: (i, 0)),
        compiler_params=pltpu.CompilerParams(
            dimension_semantics=("parallel",),
            vmem_limit_bytes=_VMEM_LIMIT),
    )(x2, w_up, b_up)

    out = out.reshape(n, hin, win, 2, 2, cout_pad)
    out = out.transpose(0, 1, 3, 2, 4, 5).reshape(n, 2 * hin, 2 * win, cout_pad)
    return out


# ---------------------------------------------------------------------------
# Kernel 2: 3x3 'same' conv as 9 in-kernel shifted matmuls + per-tile BN stats.
# Inputs are 3 row-shifted views (tap ky reads view ky); the kx taps are taken
# by slicing the loaded (TR, W+2, Cin) block along the W axis (XLU-side work).
# ---------------------------------------------------------------------------
def _conv3x3_taps_kernel(top_ref, mid_ref, bot_ref, w_ref, y_ref, stat_ref, *,
                         width):
    # top/mid/bot: (TR, width+2, Cin) bf16 ; w_ref: (9, Cin, Cout) bf16
    # y_ref:  (TR*width, Cout) f32 pre-BN conv output (accumulated in place)
    # stat_ref: (1, 2, Cout) f32 per-tile [sum, sum of squares]
    tr, _, cin = top_ref.shape
    views = (top_ref, mid_ref, bot_ref)
    first = True
    for ky in range(3):
        for kx in range(3):
            patch = views[ky][:, kx:kx + width, :].reshape(tr * width, cin)
            contrib = jnp.dot(patch, w_ref[ky * 3 + kx],
                              preferred_element_type=jnp.float32)
            if first:
                y_ref[...] = contrib
                first = False
            else:
                y_ref[...] += contrib
    y = y_ref[...]
    stat_ref[0, 0:1, :] = jnp.sum(y, axis=0, keepdims=True)
    stat_ref[0, 1:2, :] = jnp.sum(y * y, axis=0, keepdims=True)


def _conv3x3_pass1(x_nhwc, w_taps):
    n, h, w, cin = x_nhwc.shape
    cout = w_taps.shape[-1]
    xp = jnp.pad(x_nhwc, ((0, 0), (1, 1), (1, 1), (0, 0)))      # (N, H+2, W+2, C)
    rows = n * h
    top = xp[:, 0:h, :, :].reshape(rows, w + 2, cin)
    mid = xp[:, 1:h + 1, :, :].reshape(rows, w + 2, cin)
    bot = xp[:, 2:h + 2, :, :].reshape(rows, w + 2, cin)

    per_row = 3 * (w + 2) * cin * 2 + w * cout * 4              # bf16 in + f32 out
    tr = _pick_tile(rows, min(_TILE_BYTE_BUDGET // per_row, max(1, rows // 2)))
    num_tiles = rows // tr

    view_spec = pl.BlockSpec((tr, w + 2, cin), lambda i: (i, 0, 0))
    y, stats = pl.pallas_call(
        functools.partial(_conv3x3_taps_kernel, width=w),
        out_shape=(jax.ShapeDtypeStruct((rows * w, cout), jnp.float32),
                   jax.ShapeDtypeStruct((num_tiles, 2, cout), jnp.float32)),
        grid=(num_tiles,),
        in_specs=[view_spec, view_spec, view_spec,
                  pl.BlockSpec((9, cin, cout), lambda i: (0, 0, 0))],
        out_specs=(pl.BlockSpec((tr * w, cout), lambda i: (i, 0)),
                   pl.BlockSpec((1, 2, cout), lambda i: (i, 0, 0))),
        compiler_params=pltpu.CompilerParams(
            dimension_semantics=("parallel",),
            vmem_limit_bytes=_VMEM_LIMIT),
    )(top, mid, bot, w_taps)
    return y, stats


# ---------------------------------------------------------------------------
# Kernel 3: fused BatchNorm(scale, shift) + ReLU over (M, Cpad), lane-dense.
# ---------------------------------------------------------------------------
def _bn_relu_kernel(y_ref, scale_ref, shift_ref, o_ref):
    y = y_ref[...]
    o = jnp.maximum(y * scale_ref[...] + shift_ref[...], 0.0)
    o_ref[...] = o.astype(o_ref.dtype)


def _bn_relu(y2d, scale, shift, out_dtype):
    m, c = y2d.shape
    per_row = c * (4 + jnp.dtype(out_dtype).itemsize)
    tm = _pick_tile(m, min(_TILE_BYTE_BUDGET // per_row, max(1, m // 2)))
    return pl.pallas_call(
        _bn_relu_kernel,
        out_shape=jax.ShapeDtypeStruct((m, c), out_dtype),
        grid=(m // tm,),
        in_specs=[
            pl.BlockSpec((tm, c), lambda i: (i, 0)),
            pl.BlockSpec((1, c), lambda i: (0, 0)),
            pl.BlockSpec((1, c), lambda i: (0, 0)),
        ],
        out_specs=pl.BlockSpec((tm, c), lambda i: (i, 0)),
        compiler_params=pltpu.CompilerParams(
            dimension_semantics=("parallel",),
            vmem_limit_bytes=_VMEM_LIMIT),
    )(y2d, scale, shift)


def _bn_scale_shift(stats, count, gamma, beta):
    # stats: (num_tiles, 2, C) partial [sum, sumsq] -> folded affine (f32).
    tot = jnp.sum(stats, axis=0)
    mean = tot[0] / count
    var = jnp.maximum(tot[1] / count - mean * mean, 0.0)   # biased, training mode
    scale = gamma * jax.lax.rsqrt(var + EPS)
    shift = beta - mean * scale
    return scale.reshape(1, -1), shift.reshape(1, -1)


def conv_bn_relu_layer(x_nhwc, w_taps, gamma, beta, out_dtype):
    n, h, w, _ = x_nhwc.shape
    cout = w_taps.shape[-1]
    y, stats = _conv3x3_pass1(x_nhwc.astype(jnp.bfloat16), w_taps)
    scale, shift = _bn_scale_shift(stats, jnp.float32(n * h * w), gamma, beta)
    o = _bn_relu(y, scale, shift, out_dtype)
    return o.reshape(n, h, w, cout)


# ---------------------------------------------------------------------------
# UpBlock forward (NCHW in / NCHW out, matching the PyTorch module).
# ---------------------------------------------------------------------------
def up_block_forward(x_nchw, skip_nchw, params, *, out_channels):
    x = jnp.transpose(x_nchw, (0, 2, 3, 1))        # NCHW -> NHWC
    skip = jnp.transpose(skip_nchw, (0, 2, 3, 1))

    # transposed conv (kernel=2, stride=2)
    x = _pad_channels(x, params["w_up"].shape[0])
    up = up_conv_transpose(x, params["w_up"], params["b_up"])   # (N,2H,2W,Cpad) bf16
    up = up[..., :out_channels]

    # pad up to skip's spatial size (UNet asymmetric pad), then concat channels
    diff_y = skip.shape[1] - up.shape[1]
    diff_x = skip.shape[2] - up.shape[2]
    up = jnp.pad(up, ((0, 0),
                      (diff_y // 2, diff_y - diff_y // 2),
                      (diff_x // 2, diff_x - diff_x // 2),
                      (0, 0)))
    cat = jnp.concatenate([skip.astype(jnp.bfloat16), up], axis=-1)
    cat = _pad_channels(cat, params["w1"].shape[1])

    # ConvBlock: 2 x (conv3x3 'same' -> BatchNorm(batch stats) -> ReLU)
    h1 = conv_bn_relu_layer(cat, params["w1"], params["g1"], params["beta1"],
                            jnp.bfloat16)          # bf16: feeds next conv's MXU
    h2 = conv_bn_relu_layer(h1, params["w2"], params["g2"], params["beta2"],
                            jnp.float32)
    # dropout_p == 0 -> no dropout layer
    out = h2[..., :out_channels]
    return jnp.transpose(out, (0, 3, 1, 2))        # NHWC -> NCHW


def init_params(key, in_channels, skip_channels, out_channels):
    """Deterministic synthetic parameters in padded, kernel-friendly layouts.

    - w_up[ci, 4*Cpad] ~ torch ConvTranspose2d weight (Cin, Cout, 2, 2) permuted
      to (Cin, dy, dx, Cout) and flattened; b_up broadcast over the 4 positions.
    - w{1,2}[9, Cin_pad, Cout_pad] with tap t = ky*3+kx;
      w[t, ci, co] == torch_conv_weight[co, ci, ky, kx].
    - Conv biases before training-mode BN are omitted (exactly cancelled).
    - Padded weight/gamma lanes are zero, so padded channels stay exactly zero.
    """
    cin_up = in_channels
    cin_up_pad = _round_up(cin_up, LANE)
    cout = out_channels
    cout_pad = _round_up(cout, LANE)
    cin1 = skip_channels + out_channels
    cin1_pad = _round_up(cin1, LANE)

    k = jax.random.split(key, 4)

    s_up = 1.0 / jnp.sqrt(4.0 * cin_up)
    w_up = jax.random.normal(k[0], (cin_up, 2, 2, cout), jnp.float32) * s_up
    b_up = jax.random.normal(k[1], (cout,), jnp.float32) * s_up
    w_up_p = jnp.zeros((cin_up_pad, 2, 2, cout_pad), jnp.float32)
    w_up_p = w_up_p.at[:cin_up, :, :, :cout].set(w_up)
    b_up_p = jnp.zeros((2, 2, cout_pad), jnp.float32)
    b_up_p = b_up_p.at[:, :, :cout].set(b_up[None, None, :])

    s1 = 1.0 / jnp.sqrt(9.0 * cin1)
    w1 = jax.random.normal(k[2], (3, 3, cin1, cout), jnp.float32) * s1
    w1_p = jnp.zeros((3, 3, cin1_pad, cout_pad), jnp.float32)
    w1_p = w1_p.at[:, :, :cin1, :cout].set(w1)

    s2 = 1.0 / jnp.sqrt(9.0 * cout)
    w2 = jax.random.normal(k[3], (3, 3, cout, cout), jnp.float32) * s2
    w2_p = jnp.zeros((3, 3, cout_pad, cout_pad), jnp.float32)
    w2_p = w2_p.at[:, :, :cout, :cout].set(w2)

    g = jnp.zeros((cout_pad,), jnp.float32).at[:cout].set(1.0)
    beta = jnp.zeros((cout_pad,), jnp.float32)

    return {
        "w_up": w_up_p.reshape(cin_up_pad, 4 * cout_pad).astype(jnp.bfloat16),
        "b_up": b_up_p.reshape(1, 4 * cout_pad),
        "w1": w1_p.reshape(9, cin1_pad, cout_pad).astype(jnp.bfloat16),
        "g1": g, "beta1": beta,
        "w2": w2_p.reshape(9, cout_pad, cout_pad).astype(jnp.bfloat16),
        "g2": g, "beta2": beta,
    }


if __name__ == "__main__":
    key = jax.random.PRNGKey(0)
    kx, ks, kp = jax.random.split(key, 3)

    N = 2
    in_channels = 128      # channels of the low-res decoder input
    skip_channels = 64     # channels of the encoder skip tensor
    out_channels = 64      # UpBlock out_channels (== ConvBlock num_filters)
    Hin = Win = 8          # low-res spatial; skip / output spatial is 16x16

    x = jax.random.normal(kx, (N, in_channels, Hin, Win), jnp.float32)
    skip = jax.random.normal(ks, (N, skip_channels, 2 * Hin, 2 * Win), jnp.float32)
    params = init_params(kp, in_channels, skip_channels, out_channels)

    fwd = jax.jit(functools.partial(up_block_forward, out_channels=out_channels))
    out = fwd(x, skip, params)
    out = jax.block_until_ready(out)

    assert out.shape == (N, out_channels, 2 * Hin, 2 * Win), out.shape
    assert out.dtype == jnp.float32
    assert bool(jnp.all(jnp.isfinite(out)))
    print("KERNEL_OK")
</pallas_src>

<mosaic_0001>
module attributes {stable_mosaic.version = 11 : i64} {
  func.func @_matmul_bias_kernel(%arg0: i32, %arg1: memref<64x128xbf16, #tpu.memory_space<vmem>>, %arg2: memref<128x512xbf16, #tpu.memory_space<vmem>>, %arg3: memref<1x512xf32, #tpu.memory_space<vmem>>, %arg4: memref<64x512xbf16, #tpu.memory_space<vmem>>) attributes {dimension_semantics = [#tpu.dimension_semantics<parallel>], iteration_bounds = array<i64: 2>, scalar_prefetch = 0 : i64, scratch_operands = 0 : i64, tpu.core_type = #tpu.core_type<tc>, window_params = [{transform_indices = @transform_0, window_bounds = array<i64: 64, 128>}, {pipeline_mode = #tpu.pipeline_mode<synchronous>, transform_indices = @transform_1, window_bounds = array<i64: 128, 512>}, {pipeline_mode = #tpu.pipeline_mode<synchronous>, transform_indices = @transform_2, window_bounds = array<i64: 1, 512>}, {transform_indices = @transform_3, window_bounds = array<i64: 64, 512>}]} {
    %c0 = arith.constant 0 : index
    %c0_0 = arith.constant 0 : index
    %0 = vector.load %arg1[%c0, %c0_0] : memref<64x128xbf16, #tpu.memory_space<vmem>>, vector<64x128xbf16>
    %c0_1 = arith.constant 0 : index
    %c0_2 = arith.constant 0 : index
    %1 = vector.load %arg2[%c0_1, %c0_2] : memref<128x512xbf16, #tpu.memory_space<vmem>>, vector<128x512xbf16>
    %cst = arith.constant dense<0.000000e+00> : vector<64x512xf32>
    %2 = tpu.matmul %0, %1, %cst {dimension_numbers = #tpu.dot_dimension_numbers<[1], [0], [0], [1], [0, 0, 1, 1], [], []>} : vector<64x128xbf16>, vector<128x512xbf16>, vector<64x512xf32> -> vector<64x512xf32>
    %c0_3 = arith.constant 0 : index
    %c0_4 = arith.constant 0 : index
    %3 = vector.load %arg3[%c0_3, %c0_4] : memref<1x512xf32, #tpu.memory_space<vmem>>, vector<1x512xf32>
    %4 = vector.broadcast %3 : vector<1x512xf32> to vector<64x512xf32>
    %5 = arith.addf %2, %4 : vector<64x512xf32>
    %6 = arith.truncf %5 : vector<64x512xf32> to vector<64x512xbf16>
    %c0_5 = arith.constant 0 : index
    %c0_6 = arith.constant 0 : index
    %7 = vector.load %arg4[%c0_5, %c0_6] : memref<64x512xbf16, #tpu.memory_space<vmem>>, vector<64x512xbf16>
    tpu.vector_store %arg4[%c0_5, %c0_6], %6 {strides = array<i32>} : memref<64x512xbf16, #tpu.memory_space<vmem>>, vector<64x512xbf16>,
    return
  }
  func.func @transform_0(%arg0: i32) -> (i32, i32) {
    %c0_i32 = arith.constant 0 : i32
    %c0_i32_0 = arith.constant 0 : i32
    return %arg0, %c0_i32 : i32, i32
  }
  func.func @transform_1(%arg0: i32) -> (i32, i32) {
    %c0_i32 = arith.constant 0 : i32
    %c0_i32_0 = arith.constant 0 : i32
    %c0_i32_1 = arith.constant 0 : i32
    return %c0_i32, %c0_i32_0 : i32, i32
  }
  func.func @transform_2(%arg0: i32) -> (i32, i32) {
    %c0_i32 = arith.constant 0 : i32
    %c0_i32_0 = arith.constant 0 : i32
    %c0_i32_1 = arith.constant 0 : i32
    return %c0_i32, %c0_i32_0 : i32, i32
  }
  func.func @transform_3(%arg0: i32) -> (i32, i32) {
    %c0_i32 = arith.constant 0 : i32
    %c0_i32_0 = arith.constant 0 : i32
    return %arg0, %c0_i32 : i32, i32
  }
}

module attributes {stable_mosaic.version = 11 : i64} {
  func.func @_conv3x3_taps_kernel(%arg0: i32, %arg1: memref<16x18x128xbf16, #tpu.memory_space<vmem>>, %arg2: memref<16x18x128xbf16, #tpu.memory_space<vmem>>, %arg3: memref<16x18x128xbf16, #tpu.memory_space<vmem>>, %arg4: memref<9x128x128xbf16, #tpu.memory_space<vmem>>, %arg5: memref<256x128xf32, #tpu.memory_space<vmem>>, %arg6: memref<1x2x128xf32, #tpu.memory_space<vmem>>) attributes {dimension_semantics = [#tpu.dimension_semantics<parallel>], iteration_bounds = array<i64: 2>, scalar_prefetch = 0 : i64, scratch_operands = 0 : i64, tpu.core_type = #tpu.core_type<tc>, window_params = [{transform_indices = @transform_0, window_bounds = array<i64: 16, 18, 128>}, {transform_indices = @transform_1, window_bounds = array<i64: 16, 18, 128>}, {transform_indices = @transform_2, window_bounds = array<i64: 16, 18, 128>}, {pipeline_mode = #tpu.pipeline_mode<synchronous>, transform_indices = @transform_3, window_bounds = array<i64: 9, 128, 128>}, {transform_indices = @transform_4, window_bounds = array<i64: 256, 128>}, {transform_indices = @transform_5, window_bounds = array<i64: 1, 2, 128>}]} {
    %c0 = arith.constant 0 : index
    %c0_0 = arith.constant 0 : index
    %c0_1 = arith.constant 0 : index
    %0 = vector.load %arg1[%c0, %c0_0, %c0_1] : memref<16x18x128xbf16, #tpu.memory_space<vmem>>, vector<16x16x128xbf16>
    %1 = vector.shape_cast %0 : vector<16x16x128xbf16> to vector<256x128xbf16>
    %c0_2 = arith.constant 0 : index
    %c0_3 = arith.constant 0 : index
    %c0_4 = arith.constant 0 : index
    %2 = vector.load %arg4[%c0_2, %c0_3, %c0_4] : memref<9x128x128xbf16, #tpu.memory_space<vmem>>, vector<1x128x128xbf16>
    %3 = vector.shape_cast %2 : vector<1x128x128xbf16> to vector<128x128xbf16>
    %cst = arith.constant dense<0.000000e+00> : vector<256x128xf32>
    %4 = tpu.matmul %1, %3, %cst {dimension_numbers = #tpu.dot_dimension_numbers<[1], [0], [0], [1], [0, 0, 1, 1], [], []>} : vector<256x128xbf16>, vector<128x128xbf16>, vector<256x128xf32> -> vector<256x128xf32>
    %c0_5 = arith.constant 0 : index
    %c0_6 = arith.constant 0 : index
    %5 = vector.load %arg5[%c0_5, %c0_6] : memref<256x128xf32, #tpu.memory_space<vmem>>, vector<256x128xf32>
    tpu.vector_store %arg5[%c0_5, %c0_6], %4 {strides = array<i32>} : memref<256x128xf32, #tpu.memory_space<vmem>>, vector<256x128xf32>,
    %c0_7 = arith.constant 0 : index
    %c1 = arith.constant 1 : index
    %c0_8 = arith.constant 0 : index
    %6 = vector.load %arg1[%c0_7, %c1, %c0_8] : memref<16x18x128xbf16, #tpu.memory_space<vmem>>, vector<16x16x128xbf16>
    %7 = vector.shape_cast %6 : vector<16x16x128xbf16> to vector<256x128xbf16>
    %c1_9 = arith.constant 1 : index
    %c0_10 = arith.constant 0 : index
    %c0_11 = arith.constant 0 : index
    %8 = vector.load %arg4[%c1_9, %c0_10, %c0_11] : memref<9x128x128xbf16, #tpu.memory_space<vmem>>, vector<1x128x128xbf16>
    %9 = vector.shape_cast %8 : vector<1x128x128xbf16> to vector<128x128xbf16>
    %cst_12 = arith.constant dense<0.000000e+00> : vector<256x128xf32>
    %10 = tpu.matmul %7, %9, %cst_12 {dimension_numbers = #tpu.dot_dimension_numbers<[1], [0], [0], [1], [0, 0, 1, 1], [], []>} : vector<256x128xbf16>, vector<128x128xbf16>, vector<256x128xf32> -> vector<256x128xf32>
    %c0_13 = arith.constant 0 : index
    %c0_14 = arith.constant 0 : index
    %11 = vector.load %arg5[%c0_13, %c0_14] : memref<256x128xf32, #tpu.memory_space<vmem>>, vector<256x128xf32>
    %12 = arith.addf %11, %10 : vector<256x128xf32>
    %c0_15 = arith.constant 0 : index
    %c0_16 = arith.constant 0 : index
    %13 = vector.load %arg5[%c0_15, %c0_16] : memref<256x128xf32, #tpu.memory_space<vmem>>, vector<256x128xf32>
    tpu.vector_store %arg5[%c0_15, %c0_16], %12 {strides = array<i32>} : memref<256x128xf32, #tpu.memory_space<vmem>>, vector<256x128xf32>,
    %c0_17 = arith.constant 0 : index
    %c2 = arith.constant 2 : index
    %c0_18 = arith.constant 0 : index
    %14 = vector.load %arg1[%c0_17, %c2, %c0_18] : memref<16x18x128xbf16, #tpu.memory_space<vmem>>, vector<16x16x128xbf16>
    %15 = vector.shape_cast %14 : vector<16x16x128xbf16> to vector<256x128xbf16>
    %c2_19 = arith.constant 2 : index
    %c0_20 = arith.constant 0 : index
    %c0_21 = arith.constant 0 : index
    %16 = vector.load %arg4[%c2_19, %c0_20, %c0_21] : memref<9x128x128xbf16, #tpu.memory_space<vmem>>, vector<1x128x128xbf16>
    %17 = vector.shape_cast %16 : vector<1x128x128xbf16> to vector<128x128xbf16>
    %cst_22 = arith.constant dense<0.000000e+00> : vector<256x128xf32>
    %18 = tpu.matmul %15, %17, %cst_22 {dimension_numbers = #tpu.dot_dimension_numbers<[1], [0], [0], [1], [0, 0, 1, 1], [], []>} : vector<256x128xbf16>, vector<128x128xbf16>, vector<256x128xf32> -> vector<256x128xf32>
    %c0_23 = arith.constant 0 : index
    %c0_24 = arith.constant 0 : index
    %19 = vector.load %arg5[%c0_23, %c0_24] : memref<256x128xf32, #tpu.memory_space<vmem>>, vector<256x128xf32>
    %20 = arith.addf %19, %18 : vector<256x128xf32>
    %c0_25 = arith.constant 0 : index
    %c0_26 = arith.constant 0 : index
    %21 = vector.load %arg5[%c0_25, %c0_26] : memref<256x128xf32, #tpu.memory_space<vmem>>, vector<256x128xf32>
    tpu.vector_store %arg5[%c0_25, %c0_26], %20 {strides = array<i32>} : memref<256x128xf32, #tpu.memory_space<vmem>>, vector<256x128xf32>,
    %c0_27 = arith.constant 0 : index
    %c0_28 = arith.constant 0 : index
    %c0_29 = arith.constant 0 : index
    %22 = vector.load %arg2[%c0_27, %c0_28, %c0_29] : memref<16x18x128xbf16, #tpu.memory_space<vmem>>, vector<16x16x128xbf16>
    %23 = vector.shape_cast %22 : vector<16x16x128xbf16> to vector<256x128xbf16>
    %c3 = arith.constant 3 : index
    %c0_30 = arith.constant 0 : index
    %c0_31 = arith.constant 0 : index
    %24 = vector.load %arg4[%c3, %c0_30, %c0_31] : memref<9x128x128xbf16, #tpu.memory_space<vmem>>, vector<1x128x128xbf16>
    %25 = vector.shape_cast %24 : vector<1x128x128xbf16> to vector<128x128xbf16>
    %cst_32 = arith.constant dense<0.000000e+00> : vector<256x128xf32>
    %26 = tpu.matmul %23, %25, %cst_32 {dimension_numbers = #tpu.dot_dimension_numbers<[1], [0], [0], [1], [0, 0, 1, 1], [], []>} : vector<256x128xbf16>, vector<128x128xbf16>, vector<256x128xf32> -> vector<256x128xf32>
    %c0_33 = arith.constant 0 : index
    %c0_34 = arith.constant 0 : index
    %27 = vector.load %arg5[%c0_33, %c0_34] : memref<256x128xf32, #tpu.memory_space<vmem>>, vector<256x128xf32>
    %28 = arith.addf %27, %26 : vector<256x128xf32>
    %c0_35 = arith.constant 0 : index
    %c0_36 = arith.constant 0 : index
    %29 = vector.load %arg5[%c0_35, %c0_36] : memref<256x128xf32, #tpu.memory_space<vmem>>, vector<256x128xf32>
    tpu.vector_store %arg5[%c0_35, %c0_36], %28 {strides = array<i32>} : memref<256x128xf32, #tpu.memory_space<vmem>>, vector<256x128xf32>,
    %c0_37 = arith.constant 0 : index
    %c1_38 = arith.constant 1 : index
    %c0_39 = arith.constant 0 : index
    %30 = vector.load %arg2[%c0_37, %c1_38, %c0_39] : memref<16x18x128xbf16, #tpu.memory_space<vmem>>, vector<16x16x128xbf16>
    %31 = vector.shape_cast %30 : vector<16x16x128xbf16> to vector<256x128xbf16>
    %c4 = arith.constant 4 : index
    %c0_40 = arith.constant 0 : index
    %c0_41 = arith.constant 0 : index
    %32 = vector.load %arg4[%c4, %c0_40, %c0_41] : memref<9x128x128xbf16, #tpu.memory_space<vmem>>, vector<1x128x128xbf16>
    %33 = vector.shape_cast %32 : vector<1x128x128xbf16> to vector<128x128xbf16>
    %cst_42 = arith.constant dense<0.000000e+00> : vector<256x128xf32>
    %34 = tpu.matmul %31, %33, %cst_42 {dimension_numbers = #tpu.dot_dimension_numbers<[1], [0], [0], [1], [0, 0, 1, 1], [], []>} : vector<256x128xbf16>, vector<128x128xbf16>, vector<256x128xf32> -> vector<256x128xf32>
    %c0_43 = arith.constant 0 : index
    %c0_44 = arith.constant 0 : index
    %35 = vector.load %arg5[%c0_43, %c0_44] : memref<256x128xf32, #tpu.memory_space<vmem>>, vector<256x128xf32>
    %36 = arith.addf %35, %34 : vector<256x128xf32>
    %c0_45 = arith.constant 0 : index
    %c0_46 = arith.constant 0 : index
    %37 = vector.load %arg5[%c0_45, %c0_46] : memref<256x128xf32, #tpu.memory_space<vmem>>, vector<256x128xf32>
    tpu.vector_store %arg5[%c0_45, %c0_46], %36 {strides = array<i32>} : memref<256x128xf32, #tpu.memory_space<vmem>>, vector<256x128xf32>,
    %c0_47 = arith.constant 0 : index
    %c2_48 = arith.constant 2 : index
    %c0_49 = arith.constant 0 : index
    %38 = vector.load %arg2[%c0_47, %c2_48, %c0_49] : memref<16x18x128xbf16, #tpu.memory_space<vmem>>, vector<16x16x128xbf16>
    %39 = vector.shape_cast %38 : vector<16x16x128xbf16> to vector<256x128xbf16>
    %c5 = arith.constant 5 : index
    %c0_50 = arith.constant 0 : index
    %c0_51 = arith.constant 0 : index
    %40 = vector.load %arg4[%c5, %c0_50, %c0_51] : memref<9x128x128xbf16, #tpu.memory_space<vmem>>, vector<1x128x128xbf16>
    %41 = vector.shape_cast %40 : vector<1x128x128xbf16> to vector<128x128xbf16>
    %cst_52 = arith.constant dense<0.000000e+00> : vector<256x128xf32>
    %42 = tpu.matmul %39, %41, %cst_52 {dimension_numbers = #tpu.dot_dimension_numbers<[1], [0], [0], [1], [0, 0, 1, 1], [], []>} : vector<256x128xbf16>, vector<128x128xbf16>, vector<256x128xf32> -> vector<256x128xf32>
    %c0_53 = arith.constant 0 : index
    %c0_54 = arith.constant 0 : index
    %43 = vector.load %arg5[%c0_53, %c0_54] : memref<256x128xf32, #tpu.memory_space<vmem>>, vector<256x128xf32>
    %44 = arith.addf %43, %42 : vector<256x128xf32>
    %c0_55 = arith.constant 0 : index
    %c0_56 = arith.constant 0 : index
    %45 = vector.load %arg5[%c0_55, %c0_56] : memref<256x128xf32, #tpu.memory_space<vmem>>, vector<256x128xf32>
    tpu.vector_store %arg5[%c0_55, %c0_56], %44 {strides = array<i32>} : memref<256x128xf32, #tpu.memory_space<vmem>>, vector<256x128xf32>,
    %c0_57 = arith.constant 0 : index
    %c0_58 = arith.constant 0 : index
    %c0_59 = arith.constant 0 : index
    %46 = vector.load %arg3[%c0_57, %c0_58, %c0_59] : memref<16x18x128xbf16, #tpu.memory_space<vmem>>, vector<16x16x128xbf16>
    %47 = vector.shape_cast %46 : vector<16x16x128xbf16> to vector<256x128xbf16>
    %c6 = arith.constant 6 : index
    %c0_60 = arith.constant 0 : index
    %c0_61 = arith.constant 0 : index
    %48 = vector.load %arg4[%c6, %c0_60, %c0_61] : memref<9x128x128xbf16, #tpu.memory_space<vmem>>, vector<1x128x128xbf16>
    %49 = vector.shape_cast %48 : vector<1x128x128xbf16> to vector<128x128xbf16>
    %cst_62 = arith.constant dense<0.000000e+00> : vector<256x128xf32>
    %50 = tpu.matmul %47, %49, %cst_62 {dimension_numbers = #tpu.dot_dimension_numbers<[1], [0], [0], [1], [0, 0, 1, 1], [], []>} : vector<256x128xbf16>, vector<128x128xbf16>, vector<256x128xf32> -> vector<256x128xf32>
    %c0_63 = arith.constant 0 : index
    %c0_64 = arith.constant 0 : index
    %51 = vector.load %arg5[%c0_63, %c0_64] : memref<256x128xf32, #tpu.memory_space<vmem>>, vector<256x128xf32>
    %52 = arith.addf %51, %50 : vector<256x128xf32>
    %c0_65 = arith.constant 0 : index
    %c0_66 = arith.constant 0 : index
    %53 = vector.load %arg5[%c0_65, %c0_66] : memref<256x128xf32, #tpu.memory_space<vmem>>, vector<256x128xf32>
    tpu.vector_store %arg5[%c0_65, %c0_66], %52 {strides = array<i32>} : memref<256x128xf32, #tpu.memory_space<vmem>>, vector<256x128xf32>,
    %c0_67 = arith.constant 0 : index
    %c1_68 = arith.constant 1 : index
    %c0_69 = arith.constant 0 : index
    %54 = vector.load %arg3[%c0_67, %c1_68, %c0_69] : memref<16x18x128xbf16, #tpu.memory_space<vmem>>, vector<16x16x128xbf16>
    %55 = vector.shape_cast %54 : vector<16x16x128xbf16> to vector<256x128xbf16>
    %c7 = arith.constant 7 : index
    %c0_70 = arith.constant 0 : index
    %c0_71 = arith.constant 0 : index
    %56 = vector.load %arg4[%c7, %c0_70, %c0_71] : memref<9x128x128xbf16, #tpu.memory_space<vmem>>, vector<1x128x128xbf16>
    %57 = vector.shape_cast %56 : vector<1x128x128xbf16> to vector<128x128xbf16>
    %cst_72 = arith.constant dense<0.000000e+00> : vector<256x128xf32>
    %58 = tpu.matmul %55, %57, %cst_72 {dimension_numbers = #tpu.dot_dimension_numbers<[1], [0], [0], [1], [0, 0, 1, 1], [], []>} : vector<256x128xbf16>, vector<128x128xbf16>, vector<256x128xf32> -> vector<256x128xf32>
    %c0_73 = arith.constant 0 : index
    %c0_74 = arith.constant 0 : index
    %59 = vector.load %arg5[%c0_73, %c0_74] : memref<256x128xf32, #tpu.memory_space<vmem>>, vector<256x128xf32>
    %60 = arith.addf %59, %58 : vector<256x128xf32>
    %c0_75 = arith.constant 0 : index
    %c0_76 = arith.constant 0 : index
    %61 = vector.load %arg5[%c0_75, %c0_76] : memref<256x128xf32, #tpu.memory_space<vmem>>, vector<256x128xf32>
    tpu.vector_store %arg5[%c0_75, %c0_76], %60 {strides = array<i32>} : memref<256x128xf32, #tpu.memory_space<vmem>>, vector<256x128xf32>,
    %c0_77 = arith.constant 0 : index
    %c2_78 = arith.constant 2 : index
    %c0_79 = arith.constant 0 : index
    %62 = vector.load %arg3[%c0_77, %c2_78, %c0_79] : memref<16x18x128xbf16, #tpu.memory_space<vmem>>, vector<16x16x128xbf16>
    %63 = vector.shape_cast %62 : vector<16x16x128xbf16> to vector<256x128xbf16>
    %c8 = arith.constant 8 : index
    %c0_80 = arith.constant 0 : index
    %c0_81 = arith.constant 0 : index
    %64 = vector.load %arg4[%c8, %c0_80, %c0_81] : memref<9x128x128xbf16, #tpu.memory_space<vmem>>, vector<1x128x128xbf16>
    %65 = vector.shape_cast %64 : vector<1x128x128xbf16> to vector<128x128xbf16>
    %cst_82 = arith.constant dense<0.000000e+00> : vector<256x128xf32>
    %66 = tpu.matmul %63, %65, %cst_82 {dimension_numbers = #tpu.dot_dimension_numbers<[1], [0], [0], [1], [0, 0, 1, 1], [], []>} : vector<256x128xbf16>, vector<128x128xbf16>, vector<256x128xf32> -> vector<256x128xf32>
    %c0_83 = arith.constant 0 : index
    %c0_84 = arith.constant 0 : index
    %67 = vector.load %arg5[%c0_83, %c0_84] : memref<256x128xf32, #tpu.memory_space<vmem>>, vector<256x128xf32>
    %68 = arith.addf %67, %66 : vector<256x128xf32>
    %c0_85 = arith.constant 0 : index
    %c0_86 = arith.constant 0 : index
    %69 = vector.load %arg5[%c0_85, %c0_86] : memref<256x128xf32, #tpu.memory_space<vmem>>, vector<256x128xf32>
    tpu.vector_store %arg5[%c0_85, %c0_86], %68 {strides = array<i32>} : memref<256x128xf32, #tpu.memory_space<vmem>>, vector<256x128xf32>,
    %c0_87 = arith.constant 0 : index
    %c0_88 = arith.constant 0 : index
    %70 = vector.load %arg5[%c0_87, %c0_88] : memref<256x128xf32, #tpu.memory_space<vmem>>, vector<256x128xf32>
    %cst_89 = arith.constant dense<0.000000e+00> : vector<128xf32>
    %71 = vector.multi_reduction <add>, %70, %cst_89 [0] : vector<256x128xf32> to vector<128xf32>
    %72 = vector.shape_cast %71 : vector<128xf32> to vector<1x128xf32>
    %c0_90 = arith.constant 0 : index
    %c0_91 = arith.constant 0 : index
    %c0_92 = arith.constant 0 : index
    %73 = vector.load %arg6[%c0_90, %c0_91, %c0_92] : memref<1x2x128xf32, #tpu.memory_space<vmem>>, vector<1x1x128xf32>
    %74 = vector.shape_cast %73 : vector<1x1x128xf32> to vector<1x128xf32>
    %75 = vector.shape_cast %72 : vector<1x128xf32> to vector<1x1x128xf32>
    tpu.vector_store %arg6[%c0_90, %c0_91, %c0_92], %75 {strides = array<i32>} : memref<1x2x128xf32, #tpu.memory_space<vmem>>, vector<1x1x128xf32>,
    %76 = arith.mulf %70, %70 : vector<256x128xf32>
    %cst_93 = arith.constant dense<0.000000e+00> : vector<128xf32>
    %77 = vector.multi_reduction <add>, %76, %cst_93 [0] : vector<256x128xf32> to vector<128xf32>
    %78 = vector.shape_cast %77 : vector<128xf32> to vector<1x128xf32>
    %c0_94 = arith.constant 0 : index
    %c1_95 = arith.constant 1 : index
    %c0_96 = arith.constant 0 : index
    %79 = vector.load %arg6[%c0_94, %c1_95, %c0_96] : memref<1x2x128xf32, #tpu.memory_space<vmem>>, vector<1x1x128xf32>
    %80 = vector.shape_cast %79 : vector<1x1x128xf32> to vector<1x128xf32>
    %81 = vector.shape_cast %78 : vector<1x128xf32> to vector<1x1x128xf32>
    tpu.vector_store %arg6[%c0_94, %c1_95, %c0_96], %81 {strides = array<i32>} : memref<1x2x128xf32, #tpu.memory_space<vmem>>, vector<1x1x128xf32>,
    return
  }
  func.func @transform_0(%arg0: i32) -> (i32, i32, i32) {
    %c0_i32 = arith.constant 0 : i32
    %c0_i32_0 = arith.constant 0 : i32
    %c0_i32_1 = arith.constant 0 : i32
    return %arg0, %c0_i32, %c0_i32_0 : i32, i32, i32
  }
  func.func @transform_1(%arg0: i32) -> (i32, i32, i32) {
    %c0_i32 = arith.constant 0 : i32
    %c0_i32_0 = arith.constant 0 : i32
    %c0_i32_1 = arith.constant 0 : i32
    return %arg0, %c0_i32, %c0_i32_0 : i32, i32, i32
  }
  func.func @transform_2(%arg0: i32) -> (i32, i32, i32) {
    %c0_i32 = arith.constant 0 : i32
    %c0_i32_0 = arith.constant 0 : i32
    %c0_i32_1 = arith.constant 0 : i32
    return %arg0, %c0_i32, %c0_i32_0 : i32, i32, i32
  }
  func.func @transform_3(%arg0: i32) -> (i32, i32, i32) {
    %c0_i32 = arith.constant 0 : i32
    %c0_i32_0 = arith.constant 0 : i32
    %c0_i32_1 = arith.constant 0 : i32
    %c0_i32_2 = arith.constant 0 : i32
    return %c0_i32, %c0_i32_0, %c0_i32_1 : i32, i32, i32
  }
  func.func @transform_4(%arg0: i32) -> (i32, i32) {
    %c0_i32 = arith.constant 0 : i32
    %c0_i32_0 = arith.constant 0 : i32
    return %arg0, %c0_i32 : i32, i32
  }
  func.func @transform_5(%arg0: i32) -> (i32, i32, i32) {
    %c0_i32 = arith.constant 0 : i32
    %c0_i32_0 = arith.constant 0 : i32
    %c0_i32_1 = arith.constant 0 : i32
    return %arg0, %c0_i32, %c0_i32_0 : i32, i32, i32
  }
}

module attributes {stable_mosaic.version = 11 : i64} {
  func.func @_bn_relu_kernel(%arg0: i32, %arg1: memref<256x128xf32, #tpu.memory_space<vmem>>, %arg2: memref<1x128xf32, #tpu.memory_space<vmem>>, %arg3: memref<1x128xf32, #tpu.memory_space<vmem>>, %arg4: memref<256x128xbf16, #tpu.memory_space<vmem>>) attributes {dimension_semantics = [#tpu.dimension_semantics<parallel>], iteration_bounds = array<i64: 2>, scalar_prefetch = 0 : i64, scratch_operands = 0 : i64, tpu.core_type = #tpu.core_type<tc>, window_params = [{transform_indices = @transform_0, window_bounds = array<i64: 256, 128>}, {pipeline_mode = #tpu.pipeline_mode<synchronous>, transform_indices = @transform_1, window_bounds = array<i64: 1, 128>}, {pipeline_mode = #tpu.pipeline_mode<synchronous>, transform_indices = @transform_2, window_bounds = array<i64: 1, 128>}, {transform_indices = @transform_3, window_bounds = array<i64: 256, 128>}]} {
    %c0 = arith.constant 0 : index
    %c0_0 = arith.constant 0 : index
    %0 = vector.load %arg1[%c0, %c0_0] : memref<256x128xf32, #tpu.memory_space<vmem>>, vector<256x128xf32>
    %c0_1 = arith.constant 0 : index
    %c0_2 = arith.constant 0 : index
    %1 = vector.load %arg2[%c0_1, %c0_2] : memref<1x128xf32, #tpu.memory_space<vmem>>, vector<1x128xf32>
    %2 = vector.broadcast %1 : vector<1x128xf32> to vector<256x128xf32>
    %3 = arith.mulf %0, %2 : vector<256x128xf32>
    %c0_3 = arith.constant 0 : index
    %c0_4 = arith.constant 0 : index
    %4 = vector.load %arg3[%c0_3, %c0_4] : memref<1x128xf32, #tpu.memory_space<vmem>>, vector<1x128xf32>
    %5 = vector.broadcast %4 : vector<1x128xf32> to vector<256x128xf32>
    %6 = arith.addf %3, %5 : vector<256x128xf32>
    %cst = arith.constant 0.000000e+00 : f32
    %7 = vector.broadcast %cst : f32 to vector<256x128xf32>
    %8 = arith.maximumf %6, %7 : vector<256x128xf32>
    %9 = arith.truncf %8 : vector<256x128xf32> to vector<256x128xbf16>
    %c0_5 = arith.constant 0 : index
    %c0_6 = arith.constant 0 : index
    %10 = vector.load %arg4[%c0_5, %c0_6] : memref<256x128xbf16, #tpu.memory_space<vmem>>, vector<256x128xbf16>
    tpu.vector_store %arg4[%c0_5, %c0_6], %9 {strides = array<i32>} : memref<256x128xbf16, #tpu.memory_space<vmem>>, vector<256x128xbf16>,
    return
  }
  func.func @transform_0(%arg0: i32) -> (i32, i32) {
    %c0_i32 = arith.constant 0 : i32
    %c0_i32_0 = arith.constant 0 : i32
    return %arg0, %c0_i32 : i32, i32
  }
  func.func @transform_1(%arg0: i32) -> (i32, i32) {
    %c0_i32 = arith.constant 0 : i32
    %c0_i32_0 = arith.constant 0 : i32
    %c0_i32_1 = arith.constant 0 : i32
    return %c0_i32, %c0_i32_0 : i32, i32
  }
  func.func @transform_2(%arg0: i32) -> (i32, i32) {
    %c0_i32 = arith.constant 0 : i32
    %c0_i32_0 = arith.constant 0 : i32
    %c0_i32_1 = arith.constant 0 : i32
    return %c0_i32, %c0_i32_0 : i32, i32
  }
  func.func @transform_3(%arg0: i32) -> (i32, i32) {
    %c0_i32 = arith.constant 0 : i32
    %c0_i32_0 = arith.constant 0 : i32
    return %arg0, %c0_i32 : i32, i32
  }
}

module attributes {stable_mosaic.version = 11 : i64} {
  func.func @_bn_relu_kernel(%arg0: i32, %arg1: memref<256x128xf32, #tpu.memory_space<vmem>>, %arg2: memref<1x128xf32, #tpu.memory_space<vmem>>, %arg3: memref<1x128xf32, #tpu.memory_space<vmem>>, %arg4: memref<256x128xf32, #tpu.memory_space<vmem>>) attributes {dimension_semantics = [#tpu.dimension_semantics<parallel>], iteration_bounds = array<i64: 2>, scalar_prefetch = 0 : i64, scratch_operands = 0 : i64, tpu.core_type = #tpu.core_type<tc>, window_params = [{transform_indices = @transform_0, window_bounds = array<i64: 256, 128>}, {pipeline_mode = #tpu.pipeline_mode<synchronous>, transform_indices = @transform_1, window_bounds = array<i64: 1, 128>}, {pipeline_mode = #tpu.pipeline_mode<synchronous>, transform_indices = @transform_2, window_bounds = array<i64: 1, 128>}, {transform_indices = @transform_3, window_bounds = array<i64: 256, 128>}]} {
    %c0 = arith.constant 0 : index
    %c0_0 = arith.constant 0 : index
    %0 = vector.load %arg1[%c0, %c0_0] : memref<256x128xf32, #tpu.memory_space<vmem>>, vector<256x128xf32>
    %c0_1 = arith.constant 0 : index
    %c0_2 = arith.constant 0 : index
    %1 = vector.load %arg2[%c0_1, %c0_2] : memref<1x128xf32, #tpu.memory_space<vmem>>, vector<1x128xf32>
    %2 = vector.broadcast %1 : vector<1x128xf32> to vector<256x128xf32>
    %3 = arith.mulf %0, %2 : vector<256x128xf32>
    %c0_3 = arith.constant 0 : index
    %c0_4 = arith.constant 0 : index
    %4 = vector.load %arg3[%c0_3, %c0_4] : memref<1x128xf32, #tpu.memory_space<vmem>>, vector<1x128xf32>
    %5 = vector.broadcast %4 : vector<1x128xf32> to vector<256x128xf32>
    %6 = arith.addf %3, %5 : vector<256x128xf32>
    %cst = arith.constant 0.000000e+00 : f32
    %7 = vector.broadcast %cst : f32 to vector<256x128xf32>
    %8 = arith.maximumf %6, %7 : vector<256x128xf32>
    %c0_5 = arith.constant 0 : index
    %c0_6 = arith.constant 0 : index
    %9 = vector.load %arg4[%c0_5, %c0_6] : memref<256x128xf32, #tpu.memory_space<vmem>>, vector<256x128xf32>
    tpu.vector_store %arg4[%c0_5, %c0_6], %8 {strides = array<i32>} : memref<256x128xf32, #tpu.memory_space<vmem>>, vector<256x128xf32>,
    return
  }
  func.func @transform_0(%arg0: i32) -> (i32, i32) {
    %c0_i32 = arith.constant 0 : i32
    %c0_i32_0 = arith.constant 0 : i32
    return %arg0, %c0_i32 : i32, i32
  }
  func.func @transform_1(%arg0: i32) -> (i32, i32) {
    %c0_i32 = arith.constant 0 : i32
    %c0_i32_0 = arith.constant 0 : i32
    %c0_i32_1 = arith.constant 0 : i32
    return %c0_i32, %c0_i32_0 : i32, i32
  }
  func.func @transform_2(%arg0: i32) -> (i32, i32) {
    %c0_i32 = arith.constant 0 : i32
    %c0_i32_0 = arith.constant 0 : i32
    %c0_i32_1 = arith.constant 0 : i32
    return %c0_i32, %c0_i32_0 : i32, i32
  }
  func.func @transform_3(%arg0: i32) -> (i32, i32) {
    %c0_i32 = arith.constant 0 : i32
    %c0_i32_0 = arith.constant 0 : i32
    return %arg0, %c0_i32 : i32, i32
  }
}

</mosaic_0001>

<bundles_post_ra>
// kernel: up_block_forward.5
= control target key start
LH: loop header
LB: loop body
LE: loop exit
PB: predicated region body
PF: predicated region fallthrough
CT: control target
= control target key end

     0   :  { %8 = vsyncpa [#allocation3], 0  ;;  %s985_s12 = smov 0   ;;  %s1106_s0 = inlined_call_operand.vmem [shape: bf16[128,128], index: 0, kind: input, shape index: {}]   ;;  %s1107_s1 = inlined_call_operand.hbm [shape: bf16[128,512], index: 1, kind: input, shape index: {}]   ;;  %s1108_s2 = inlined_call_operand.vmem [shape: f32[1,512], index: 2, kind: input, shape index: {}]   ;;  %s1109_s3 = inlined_call_operand.vmem [shape: bf16[128,512], index: 3, kind: output, shape index: {}]  }
   0x1 LB: > { %s766_s13 = sadd.s32 4294967295, %s959_s12   ;;  %p768_p0 = scmp.ge.s32.totalorder %s959_s12, 1  ;;  %s959_s12 = sphi %s985_s12, %s14_s12  }
   0x2   : > { %p113_p1 = scmp.lt.s32.totalorder %s959_s12, 3  ;;  %s961_s14 = smov [#allocation2]  }
   0x3   : > { %s125_s15 = sshll.u32 %s961_s14, 4  ;;  %p999_p3 = scmp.eq.s32.totalorder %s766_s13, 0  ;;  %s126_s15 = int_to_ptr.vmem [resolvable:$true] %s125_s15 }
   0x4   : > { %p993_p2 = pnand %p768_p0, %p113_p1  ;;  %s934_s18 = scalar_lea.vmem %s126_s15, 4096 }
   0x5   : > { %p935_p7 = scmp.ne.s32.totalorder %s126_s15, %s934_s18  ;;  %p942_p10 = scmp.lt.s32.totalorder %s126_s15, %s126_s15 }
   0x6   : > { %p853_p4 = pneg %p993_p2  ;;  %p943_p11 = scmp.lt.s32.totalorder %s934_s18, %s934_s18 }
   0x8   : > { %p854_p5 = pnand %p999_p3, %p853_p4  ;;  %p944_p12 = por %p943_p11, %p942_p10 }
   0xa   : > { %p925_p6 = pneg %p854_p5 }
   0xc   : > { %p937_p8 = pnand %p935_p7, %p925_p6 }
   0xe   : > { %p938_p9 = pneg %p937_p8 }
  0x10   : > { %p945_p13 = pnand %p944_p12, %p938_p9 }
  0x12   : > { %948 = shalt.err (!%p945_p13)
}
  0x13   : > { %s962_s19 = smov 256   ;;  %s963_s20 = smov 16  }
  0x14   : > { %856 = dma.hbm_to_vmem [thread:$0]  (!%p854_p5), %s1107_s1, 4096, %s126_s15, [#allocation3], %s962_s19, %s962_s19, %s963_s20  }
  0x15   : > { %153 = sbr.rel (%p993_p2) target bundleno = 289 (0x121), region = 32 }
  0x1a   : > { %954 = dma.done.wait (%p999_p3), [#allocation3], 4096  }
  0x1b   : > { %956 = vsyncadd (%p999_p3), [#allocation3], 4294963200  ;;  %v964_v0 = vmov 0   ;;  %v871_v1 = vld [vmem:[#allocation2 + $0xe4] ss:$16 sps:$4 sm:$0xff]   ;;  %s773_s23 = sshll.u32 %s766_s13, 3  ;;  %v234_v37 = vlaneseq }
  0x1c   : > { %470 = vmatprep.mubr.bf16.mxu0 %v964_v0  ;;  %543 = vmatprep.mubr.bf16.mxu1 %v964_v0  ;;  %v873_v2 = vld [vmem:[#allocation2 + $0xec] ss:$16 sps:$4 sm:$0xff]   ;;  %v875_v3 = vld [vmem:[#allocation2 + $0xe0] ss:$16 sps:$4 sm:$0xff]   ;;  %v876_v4 = vld [vmem:[#allocation2 + $0xe8] ss:$16 sps:$4 sm:$0xff]  }
  0x1d   : > { %438 = vmatprep.subr.bf16.mxu0 %v871_v1  ;;  %511 = vmatprep.subr.bf16.mxu1 %v873_v2  ;;  %v877_v5 = vld [vmem:[#allocation2 + $0xc4] ss:$16 sps:$4 sm:$0xff]   ;;  %v879_v6 = vld [vmem:[#allocation2 + $0xcc] ss:$16 sps:$4 sm:$0xff]   ;;  %v881_v7 = vld [vmem:[#allocation2 + $0xc0] ss:$16 sps:$4 sm:$0xff]  }
  0x1e   : > { %439 = vmatpush1.bf16.msra.mxu0 %v875_v3  ;;  %512 = vmatpush1.bf16.msra.mxu1 %v876_v4  ;;  %v882_v8 = vld [vmem:[#allocation2 + $0xc8] ss:$16 sps:$4 sm:$0xff]   ;;  %v883_v9 = vld [vmem:[#allocation2 + $0xa4] ss:$16 sps:$4 sm:$0xff]   ;;  %v885_v10 = vld [vmem:[#allocation2 + $0xac] ss:$16 sps:$4 sm:$0xff]  }
  0x1f   : > { %440 = vmatprep.subr.bf16.mxu0 %v877_v5  ;;  %513 = vmatprep.subr.bf16.mxu1 %v879_v6  ;;  %v887_v11 = vld [vmem:[#allocation2 + $0xa0] ss:$16 sps:$4 sm:$0xff]   ;;  %v888_v12 = vld [vmem:[#allocation2 + $0xa8] ss:$16 sps:$4 sm:$0xff]   ;;  %v889_v13 = vld [vmem:[#allocation2 + $0x84] ss:$16 sps:$4 sm:$0xff]  }
  0x20   : > { %v891_v14 = vld [vmem:[#allocation2 + $0x8c] ss:$16 sps:$4 sm:$0xff]   ;;  %p179_p0 = scmp.lt.s32.totalorder %s773_s23, 15  ;;  %v893_v15 = vld [vmem:[#allocation2 + $0x80] ss:$16 sps:$4 sm:$0xff]   ;;  %v235_v38 = vshrl.u32 %v234_v37, 7 }
  0x21   : > { %v894_v16 = vld [vmem:[#allocation2 + $0x88] ss:$16 sps:$4 sm:$0xff]   ;;  %v895_v17 = vld [vmem:[#allocation2 + $0x64] ss:$16 sps:$4 sm:$0xff]   ;;  %v897_v18 = vld [vmem:[#allocation2 + $0x6c] ss:$16 sps:$4 sm:$0xff]  }
  0x22   : > { %441 = vmatpush1.bf16.msra.mxu0 %v881_v7  ;;  %514 = vmatpush1.bf16.msra.mxu1 %v882_v8  ;;  %s1113_s23 = smov (!%p179_p0, %s773_s23), 15  ;;  %v899_v19 = vld [vmem:[#allocation2 + $0x60] ss:$16 sps:$4 sm:$0xff]   ;;  %v900_v20 = vld [vmem:[#allocation2 + $0x68] ss:$16 sps:$4 sm:$0xff]   ;;  %v236_v39 = vsub.s32 0, %v235_v38 }
  0x23   : > { %442 = vmatprep.subr.bf16.mxu0 %v883_v9  ;;  %515 = vmatprep.subr.bf16.mxu1 %v885_v10  ;;  %v901_v21 = vld [vmem:[#allocation2 + $0x44] ss:$16 sps:$4 sm:$0xff]   ;;  %v903_v22 = vld [vmem:[#allocation2 + $0x4c] ss:$16 sps:$4 sm:$0xff]   ;;  %s774_s24 = sshll.u32 %s1113_s23, 2  ;;  %v244_v40 = vsub.s32 2, %v235_v38 }
  0x24   : > { %v905_v23 = vld [vmem:[#allocation2 + $0x40] ss:$16 sps:$4 sm:$0xff]   ;;  %v906_v24 = vld [vmem:[#allocation2 + $0x48] ss:$16 sps:$4 sm:$0xff]   ;;  %v907_v25 = vld [vmem:[#allocation2 + $0x24] ss:$16 sps:$4 sm:$0xff]   ;;  %s1026_s27 = scalar_lea.vmem %s1106_s0, %s774_s24 }
  0x25   : > { %v909_v26 = vld [vmem:[#allocation2 + $0x2c] ss:$16 sps:$4 sm:$0xff]   ;;  %v911_v27 = vld [vmem:[#allocation2 + $0x20] ss:$16 sps:$4 sm:$0xff]   ;;  %v912_v28 = vld [vmem:[#allocation2 + $0x28] ss:$16 sps:$4 sm:$0xff]  }
  0x26   : > { %443 = vmatpush1.bf16.msra.mxu0 %v887_v11  ;;  %516 = vmatpush1.bf16.msra.mxu1 %v888_v12  ;;  %v913_v29 = vld [vmem:[#allocation2 + $0x4] ss:$16 sps:$4 sm:$0xff]   ;;  %v915_v30 = vld [vmem:[#allocation2 + $0xc] ss:$16 sps:$4 sm:$0xff]   ;;  %v917_v31 = vld [vmem:[#allocation2] ss:$16 sps:$4 sm:$0xff]  }
  0x27   : > { %444 = vmatprep.subr.bf16.mxu0 %v889_v13  ;;  %517 = vmatprep.subr.bf16.mxu1 %v891_v14  ;;  %v918_v32 = vld [vmem:[#allocation2 + $0x8] ss:$16 sps:$4 sm:$0xff]   ;;  %v919_v33 = vld [vmem:[%s1026_s27] sm:$0xff]   ;;  %v921_v35 = vld [vmem:[%s1026_s27 + $0x10] sm:$0xff]   ;;  %v240_v41 = vsub.s32 1, %v235_v38  ;;  %v248_v42 = vsub.s32 3, %v235_v38 }
  0x28   : > { %v920_v34 = vld [vmem:[%s1026_s27 + $0x8] sm:$0xff]   ;;  %v922_v36 = vld [vmem:[%s1026_s27 + $0x18] sm:$0xff]   ;;  %v232_v43 = vld [vmem:[%s1108_s2] sm:$0xf]  ;;  %s832_s30 = sshll.u32 %s1113_s23, 4 }
  0x29   : > { %v1041_v44 = vrot.slane %v232_v43, %v236_v39  ;;  %v1043_v45 = vrot.slane %v232_v43, %v244_v40  ;;  %v1045_v46 = vrot.slane %v232_v43, %v240_v41  ;;  %v1047_v47 = vrot.slane %v232_v43, %v248_v42  ;;  %s1057_s6 = scalar_lea.vmem %s1109_s3, %s832_s30 }
  0x2a   : > { %445 = vmatpush1.bf16.msra.mxu0 %v893_v15  ;;  %518 = vmatpush1.bf16.msra.mxu1 %v894_v16 }
  0x2b   : > { %446 = vmatprep.subr.bf16.mxu0 %v895_v17  ;;  %519 = vmatprep.subr.bf16.mxu1 %v897_v18 }
  0x2e   : > { %447 = vmatpush1.bf16.msra.mxu0 %v899_v19  ;;  %520 = vmatpush1.bf16.msra.mxu1 %v900_v20 }
  0x2f   : > { %448 = vmatprep.subr.bf16.mxu0 %v901_v21  ;;  %521 = vmatprep.subr.bf16.mxu1 %v903_v22 }
  0x32   : > { %449 = vmatpush1.bf16.msra.mxu0 %v905_v23  ;;  %522 = vmatpush1.bf16.msra.mxu1 %v906_v24 }
  0x33   : > { %450 = vmatprep.subr.bf16.mxu0 %v907_v25  ;;  %523 = vmatprep.subr.bf16.mxu1 %v909_v26 }
  0x36   : > { %451 = vmatpush1.bf16.msra.mxu0 %v911_v27  ;;  %524 = vmatpush1.bf16.msra.mxu1 %v912_v28 }
  0x37   : > { %452 = vmatprep.subr.bf16.mxu0 %v913_v29  ;;  %525 = vmatprep.subr.bf16.mxu1 %v915_v30 }
  0x3a   : > { %453 = vmatpush1.bf16.msra.mxu0 %v917_v31  ;;  %526 = vmatpush1.bf16.msra.mxu1 %v918_v32 }
  0x3d   : > { %471 = vmatmul.mubr.bf16.vlgmr.msra.gmra.mxu0 %v919_v33  ;;  %544 = vmatmul.mubr.bf16.vlgmr.msra.gmra.mxu1 %v919_v33 }
  0x3e   : > { %480 = vmatprep.mubr.bf16.mxu0 %v964_v0  ;;  %553 = vmatprep.mubr.bf16.mxu1 %v964_v0 }
  0x45   : > { %481 = vmatmul.mubr.bf16.gmra.mxu0 %v920_v34  ;;  %554 = vmatmul.mubr.bf16.gmra.mxu1 %v920_v34 }
  0x46   : > { %490 = vmatprep.mubr.bf16.mxu0 %v964_v0  ;;  %563 = vmatprep.mubr.bf16.mxu1 %v964_v0 }
  0x4d   : > { %491 = vmatmul.mubr.bf16.gmra.mxu0 %v921_v35  ;;  %564 = vmatmul.mubr.bf16.gmra.mxu1 %v921_v35 }
  0x4e   : > { %500 = vmatprep.mubr.bf16.mxu0 %v964_v0  ;;  %573 = vmatprep.mubr.bf16.mxu1 %v964_v0 }
  0x55   : > { %501 = vmatmul.mubr.bf16.gmra.mxu0 %v922_v36  ;;  %574 = vmatmul.mubr.bf16.gmra.mxu1 %v922_v36 }
  0xfd   : > { %v472_v48 = vpop.f32.mrf.mxu0  ;;  %v545_v49 = vpop.f32.mrf.mxu1 }
  0xfe   : > { %v473_v52 = vadd.f32 %v472_v48, %v1041_v44  ;;  %v546_v53 = vadd.f32 %v545_v49, %v1043_v45 }
  0xff   : > { %v474_v50 = vpop.f32.mrf.mxu0  ;;  %v547_v51 = vpop.f32.mrf.mxu1 }
 0x100   : > { %v475_v54 = vadd.f32 %v474_v50, %v1045_v46  ;;  %v548_v55 = vadd.f32 %v547_v51, %v1047_v47 }
 0x101   : > { %v476_v56 = vpop.f32.mrf.mxu0  ;;  %v549_v57 = vpop.f32.mrf.mxu1 }
 0x102   : > { %v833_v58 = vpack.c.bf16 %v475_v54, %v473_v52  ;;  %v834_v59 = vpack.c.bf16 %v548_v55, %v546_v53  ;;  %v477_v62 = vadd.f32 %v476_v56, %v1041_v44  ;;  %v550_v63 = vadd.f32 %v549_v57, %v1043_v45 }
 0x103   : > { %v478_v60 = vpop.f32.mrf.mxu0  ;;  %v551_v61 = vpop.f32.mrf.mxu1 }
 0x104   : > { %680 = vst [vmem:[%s1057_s6] sm:$0xff] %v833_v58  ;;  %681 = vst [vmem:[%s1057_s6 + $0x8] sm:$0xff] %v834_v59  ;;  %v479_v0 = vadd.f32 %v478_v60, %v1045_v46  ;;  %v552_v1 = vadd.f32 %v551_v61, %v1047_v47 }
 0x105   : > { %v482_v2 = vpop.f32.mrf.mxu0  ;;  %v555_v3 = vpop.f32.mrf.mxu1 }
 0x106   : > { %v835_v4 = vpack.c.bf16 %v479_v0, %v477_v62  ;;  %v836_v5 = vpack.c.bf16 %v552_v1, %v550_v63  ;;  %v483_v8 = vadd.f32 %v482_v2, %v1041_v44  ;;  %v556_v9 = vadd.f32 %v555_v3, %v1043_v45 }
 0x107   : > { %v484_v6 = vpop.f32.mrf.mxu0  ;;  %v557_v7 = vpop.f32.mrf.mxu1 }
 0x108   : > { %682 = vst [vmem:[%s1057_s6 + $0x10] sm:$0xff] %v835_v4  ;;  %683 = vst [vmem:[%s1057_s6 + $0x18] sm:$0xff] %v836_v5  ;;  %v485_v10 = vadd.f32 %v484_v6, %v1045_v46  ;;  %v558_v11 = vadd.f32 %v557_v7, %v1047_v47 }
 0x109   : > { %v486_v12 = vpop.f32.mrf.mxu0  ;;  %v559_v13 = vpop.f32.mrf.mxu1 }
 0x10a   : > { %v837_v14 = vpack.c.bf16 %v485_v10, %v483_v8  ;;  %v838_v15 = vpack.c.bf16 %v558_v11, %v556_v9  ;;  %v487_v18 = vadd.f32 %v486_v12, %v1041_v44  ;;  %v560_v19 = vadd.f32 %v559_v13, %v1043_v45 }
 0x10b   : > { %v488_v16 = vpop.f32.mrf.mxu0  ;;  %v561_v17 = vpop.f32.mrf.mxu1 }
 0x10c   : > { %684 = vst [vmem:[%s1057_s6 + $0x20] sm:$0xff] %v837_v14  ;;  %685 = vst [vmem:[%s1057_s6 + $0x28] sm:$0xff] %v838_v15  ;;  %v489_v20 = vadd.f32 %v488_v16, %v1045_v46  ;;  %v562_v21 = vadd.f32 %v561_v17, %v1047_v47 }
 0x10d   : > { %v492_v22 = vpop.f32.mrf.mxu0  ;;  %v565_v23 = vpop.f32.mrf.mxu1 }
 0x10e   : > { %v839_v24 = vpack.c.bf16 %v489_v20, %v487_v18  ;;  %v840_v25 = vpack.c.bf16 %v562_v21, %v560_v19  ;;  %v493_v28 = vadd.f32 %v492_v22, %v1041_v44  ;;  %v566_v29 = vadd.f32 %v565_v23, %v1043_v45 }
 0x10f   : > { %v494_v26 = vpop.f32.mrf.mxu0  ;;  %v567_v27 = vpop.f32.mrf.mxu1 }
 0x110   : > { %686 = vst [vmem:[%s1057_s6 + $0x30] sm:$0xff] %v839_v24  ;;  %687 = vst [vmem:[%s1057_s6 + $0x38] sm:$0xff] %v840_v25  ;;  %v495_v30 = vadd.f32 %v494_v26, %v1045_v46  ;;  %v568_v31 = vadd.f32 %v567_v27, %v1047_v47 }
 0x111   : > { %v496_v32 = vpop.f32.mrf.mxu0  ;;  %v569_v33 = vpop.f32.mrf.mxu1 }
 0x112   : > { %v841_v34 = vpack.c.bf16 %v495_v30, %v493_v28  ;;  %v842_v35 = vpack.c.bf16 %v568_v31, %v566_v29  ;;  %v497_v38 = vadd.f32 %v496_v32, %v1041_v44  ;;  %v570_v39 = vadd.f32 %v569_v33, %v1043_v45 }
 0x113   : > { %v498_v36 = vpop.f32.mrf.mxu0  ;;  %v571_v37 = vpop.f32.mrf.mxu1 }
 0x114   : > { %688 = vst [vmem:[%s1057_s6 + $0x40] sm:$0xff] %v841_v34  ;;  %689 = vst [vmem:[%s1057_s6 + $0x48] sm:$0xff] %v842_v35  ;;  %v499_v40 = vadd.f32 %v498_v36, %v1045_v46  ;;  %v572_v41 = vadd.f32 %v571_v37, %v1047_v47 }
 0x115   : > { %v502_v42 = vpop.f32.mrf.mxu0  ;;  %v575_v43 = vpop.f32.mrf.mxu1 }
 0x116   : > { %v843_v48 = vpack.c.bf16 %v499_v40, %v497_v38  ;;  %v844_v49 = vpack.c.bf16 %v572_v41, %v570_v39  ;;  %v503_v52 = vadd.f32 %v502_v42, %v1041_v44  ;;  %v576_v53 = vadd.f32 %v575_v43, %v1043_v45 }
 0x117   : > { %v504_v50 = vpop.f32.mrf.mxu0  ;;  %v577_v51 = vpop.f32.mrf.mxu1 }
 0x118   : > { %690 = vst [vmem:[%s1057_s6 + $0x50] sm:$0xff] %v843_v48  ;;  %691 = vst [vmem:[%s1057_s6 + $0x58] sm:$0xff] %v844_v49  ;;  %v505_v54 = vadd.f32 %v504_v50, %v1045_v46  ;;  %v578_v55 = vadd.f32 %v577_v51, %v1047_v47 }
 0x119   : > { %v506_v56 = vpop.f32.mrf.mxu0  ;;  %v579_v57 = vpop.f32.mrf.mxu1 }
 0x11a   : > { %v845_v58 = vpack.c.bf16 %v505_v54, %v503_v52  ;;  %v846_v59 = vpack.c.bf16 %v578_v55, %v576_v53  ;;  %v507_v62 = vadd.f32 %v506_v56, %v1041_v44  ;;  %v580_v63 = vadd.f32 %v579_v57, %v1043_v45 }
 0x11b   : > { %v508_v60 = vpop.f32.mrf.mxu0  ;;  %v581_v61 = vpop.f32.mrf.mxu1 }
 0x11c   : > { %692 = vst [vmem:[%s1057_s6 + $0x60] sm:$0xff] %v845_v58  ;;  %693 = vst [vmem:[%s1057_s6 + $0x68] sm:$0xff] %v846_v59  ;;  %v509_v0 = vadd.f32 %v508_v60, %v1045_v46  ;;  %v582_v1 = vadd.f32 %v581_v61, %v1047_v47 }
 0x11e   : > { %v847_v2 = vpack.c.bf16 %v509_v0, %v507_v62  ;;  %v848_v3 = vpack.c.bf16 %v582_v1, %v580_v63 }
 0x120   : > { %694 = vst [vmem:[%s1057_s6 + $0x70] sm:$0xff] %v847_v2  ;;  %695 = vst [vmem:[%s1057_s6 + $0x78] sm:$0xff] %v848_v3 }
 0x121 PF: > { %s14_s12 = sadd.s32 1, %s959_s12  }
 0x122   : > { %p11_p1 = scmp.ge.s32.totalorder %s14_s12, 4  }
 0x124   :  { %13 = sbr.rel (!%p11_p1) target bundleno = 1 (0x1), region = 67 }
 0x129   :  { %720 = vsyncpa [#allocation3], 1 }
 0x12a   :  { %722 = vsyncpa [#allocation3 + $0x1], 1 }

// kernel: up_block_forward.7
= control target key start
LH: loop header
LB: loop body
LE: loop exit
PB: predicated region body
PF: predicated region fallthrough
CT: control target
= control target key end

     0   :  { %s740_s12 = smov 0   ;;  %s887_s0 = inlined_call_operand.vmem [shape: f32[512,128], index: 0, kind: input, shape index: {}]   ;;  %s888_s1 = inlined_call_operand.vmem [shape: f32[1,128], index: 1, kind: input, shape index: {}]   ;;  %s889_s2 = inlined_call_operand.vmem [shape: f32[1,128], index: 2, kind: input, shape index: {}]   ;;  %s890_s3 = inlined_call_operand.vmem [shape: bf16[512,128], index: 3, kind: output, shape index: {}]  }
   0x1 LB: > { %s532_s13 = sadd.s32 4294967295, %s718_s12   ;;  %p536_p0 = scmp.ge.s32.totalorder %s718_s12, 1  ;;  %s718_s12 = sphi %s740_s12, %s13_s12  }
   0x2   : > { %p138_p1 = scmp.lt.s32.totalorder %s718_s12, 3 }
   0x4   : > { %p139_p2 = pnand %p536_p0, %p138_p1 }
   0x5   : > { %s537_s14 = sshll.u32 (!%p139_p2), %s532_s13, 5 }
   0x6   : > { %142 = sbr.rel (%p139_p2) target bundleno = 49 (0x31), region = 32  ;;  %p163_p3 = scmp.lt.s32.totalorder (!%p139_p2), %s537_s14, 63 }
   0xb   : > { %s892_s14 = smov (!%p163_p3, %s537_s14), 63  ;;  %v754_v0 = vld [vmem:[%s888_s1] ss:$0 sm:$0xff] }
   0xc   : > { %s538_s15 = sshll.u32 %s892_s14, 3  ;;  %v764_v1 = vld [vmem:[%s889_s2] ss:$0 sm:$0xff]  ;;  %s540_s23 = sshll.u32 %s892_s14, 2 }
   0xd   : > { %s759_s20 = scalar_lea.vmem %s887_s0, %s538_s15  ;;  %s796_s26 = scalar_lea.vmem %s890_s3, %s540_s23 }
   0xe   : > { %v174_v2 = vld [vmem:[%s759_s20] sm:$0xff]  ;;  %v175_v3 = vld [vmem:[%s759_s20 + $0x8] sm:$0xff]  ;;  %v176_v4 = vld [vmem:[%s759_s20 + $0x10] sm:$0xff] }
   0xf   : > { %v213_v5 = vmul.f32 %v754_v0, %v174_v2  ;;  %v214_v6 = vmul.f32 %v754_v0, %v175_v3  ;;  %v177_v7 = vld [vmem:[%s759_s20 + $0x18] sm:$0xff]  ;;  %v215_v8 = vmul.f32 %v754_v0, %v176_v4  ;;  %v178_v9 = vld [vmem:[%s759_s20 + $0x20] sm:$0xff]  ;;  %v179_v10 = vld [vmem:[%s759_s20 + $0x28] sm:$0xff] }
  0x10   : > { %v216_v11 = vmul.f32 %v754_v0, %v177_v7  ;;  %v217_v12 = vmul.f32 %v754_v0, %v178_v9  ;;  %v218_v13 = vmul.f32 %v754_v0, %v179_v10  ;;  %v180_v14 = vld [vmem:[%s759_s20 + $0x30] sm:$0xff]  ;;  %v181_v15 = vld [vmem:[%s759_s20 + $0x38] sm:$0xff]  ;;  %v182_v24 = vld [vmem:[%s759_s20 + $0x40] sm:$0xff] }
  0x11   : > { %v252_v16 = vadd.f32 %v764_v1, %v213_v5  ;;  %v253_v17 = vadd.f32 %v764_v1, %v214_v6  ;;  %v254_v18 = vadd.f32 %v764_v1, %v215_v8  ;;  %v219_v19 = vmul.f32 %v754_v0, %v180_v14  ;;  %v183_v25 = vld [vmem:[%s759_s20 + $0x48] sm:$0xff]  ;;  %v184_v30 = vld [vmem:[%s759_s20 + $0x50] sm:$0xff]  ;;  %v185_v35 = vld [vmem:[%s759_s20 + $0x58] sm:$0xff] }
  0x12   : > { %v255_v20 = vadd.f32 %v764_v1, %v216_v11  ;;  %v256_v21 = vadd.f32 %v764_v1, %v217_v12  ;;  %v257_v22 = vadd.f32 %v764_v1, %v218_v13  ;;  %v220_v23 = vmul.f32 %v754_v0, %v181_v15  ;;  %v186_v36 = vld [vmem:[%s759_s20 + $0x60] sm:$0xff]  ;;  %v187_v41 = vld [vmem:[%s759_s20 + $0x68] sm:$0xff]  ;;  %v188_v42 = vld [vmem:[%s759_s20 + $0x70] sm:$0xff] }
  0x13   : > { %v284_v26 = vmax.f32 %v252_v16, 0.0  ;;  %v285_v27 = vmax.f32 %v253_v17, 0.0  ;;  %v286_v28 = vmax.f32 %v254_v18, 0.0  ;;  %v258_v29 = vadd.f32 %v764_v1, %v219_v19  ;;  %v189_v51 = vld [vmem:[%s759_s20 + $0x78] sm:$0xff]  ;;  %v190_v56 = vld [vmem:[%s759_s20 + $0x80] sm:$0xff]  ;;  %v191_v61 = vld [vmem:[%s759_s20 + $0x88] sm:$0xff] }
  0x14   : > { %v287_v31 = vmax.f32 %v255_v20, 0.0  ;;  %v288_v32 = vmax.f32 %v256_v21, 0.0  ;;  %v289_v33 = vmax.f32 %v257_v22, 0.0  ;;  %v259_v34 = vadd.f32 %v764_v1, %v220_v23  ;;  %v192_v4 = vld [vmem:[%s759_s20 + $0x90] sm:$0xff]  ;;  %v193_v5 = vld [vmem:[%s759_s20 + $0x98] sm:$0xff]  ;;  %v194_v10 = vld [vmem:[%s759_s20 + $0xa0] sm:$0xff] }
  0x15   : > { %v612_v37 = vpack.c.bf16 %v285_v27, %v284_v26  ;;  %v290_v38 = vmax.f32 %v258_v29, 0.0  ;;  %v221_v39 = vmul.f32 %v754_v0, %v182_v24  ;;  %v222_v40 = vmul.f32 %v754_v0, %v183_v25  ;;  %v195_v15 = vld [vmem:[%s759_s20 + $0xa8] sm:$0xff]  ;;  %v196_v20 = vld [vmem:[%s759_s20 + $0xb0] sm:$0xff]  ;;  %v197_v25 = vld [vmem:[%s759_s20 + $0xb8] sm:$0xff] }
  0x16   : > { %v617_v43 = vpack.c.bf16 %v287_v31, %v286_v28  ;;  %v622_v44 = vpack.c.bf16 %v289_v33, %v288_v32  ;;  %v291_v45 = vmax.f32 %v259_v34, 0.0  ;;  %v223_v46 = vmul.f32 %v754_v0, %v184_v30  ;;  %v198_v30 = vld [vmem:[%s759_s20 + $0xc0] sm:$0xff] }
  0x17   : > { %613 = vst [vmem:[%s796_s26] sm:$0xff] %v612_v37   ;;  %v260_v47 = vadd.f32 %v764_v1, %v221_v39  ;;  %v261_v48 = vadd.f32 %v764_v1, %v222_v40  ;;  %v224_v49 = vmul.f32 %v754_v0, %v185_v35  ;;  %v225_v50 = vmul.f32 %v754_v0, %v186_v36  ;;  %v199_v35 = vld [vmem:[%s759_s20 + $0xc8] sm:$0xff]  ;;  %v200_v40 = vld [vmem:[%s759_s20 + $0xd0] sm:$0xff] }
  0x18   : > { %689 = vst [vmem:[%s796_s26 + $0x8] sm:$0xff] %v617_v43   ;;  %690 = vst [vmem:[%s796_s26 + $0x10] sm:$0xff] %v622_v44   ;;  %v627_v52 = vpack.c.bf16 %v291_v45, %v290_v38  ;;  %v262_v53 = vadd.f32 %v764_v1, %v223_v46  ;;  %v226_v54 = vmul.f32 %v754_v0, %v187_v41  ;;  %v201_v41 = vld [vmem:[%s759_s20 + $0xd8] sm:$0xff]  ;;  %v202_v46 = vld [vmem:[%s759_s20 + $0xe0] sm:$0xff] }
  0x19   : > { %v227_v55 = vmul.f32 %v754_v0, %v188_v42  ;;  %v292_v57 = vmax.f32 %v260_v47, 0.0  ;;  %v293_v58 = vmax.f32 %v261_v48, 0.0  ;;  %v263_v59 = vadd.f32 %v764_v1, %v224_v49 }
  0x1a   : > { %v264_v60 = vadd.f32 %v764_v1, %v225_v50  ;;  %691 = vst [vmem:[%s796_s26 + $0x18] sm:$0xff] %v627_v52   ;;  %v294_v62 = vmax.f32 %v262_v53, 0.0  ;;  %v265_v63 = vadd.f32 %v764_v1, %v226_v54  ;;  %v228_v2 = vmul.f32 %v754_v0, %v189_v51  ;;  %v203_v51 = vld [vmem:[%s759_s20 + $0xe8] sm:$0xff] }
  0x1b   : > { %v266_v3 = vadd.f32 %v764_v1, %v227_v55  ;;  %v632_v6 = vpack.c.bf16 %v293_v58, %v292_v57  ;;  %v295_v7 = vmax.f32 %v263_v59, 0.0  ;;  %v229_v9 = vmul.f32 %v754_v0, %v190_v56  ;;  %v204_v56 = vld [vmem:[%s759_s20 + $0xf0] sm:$0xff] }
  0x1c   : > { %v296_v8 = vmax.f32 %v264_v60, 0.0  ;;  %v297_v11 = vmax.f32 %v265_v63, 0.0  ;;  %v267_v12 = vadd.f32 %v764_v1, %v228_v2  ;;  %v230_v14 = vmul.f32 %v754_v0, %v191_v61  ;;  %v205_v61 = vld [vmem:[%s759_s20 + $0xf8] sm:$0xff] }
  0x1d   : > { %v298_v13 = vmax.f32 %v266_v3, 0.0  ;;  %692 = vst [vmem:[%s796_s26 + $0x20] sm:$0xff] %v632_v6   ;;  %v637_v16 = vpack.c.bf16 %v295_v7, %v294_v62  ;;  %v268_v17 = vadd.f32 %v764_v1, %v229_v9  ;;  %v231_v18 = vmul.f32 %v754_v0, %v192_v4 }
  0x1e   : > { %v232_v19 = vmul.f32 %v754_v0, %v193_v5  ;;  %v642_v21 = vpack.c.bf16 %v297_v11, %v296_v8  ;;  %v299_v22 = vmax.f32 %v267_v12, 0.0  ;;  %v269_v23 = vadd.f32 %v764_v1, %v230_v14 }
  0x1f   : > { %v233_v24 = vmul.f32 %v754_v0, %v194_v10  ;;  %693 = vst [vmem:[%s796_s26 + $0x28] sm:$0xff] %v637_v16   ;;  %v300_v26 = vmax.f32 %v268_v17, 0.0  ;;  %v270_v27 = vadd.f32 %v764_v1, %v231_v18  ;;  %v234_v29 = vmul.f32 %v754_v0, %v195_v15 }
  0x20   : > { %v271_v28 = vadd.f32 %v764_v1, %v232_v19  ;;  %694 = vst [vmem:[%s796_s26 + $0x30] sm:$0xff] %v642_v21   ;;  %v647_v31 = vpack.c.bf16 %v299_v22, %v298_v13  ;;  %v301_v32 = vmax.f32 %v269_v23, 0.0  ;;  %v235_v34 = vmul.f32 %v754_v0, %v196_v20 }
  0x21   : > { %v272_v33 = vadd.f32 %v764_v1, %v233_v24  ;;  %v302_v36 = vmax.f32 %v270_v27, 0.0  ;;  %v273_v38 = vadd.f32 %v764_v1, %v234_v29  ;;  %v236_v39 = vmul.f32 %v754_v0, %v197_v25 }
  0x22   : > { %v303_v37 = vmax.f32 %v271_v28, 0.0  ;;  %695 = vst [vmem:[%s796_s26 + $0x38] sm:$0xff] %v647_v31   ;;  %v652_v42 = vpack.c.bf16 %v301_v32, %v300_v26  ;;  %v274_v44 = vadd.f32 %v764_v1, %v235_v34  ;;  %v237_v45 = vmul.f32 %v754_v0, %v198_v30 }
  0x23   : > { %v304_v43 = vmax.f32 %v272_v33, 0.0  ;;  %v305_v48 = vmax.f32 %v273_v38, 0.0  ;;  %v275_v49 = vadd.f32 %v764_v1, %v236_v39  ;;  %v238_v50 = vmul.f32 %v754_v0, %v199_v35 }
  0x24   : > { %v657_v47 = vpack.c.bf16 %v303_v37, %v302_v36  ;;  %696 = vst [vmem:[%s796_s26 + $0x40] sm:$0xff] %v652_v42   ;;  %v306_v52 = vmax.f32 %v274_v44, 0.0  ;;  %v276_v53 = vadd.f32 %v764_v1, %v237_v45  ;;  %v239_v54 = vmul.f32 %v754_v0, %v200_v40 }
  0x25   : > { %v240_v55 = vmul.f32 %v754_v0, %v201_v41  ;;  %v662_v57 = vpack.c.bf16 %v305_v48, %v304_v43  ;;  %v307_v58 = vmax.f32 %v275_v49, 0.0  ;;  %v277_v59 = vadd.f32 %v764_v1, %v238_v50 }
  0x26   : > { %697 = vst [vmem:[%s796_s26 + $0x48] sm:$0xff] %v657_v47   ;;  %v241_v60 = vmul.f32 %v754_v0, %v202_v46  ;;  %v308_v62 = vmax.f32 %v276_v53, 0.0  ;;  %v278_v63 = vadd.f32 %v764_v1, %v239_v54  ;;  %v242_v3 = vmul.f32 %v754_v0, %v203_v51 }
  0x27   : > { %v279_v2 = vadd.f32 %v764_v1, %v240_v55  ;;  %698 = vst [vmem:[%s796_s26 + $0x50] sm:$0xff] %v662_v57   ;;  %v667_v4 = vpack.c.bf16 %v307_v58, %v306_v52  ;;  %v309_v5 = vmax.f32 %v277_v59, 0.0  ;;  %v243_v7 = vmul.f32 %v754_v0, %v204_v56 }
  0x28   : > { %v280_v6 = vadd.f32 %v764_v1, %v241_v60  ;;  %v310_v8 = vmax.f32 %v278_v63, 0.0  ;;  %v281_v10 = vadd.f32 %v764_v1, %v242_v3  ;;  %v244_v11 = vmul.f32 %v754_v0, %v205_v61 }
  0x29   : > { %v311_v9 = vmax.f32 %v279_v2, 0.0  ;;  %699 = vst [vmem:[%s796_s26 + $0x58] sm:$0xff] %v667_v4   ;;  %v672_v12 = vpack.c.bf16 %v309_v5, %v308_v62  ;;  %v282_v14 = vadd.f32 %v764_v1, %v243_v7 }
  0x2a   : > { %v312_v13 = vmax.f32 %v280_v6, 0.0  ;;  %v313_v16 = vmax.f32 %v281_v10, 0.0  ;;  %v283_v17 = vadd.f32 %v764_v1, %v244_v11 }
  0x2b   : > { %v677_v15 = vpack.c.bf16 %v311_v9, %v310_v8  ;;  %700 = vst [vmem:[%s796_s26 + $0x60] sm:$0xff] %v672_v12   ;;  %v314_v18 = vmax.f32 %v282_v14, 0.0 }
  0x2c   : > { %v682_v19 = vpack.c.bf16 %v313_v16, %v312_v13  ;;  %v315_v20 = vmax.f32 %v283_v17, 0.0 }
  0x2d   : > { %701 = vst [vmem:[%s796_s26 + $0x68] sm:$0xff] %v677_v15  }
  0x2e   : > { %702 = vst [vmem:[%s796_s26 + $0x70] sm:$0xff] %v682_v19   ;;  %v687_v21 = vpack.c.bf16 %v315_v20, %v314_v18 }
  0x30   : > { %703 = vst [vmem:[%s796_s26 + $0x78] sm:$0xff] %v687_v21  }
  0x31 PF: > { %s13_s12 = sadd.s32 1, %s718_s12  }
  0x32   : > { %p10_p4 = scmp.ge.s32.totalorder %s13_s12, 4  }
  0x34   :  { %12 = sbr.rel (!%p10_p4) target bundleno = 1 (0x1), region = 62 }

// kernel: up_block_forward.9
= control target key start
LH: loop header
LB: loop body
LE: loop exit
PB: predicated region body
PF: predicated region fallthrough
CT: control target
= control target key end

     0   :  { %s453_s12 = smov 0   ;;  %s612_s0 = inlined_call_operand.vmem [shape: f32[512,128], index: 0, kind: input, shape index: {}]   ;;  %s613_s1 = inlined_call_operand.vmem [shape: f32[1,128], index: 1, kind: input, shape index: {}]   ;;  %s614_s2 = inlined_call_operand.vmem [shape: f32[1,128], index: 2, kind: input, shape index: {}]   ;;  %s615_s3 = inlined_call_operand.vmem [shape: f32[512,128], index: 3, kind: output, shape index: {}]  }
   0x1 LB: > { %s404_s13 = sadd.s32 4294967295, %s431_s12   ;;  %p408_p0 = scmp.ge.s32.totalorder %s431_s12, 1  ;;  %s431_s12 = sphi %s453_s12, %s13_s12  }
   0x2   : > { %p138_p1 = scmp.lt.s32.totalorder %s431_s12, 3 }
   0x4   : > { %p139_p2 = pnand %p408_p0, %p138_p1 }
   0x5   : > { %s409_s14 = sshll.u32 (!%p139_p2), %s404_s13, 5 }
   0x6   : > { %142 = sbr.rel (%p139_p2) target bundleno = 44 (0x2c), region = 32  ;;  %p163_p3 = scmp.lt.s32.totalorder (!%p139_p2), %s409_s14, 63 }
   0xb   : > { %s617_s14 = smov (!%p163_p3, %s409_s14), 63  ;;  %v464_v0 = vld [vmem:[%s613_s1] ss:$0 sm:$0xff] }
   0xc   : > { %s410_s15 = sshll.u32 %s617_s14, 3  ;;  %v474_v1 = vld [vmem:[%s614_s2] ss:$0 sm:$0xff] }
   0xd   : > { %s469_s20 = scalar_lea.vmem %s612_s0, %s410_s15  ;;  %s497_s25 = scalar_lea.vmem %s615_s3, %s410_s15 }
   0xe   : > { %v174_v2 = vld [vmem:[%s469_s20] sm:$0xff]  ;;  %v175_v3 = vld [vmem:[%s469_s20 + $0x8] sm:$0xff]  ;;  %v176_v4 = vld [vmem:[%s469_s20 + $0x10] sm:$0xff] }
   0xf   : > { %v213_v5 = vmul.f32 %v464_v0, %v174_v2  ;;  %v214_v6 = vmul.f32 %v464_v0, %v175_v3  ;;  %v215_v7 = vmul.f32 %v464_v0, %v176_v4  ;;  %v177_v8 = vld [vmem:[%s469_s20 + $0x18] sm:$0xff]  ;;  %v178_v9 = vld [vmem:[%s469_s20 + $0x20] sm:$0xff]  ;;  %v179_v10 = vld [vmem:[%s469_s20 + $0x28] sm:$0xff] }
  0x10   : > { %v216_v11 = vmul.f32 %v464_v0, %v177_v8  ;;  %v217_v12 = vmul.f32 %v464_v0, %v178_v9  ;;  %v218_v13 = vmul.f32 %v464_v0, %v179_v10  ;;  %v180_v14 = vld [vmem:[%s469_s20 + $0x30] sm:$0xff]  ;;  %v181_v15 = vld [vmem:[%s469_s20 + $0x38] sm:$0xff]  ;;  %v182_v24 = vld [vmem:[%s469_s20 + $0x40] sm:$0xff] }
  0x11   : > { %v252_v16 = vadd.f32 %v474_v1, %v213_v5  ;;  %v253_v17 = vadd.f32 %v474_v1, %v214_v6  ;;  %v254_v18 = vadd.f32 %v474_v1, %v215_v7  ;;  %v219_v19 = vmul.f32 %v464_v0, %v180_v14  ;;  %v183_v25 = vld [vmem:[%s469_s20 + $0x48] sm:$0xff]  ;;  %v184_v26 = vld [vmem:[%s469_s20 + $0x50] sm:$0xff]  ;;  %v185_v31 = vld [vmem:[%s469_s20 + $0x58] sm:$0xff] }
  0x12   : > { %v255_v20 = vadd.f32 %v474_v1, %v216_v11  ;;  %v256_v21 = vadd.f32 %v474_v1, %v217_v12  ;;  %v257_v22 = vadd.f32 %v474_v1, %v218_v13  ;;  %v220_v23 = vmul.f32 %v464_v0, %v181_v15  ;;  %v186_v32 = vld [vmem:[%s469_s20 + $0x60] sm:$0xff]  ;;  %v187_v33 = vld [vmem:[%s469_s20 + $0x68] sm:$0xff]  ;;  %v188_v38 = vld [vmem:[%s469_s20 + $0x70] sm:$0xff] }
  0x13   : > { %v284_v27 = vmax.f32 %v252_v16, 0.0  ;;  %v285_v28 = vmax.f32 %v253_v17, 0.0  ;;  %v286_v29 = vmax.f32 %v254_v18, 0.0  ;;  %v258_v30 = vadd.f32 %v474_v1, %v219_v19  ;;  %v189_v43 = vld [vmem:[%s469_s20 + $0x78] sm:$0xff]  ;;  %v190_v56 = vld [vmem:[%s469_s20 + $0x80] sm:$0xff]  ;;  %v191_v57 = vld [vmem:[%s469_s20 + $0x88] sm:$0xff] }
  0x14   : > { %v287_v34 = vmax.f32 %v255_v20, 0.0  ;;  %v288_v35 = vmax.f32 %v256_v21, 0.0  ;;  %v289_v36 = vmax.f32 %v257_v22, 0.0  ;;  %v259_v37 = vadd.f32 %v474_v1, %v220_v23  ;;  %v192_v58 = vld [vmem:[%s469_s20 + $0x90] sm:$0xff]  ;;  %v193_v63 = vld [vmem:[%s469_s20 + $0x98] sm:$0xff]  ;;  %v194_v2 = vld [vmem:[%s469_s20 + $0xa0] sm:$0xff] }
  0x15   : > { %316 = vst [vmem:[%s497_s25] sm:$0xff] %v284_v27  ;;  %317 = vst [vmem:[%s497_s25 + $0x8] sm:$0xff] %v285_v28  ;;  %v290_v39 = vmax.f32 %v258_v30, 0.0  ;;  %v221_v40 = vmul.f32 %v464_v0, %v182_v24  ;;  %v222_v41 = vmul.f32 %v464_v0, %v183_v25  ;;  %v223_v42 = vmul.f32 %v464_v0, %v184_v26  ;;  %v195_v3 = vld [vmem:[%s469_s20 + $0xa8] sm:$0xff]  ;;  %v196_v8 = vld [vmem:[%s469_s20 + $0xb0] sm:$0xff] }
  0x16   : > { %318 = vst [vmem:[%s497_s25 + $0x10] sm:$0xff] %v286_v29  ;;  %319 = vst [vmem:[%s497_s25 + $0x18] sm:$0xff] %v287_v34  ;;  %v291_v44 = vmax.f32 %v259_v37, 0.0  ;;  %v224_v45 = vmul.f32 %v464_v0, %v185_v31  ;;  %v225_v46 = vmul.f32 %v464_v0, %v186_v32  ;;  %v226_v47 = vmul.f32 %v464_v0, %v187_v33  ;;  %v197_v13 = vld [vmem:[%s469_s20 + $0xb8] sm:$0xff]  ;;  %v198_v26 = vld [vmem:[%s469_s20 + $0xc0] sm:$0xff] }
  0x17   : > { %320 = vst [vmem:[%s497_s25 + $0x20] sm:$0xff] %v288_v35  ;;  %321 = vst [vmem:[%s497_s25 + $0x28] sm:$0xff] %v289_v36  ;;  %v260_v48 = vadd.f32 %v474_v1, %v221_v40  ;;  %v261_v49 = vadd.f32 %v474_v1, %v222_v41  ;;  %v262_v50 = vadd.f32 %v474_v1, %v223_v42  ;;  %v199_v27 = vld [vmem:[%s469_s20 + $0xc8] sm:$0xff]  ;;  %v200_v28 = vld [vmem:[%s469_s20 + $0xd0] sm:$0xff] }
  0x18   : > { %322 = vst [vmem:[%s497_s25 + $0x30] sm:$0xff] %v290_v39  ;;  %v227_v51 = vmul.f32 %v464_v0, %v188_v38  ;;  %323 = vst [vmem:[%s497_s25 + $0x38] sm:$0xff] %v291_v44  ;;  %v263_v52 = vadd.f32 %v474_v1, %v224_v45  ;;  %v264_v53 = vadd.f32 %v474_v1, %v225_v46  ;;  %v201_v33 = vld [vmem:[%s469_s20 + $0xd8] sm:$0xff]  ;;  %v202_v34 = vld [vmem:[%s469_s20 + $0xe0] sm:$0xff] }
  0x19   : > { %v265_v54 = vadd.f32 %v474_v1, %v226_v47  ;;  %v228_v55 = vmul.f32 %v464_v0, %v189_v43  ;;  %v292_v59 = vmax.f32 %v260_v48, 0.0  ;;  %v293_v60 = vmax.f32 %v261_v49, 0.0  ;;  %v203_v35 = vld [vmem:[%s469_s20 + $0xe8] sm:$0xff]  ;;  %v204_v40 = vld [vmem:[%s469_s20 + $0xf0] sm:$0xff]  ;;  %v205_v45 = vld [vmem:[%s469_s20 + $0xf8] sm:$0xff] }
  0x1a   : > { %v294_v61 = vmax.f32 %v262_v50, 0.0  ;;  %v266_v62 = vadd.f32 %v474_v1, %v227_v51  ;;  %v295_v4 = vmax.f32 %v263_v52, 0.0  ;;  %v296_v5 = vmax.f32 %v264_v53, 0.0 }
  0x1b   : > { %v297_v6 = vmax.f32 %v265_v54, 0.0  ;;  %v267_v7 = vadd.f32 %v474_v1, %v228_v55  ;;  %324 = vst [vmem:[%s497_s25 + $0x40] sm:$0xff] %v292_v59  ;;  %325 = vst [vmem:[%s497_s25 + $0x48] sm:$0xff] %v293_v60  ;;  %v229_v10 = vmul.f32 %v464_v0, %v190_v56  ;;  %v230_v11 = vmul.f32 %v464_v0, %v191_v57 }
  0x1c   : > { %326 = vst [vmem:[%s497_s25 + $0x50] sm:$0xff] %v294_v61  ;;  %v298_v9 = vmax.f32 %v266_v62, 0.0  ;;  %v231_v12 = vmul.f32 %v464_v0, %v192_v58  ;;  %327 = vst [vmem:[%s497_s25 + $0x58] sm:$0xff] %v295_v4  ;;  %v232_v15 = vmul.f32 %v464_v0, %v193_v63  ;;  %v233_v16 = vmul.f32 %v464_v0, %v194_v2 }
  0x1d   : > { %328 = vst [vmem:[%s497_s25 + $0x60] sm:$0xff] %v296_v5  ;;  %329 = vst [vmem:[%s497_s25 + $0x68] sm:$0xff] %v297_v6  ;;  %v299_v14 = vmax.f32 %v267_v7, 0.0  ;;  %v234_v17 = vmul.f32 %v464_v0, %v195_v3  ;;  %v268_v18 = vadd.f32 %v474_v1, %v229_v10  ;;  %v269_v19 = vadd.f32 %v474_v1, %v230_v11 }
  0x1e   : > { %330 = vst [vmem:[%s497_s25 + $0x70] sm:$0xff] %v298_v9  ;;  %v270_v20 = vadd.f32 %v474_v1, %v231_v12  ;;  %v235_v21 = vmul.f32 %v464_v0, %v196_v8  ;;  %v271_v22 = vadd.f32 %v474_v1, %v232_v15  ;;  %v272_v23 = vadd.f32 %v474_v1, %v233_v16 }
  0x1f   : > { %331 = vst [vmem:[%s497_s25 + $0x78] sm:$0xff] %v299_v14  ;;  %v273_v24 = vadd.f32 %v474_v1, %v234_v17  ;;  %v236_v25 = vmul.f32 %v464_v0, %v197_v13  ;;  %v300_v29 = vmax.f32 %v268_v18, 0.0  ;;  %v301_v30 = vmax.f32 %v269_v19, 0.0 }
  0x20   : > { %v302_v31 = vmax.f32 %v270_v20, 0.0  ;;  %v274_v32 = vadd.f32 %v474_v1, %v235_v21  ;;  %v303_v36 = vmax.f32 %v271_v22, 0.0  ;;  %v304_v37 = vmax.f32 %v272_v23, 0.0 }
  0x21   : > { %v305_v38 = vmax.f32 %v273_v24, 0.0  ;;  %v275_v39 = vadd.f32 %v474_v1, %v236_v25  ;;  %332 = vst [vmem:[%s497_s25 + $0x80] sm:$0xff] %v300_v29  ;;  %333 = vst [vmem:[%s497_s25 + $0x88] sm:$0xff] %v301_v30  ;;  %v237_v42 = vmul.f32 %v464_v0, %v198_v26  ;;  %v238_v43 = vmul.f32 %v464_v0, %v199_v27 }
  0x22   : > { %334 = vst [vmem:[%s497_s25 + $0x90] sm:$0xff] %v302_v31  ;;  %v306_v41 = vmax.f32 %v274_v32, 0.0  ;;  %v239_v44 = vmul.f32 %v464_v0, %v200_v28  ;;  %335 = vst [vmem:[%s497_s25 + $0x98] sm:$0xff] %v303_v36  ;;  %v240_v47 = vmul.f32 %v464_v0, %v201_v33  ;;  %v241_v48 = vmul.f32 %v464_v0, %v202_v34 }
  0x23   : > { %336 = vst [vmem:[%s497_s25 + $0xa0] sm:$0xff] %v304_v37  ;;  %337 = vst [vmem:[%s497_s25 + $0xa8] sm:$0xff] %v305_v38  ;;  %v307_v46 = vmax.f32 %v275_v39, 0.0  ;;  %v242_v49 = vmul.f32 %v464_v0, %v203_v35  ;;  %v276_v50 = vadd.f32 %v474_v1, %v237_v42  ;;  %v277_v51 = vadd.f32 %v474_v1, %v238_v43 }
  0x24   : > { %338 = vst [vmem:[%s497_s25 + $0xb0] sm:$0xff] %v306_v41  ;;  %v278_v52 = vadd.f32 %v474_v1, %v239_v44  ;;  %v243_v53 = vmul.f32 %v464_v0, %v204_v40  ;;  %v279_v54 = vadd.f32 %v474_v1, %v240_v47  ;;  %v280_v55 = vadd.f32 %v474_v1, %v241_v48 }
  0x25   : > { %339 = vst [vmem:[%s497_s25 + $0xb8] sm:$0xff] %v307_v46  ;;  %v281_v56 = vadd.f32 %v474_v1, %v242_v49  ;;  %v244_v57 = vmul.f32 %v464_v0, %v205_v45  ;;  %v308_v58 = vmax.f32 %v276_v50, 0.0  ;;  %v309_v59 = vmax.f32 %v277_v51, 0.0 }
  0x26   : > { %v310_v60 = vmax.f32 %v278_v52, 0.0  ;;  %v282_v61 = vadd.f32 %v474_v1, %v243_v53  ;;  %v311_v62 = vmax.f32 %v279_v54, 0.0  ;;  %v312_v63 = vmax.f32 %v280_v55, 0.0 }
  0x27   : > { %v313_v2 = vmax.f32 %v281_v56, 0.0  ;;  %v283_v3 = vadd.f32 %v474_v1, %v244_v57  ;;  %340 = vst [vmem:[%s497_s25 + $0xc0] sm:$0xff] %v308_v58  ;;  %341 = vst [vmem:[%s497_s25 + $0xc8] sm:$0xff] %v309_v59 }
  0x28   : > { %342 = vst [vmem:[%s497_s25 + $0xd0] sm:$0xff] %v310_v60  ;;  %v314_v4 = vmax.f32 %v282_v61, 0.0  ;;  %343 = vst [vmem:[%s497_s25 + $0xd8] sm:$0xff] %v311_v62 }
  0x29   : > { %344 = vst [vmem:[%s497_s25 + $0xe0] sm:$0xff] %v312_v63  ;;  %345 = vst [vmem:[%s497_s25 + $0xe8] sm:$0xff] %v313_v2  ;;  %v315_v0 = vmax.f32 %v283_v3, 0.0 }
  0x2a   : > { %346 = vst [vmem:[%s497_s25 + $0xf0] sm:$0xff] %v314_v4 }
  0x2b   : > { %347 = vst [vmem:[%s497_s25 + $0xf8] sm:$0xff] %v315_v0 }
  0x2c PF: > { %s13_s12 = sadd.s32 1, %s431_s12  }
  0x2d   : > { %p10_p4 = scmp.ge.s32.totalorder %s13_s12, 4  }
  0x2f   :  { %12 = sbr.rel (!%p10_p4) target bundleno = 1 (0x1), region = 62 }

// kernel: up_block_forward.6
= control target key start
LH: loop header
LB: loop body
LE: loop exit
PB: predicated region body
PF: predicated region fallthrough
CT: control target
= control target key end

     0   :  { %s7310_s18 = smov 0   ;;  %s9101_s0 = inlined_call_operand.vmem [shape: bf16[32,18,128], index: 0, kind: input, shape index: {}]   ;;  %s9102_s1 = inlined_call_operand.vmem [shape: bf16[32,18,128], index: 1, kind: input, shape index: {}]   ;;  %s9103_s2 = inlined_call_operand.vmem [shape: bf16[32,18,128], index: 2, kind: input, shape index: {}]   ;;  %s9104_s3 = inlined_call_operand.vmem [shape: bf16[9,128,128], index: 3, kind: input, shape index: {}]   ;;  %s9105_s4 = inlined_call_operand.vmem [shape: f32[512,128], index: 4, kind: output, shape index: {0}]   ;;  %s9106_s5 = inlined_call_operand.vmem [shape: f32[2,2,128], index: 5, kind: output, shape index: {1}]  }
   0x1 LB: > { %s7316_s19 = sadd.s32 4294967295, %s7278_s18   ;;  %p6075_p0 = scmp.ge.s32.totalorder %s7278_s18, 1  ;;  %s7278_s18 = sphi %s7310_s18, %s16_s18  }
   0x2   : > { %p216_p1 = scmp.lt.s32.totalorder %s7278_s18, 3 }
   0x4   : > { %p217_p2 = pnand %p6075_p0, %p216_p1 }
   0x6   : > { %220 = sbr.rel (%p217_p2) target bundleno = 603 (0x25b), region = 36 }
   0xb   : > { %v7152_v0 = vld [vmem:[%s9104_s3 + $0x38] sm:$0xff]   ;;  %s6076_s22 = sshll.u32 %s7316_s19, 4  ;;  %v7153_v1 = vld [vmem:[%s9104_s3 + $0x30] sm:$0xff]   ;;  %v7154_v2 = vld [vmem:[%s9104_s3 + $0x28] sm:$0xff]   ;;  %vm1595_vm0 = vcmask 1042432   ;;  %vm1596_vm1 = vcmask 1046532  }
   0xc   : > { %p262_p3 = scmp.lt.s32.totalorder %s6076_s22, 31  ;;  %7127 = vmatprep.subr.bf16.mxu1 %v7152_v0  ;;  %6695 = vmatprep.subr.bf16.mxu0 %v7152_v0  ;;  %v7155_v3 = vld [vmem:[%s9104_s3 + $0x20] sm:$0xff]   ;;  %v7156_v6 = vld [vmem:[%s9104_s3 + $0x18] sm:$0xff]   ;;  %v7157_v7 = vld [vmem:[%s9104_s3 + $0x10] sm:$0xff]   ;;  %vm726_vm2 = vsmask.f32 3328 }
   0xd   : > { %7135 = vmatpush3.bf16.msra.mxu1 %v7152_v0  ;;  %6696 = vmatpush3.bf16.msra.mxu0 %v7152_v0  ;;  %v7158_v8 = vld [vmem:[%s9104_s3 + $0x8] sm:$0xff]   ;;  %v7159_v9 = vld [vmem:[%s9104_s3] sm:$0xff]   ;;  %v7162_v10 = vld [vmem:[%s9104_s3 + $0x78] sm:$0xff]   ;;  %vm727_vm3 = vsmask.f32 7440  ;;  %s6082_s13 = sshll.u32 %s7316_s19, 5 }
   0xe   : > { %s9153_s22 = smov (!%p262_p3, %s6076_s22), 31  ;;  %7128 = vmatprep.subr.bf16.mxu1 %v7153_v1  ;;  %6697 = vmatprep.subr.bf16.mxu0 %v7153_v1  ;;  %v7166_v11 = vld [vmem:[%s9104_s3 + $0xb8] sm:$0xff]   ;;  %v7164_v13 = vld [vmem:[%s9104_s3 + $0x70] sm:$0xff]   ;;  %v7169_v18 = vld [vmem:[%s9104_s3 + $0x68] sm:$0xff]   ;;  %p7934_p4 = scmp.lt.s32.totalorder %s6082_s13, 63 }
   0xf   : > { %s7330_s27 = smul.u32 12, %s9153_s22  ;;  %v7170_v16 = vld [vmem:[%s9104_s3 + $0xb0] sm:$0xff]   ;;  %v7174_v20 = vld [vmem:[%s9104_s3 + $0xa8] sm:$0xff]   ;;  %v7172_v22 = vld [vmem:[%s9104_s3 + $0x60] sm:$0xff]   ;;  %p288_p5 = scmp.lt.s32.totalorder %s7316_s19, 1 }
  0x10   : > { %v7178_v24 = vld [vmem:[%s9104_s3 + $0xa0] sm:$0xff]   ;;  %v7177_v35 = vld [vmem:[%s9104_s3 + $0x58] sm:$0xff]   ;;  %vm7403_vm4 = vmor %vm726_vm2, %vm727_vm3  ;;  %s9155_s13 = smov (!%p7934_p4, %s6082_s13), 63 }
  0x11   : > { %7136 = vmatpush3.bf16.msra.mxu1 %v7153_v1  ;;  %6698 = vmatpush3.bf16.msra.mxu0 %v7153_v1  ;;  %s7339_s7 = scalar_lea.vmem %s9101_s0, %s7330_s27  ;;  %v7182_v46 = vld [vmem:[%s9104_s3 + $0x98] sm:$0xff]   ;;  %v7410_v55 = vld [vmem:[%s9104_s3 + $0x50] sm:$0xff]   ;;  %vm7423_vm5 = vmor %vm1595_vm0, %vm1596_vm1  ;;  %s7722_s25 = scalar_lea.vmem %s9102_s1, %s7330_s27 }
  0x12   : > { %7129 = vmatprep.subr.bf16.mxu1 %v7154_v2  ;;  %6699 = vmatprep.subr.bf16.mxu0 %v7154_v2  ;;  %v7160_v4 = vld [vmem:[%s7339_s7 + $0x60] sm:$0xff]   ;;  %v7161_v12 = vld [vmem:[%s7339_s7 + $0x6c] sm:$0xff]   ;;  %v7167_v15 = vld [vmem:[%s7339_s7 + $0x78] sm:$0xff]   ;;  %s7930_s16 = scalar_lea.vmem %s9103_s2, %s7330_s27  ;;  %s6083_s23 = sshll.u32 %s9155_s13, 3 }
  0x13   : > { %6727 = vmatprep.mubr.bf16.mxu1 %v7160_v4  ;;  %v7163_v5 = vld [vmem:[%s7339_s7] sm:$0xff]   ;;  %v7165_v14 = vld [vmem:[%s7339_s7 + $0xc] sm:$0xff]   ;;  %v7171_v17 = vld [vmem:[%s7339_s7 + $0x18] sm:$0xff]   ;;  %s7998_s6 = scalar_lea.vmem %s9105_s4, %s6083_s23  ;;  %s9157_s19 = smov (!%p288_p5, %s7316_s19), 1 }
  0x14   : > { %6711 = vmatprep.mubr.bf16.mxu0 %v7163_v5  ;;  %v7168_v19 = vld [vmem:[%s7339_s7 + $0x84] sm:$0xff]   ;;  %v7175_v23 = vld [vmem:[%s7339_s7 + $0x90] sm:$0xff]   ;;  %v678_v25 = vld [vmem:[%s7339_s7] sm:$0xf] }
  0x15   : > { %7137 = vmatpush3.bf16.msra.mxu1 %v7154_v2  ;;  %6700 = vmatpush3.bf16.msra.mxu0 %v7154_v2  ;;  %v7173_v21 = vld [vmem:[%s7339_s7 + $0x24] sm:$0xff]   ;;  %v730_v28 = vshrl.u32 %v678_v25, 16  ;;  %v733_v29 = vshll.u32 %v678_v25, 16  ;;  %v7179_v30 = vld [vmem:[%s7339_s7 + $0x30] sm:$0xff]   ;;  %v681_v34 = vld [vmem:[%s7339_s7 + $0xc] sm:$0xf] }
  0x16   : > { %7130 = vmatprep.subr.bf16.mxu1 %v7155_v3  ;;  %6701 = vmatprep.subr.bf16.mxu0 %v7155_v3  ;;  %v679_v26 = vld [vmem:[%s7339_s7 + $0x4] sm:$0xf]  ;;  %v680_v27 = vld [vmem:[%s7339_s7 + $0x8] sm:$0x1]  ;;  %v682_v38 = vld [vmem:[%s7339_s7 + $0x10] sm:$0xf] }
  0x17   : > { %v739_v31 = vshll.u32 %v679_v26, 16  ;;  %v743_v32 = vshrl.u32 %v679_v26, 16  ;;  %v749_v33 = vshll.u32 %v680_v27, 16  ;;  %v732_v36 = vrot.slane %v730_v28, 4  ;;  %v683_v39 = vld [vmem:[%s7339_s7 + $0x14] sm:$0x1] }
  0x18   : > { %v735_v37 = vrot.slane %v733_v29, 5  ;;  %v754_v43 = vshrl.u32 %v681_v34, 16  ;;  %v7176_v44 = vld [vmem:[%s7339_s7 + $0x9c] sm:$0xff]   ;;  %v757_v48 = vshll.u32 %v681_v34, 16  ;;  %v763_v49 = vshll.u32 %v682_v38, 16  ;;  %v7183_v56 = vld [vmem:[%s7339_s7 + $0xa8] sm:$0xff]  }
  0x19   : > { %7138 = vmatpush3.bf16.msra.mxu1 %v7155_v3  ;;  %6702 = vmatpush3.bf16.msra.mxu0 %v7155_v3  ;;  %v741_v40 = vrot.slane %v739_v31, 5  ;;  %v745_v41 = vrot.slane %v743_v32, 4  ;;  %v751_v42 = vrot.slane %v749_v33, 5  ;;  %v7181_v45 = vld [vmem:[%s7339_s7 + $0x3c] sm:$0xff]   ;;  %v767_v50 = vshrl.u32 %v682_v38, 16  ;;  %v7186_v62 = vld [vmem:[%s9104_s3 + $0x90] sm:$0xff]  }
  0x1a   : > { %7131 = vmatprep.subr.bf16.mxu1 %v7156_v6  ;;  %6703 = vmatprep.subr.bf16.mxu0 %v7156_v6  ;;  %v736_v47 = vor.u32 %v735_v37, %v732_v36  ;;  %v756_v53 = vrot.slane %v754_v43, 4  ;;  %v773_v54 = vshll.u32 %v683_v39, 16  ;;  %v759_v58 = vrot.slane %v757_v48, 5  ;;  %v1499_v61 = vld [vmem:[%s7339_s7] sm:$0xe]  ;;  %v7184_v27 = vld [vmem:[%s7339_s7 + $0xb4] sm:$0xff]  }
  0x1b   : > { %v746_v52 = vor.u32 %v745_v41, %v741_v40  ;;  %v765_v59 = vrot.slane %v763_v49, 5  ;;  %v769_v60 = vrot.slane %v767_v50, 4  ;;  %v1500_v1 = vld [vmem:[%s7339_s7 + $0x4] sm:$0xf]  ;;  %v1501_v2 = vld [vmem:[%s7339_s7 + $0x8] sm:$0x1] }
  0x1c   : > { %v737_v57 = vrot.slane %v736_v47, 4  ;;  %v775_v0 = vrot.slane %v773_v54, 5  ;;  %v760_v4 = vor.u32 %v759_v58, %v756_v53  ;;  %v685_v25 = vld [vmem:[%s7339_s7 + $0x1c] sm:$0xf]  ;;  %v686_v26 = vld [vmem:[%s7339_s7 + $0x20] sm:$0x1] }
  0x1d   : > { %7139 = vmatpush3.bf16.msra.mxu1 %v7156_v6  ;;  %6704 = vmatpush3.bf16.msra.mxu0 %v7156_v6  ;;  %v747_v63 = vrot.slane %v746_v52, 4  ;;  %v770_v5 = vor.u32 %v769_v60, %v765_v59  ;;  %v7189_v28 = vld [vmem:[%s7339_s7 + $0x54] sm:$0xff]   ;;  %v7190_v29 = vld [vmem:[%s9104_s3 + $0x88] sm:$0xff]   ;;  %v687_v34 = vld [vmem:[%s7339_s7 + $0x24] sm:$0xf]  ;;  %v787_v43 = vshll.u32 %v685_v25, 16 }
  0x1e   : > { %7132 = vmatprep.subr.bf16.mxu1 %v7157_v7  ;;  %6705 = vmatprep.subr.bf16.mxu0 %v7157_v7  ;;  %v742_v3 = vsel %vm7403_vm4, %v737_v57, %v741_v40  ;;  %v689_v40 = vld [vmem:[%s7339_s7 + $0x2c] sm:$0x1]  ;;  %v797_v49 = vshll.u32 %v686_v26, 16  ;;  %v802_v53 = vshrl.u32 %v687_v34, 16  ;;  %v805_v54 = vshll.u32 %v687_v34, 16 }
  0x1f   : > { %v789_v50 = vrot.slane %v787_v43, 5  ;;  %v691_v26 = vld [vmem:[%s7339_s7 + $0x34] sm:$0xf] }
  0x20   : > { %v799_v58 = vrot.slane %v797_v49, 5 }
  0x21   : > { %7140 = vmatpush3.bf16.msra.mxu1 %v7157_v7  ;;  %6706 = vmatpush3.bf16.msra.mxu0 %v7157_v7  ;;  %v6149_v7 = vrot.slane %v1499_v61, 9  ;;  %v1506_v61 = vld [vmem:[%s7339_s7 + $0x1c] sm:$0xf] }
  0x22   : > { %7133 = vmatprep.subr.bf16.mxu1 %v7158_v8  ;;  %6707 = vmatprep.subr.bf16.mxu0 %v7158_v8 }
  0x25   : > { %7141 = vmatpush3.bf16.msra.mxu1 %v7158_v8  ;;  %6708 = vmatpush3.bf16.msra.mxu0 %v7158_v8  ;;  %v1502_v8 = vld [vmem:[%s7339_s7 + $0xc] sm:$0xe] }
  0x26   : > { %7134 = vmatprep.subr.bf16.mxu1 %v7159_v9  ;;  %6709 = vmatprep.subr.bf16.mxu0 %v7159_v9 }
  0x29   : > { %7142 = vmatpush3.bf16.msra.mxu1 %v7159_v9  ;;  %6710 = vmatpush3.bf16.msra.mxu0 %v7159_v9  ;;  %v1503_v9 = vld [vmem:[%s7339_s7 + $0x10] sm:$0xf] }
  0x2a   : > { %6743 = vmatprep.subr.bf16.mxu1 %v7162_v10  ;;  %6791 = vmatprep.subr.bf16.mxu0 %v7166_v11 }
  0x2c   : > { %6728 = vmatmul.mubr.bf16.vlgmr.msra.gmra.mxu1 %v7161_v12  ;;  %6712 = vmatmul.mubr.bf16.vlgmr.msra.gmra.mxu0 %v7165_v14  ;;  %v1600_v12 = vrot.slane %v1500_v1, 5  ;;  %v1504_v14 = vld [vmem:[%s7339_s7 + $0x14] sm:$0x1]  ;;  %v807_v1 = vrot.slane %v805_v54, 5  ;;  %v7195_v54 = vld [vmem:[%s9104_s3 + $0xe8] sm:$0xff]  }
  0x2d   : > { %6744 = vmatpush3.bf16.msra.mxu1 %v7162_v10  ;;  %6792 = vmatpush3.bf16.msra.mxu0 %v7166_v11  ;;  %v7187_v10 = vld [vmem:[%s7339_s7 + $0x48] sm:$0xff]   ;;  %v752_v11 = vsel %vm7403_vm4, %v747_v63, %v751_v42 }
  0x2e   : > { %6745 = vmatprep.subr.bf16.mxu1 %v7164_v13  ;;  %6731 = vmatprep.mubr.bf16.mxu1 %v7167_v15  ;;  %v6150_v15 = vrot.slane %v1502_v8, 9 }
  0x2f   : > { %6793 = vmatprep.subr.bf16.mxu0 %v7170_v16  ;;  %6715 = vmatprep.mubr.bf16.mxu0 %v7171_v17  ;;  %v761_v17 = vrot.slane %v760_v4, 4 }
  0x31   : > { %6746 = vmatpush3.bf16.msra.mxu1 %v7164_v13  ;;  %6794 = vmatpush3.bf16.msra.mxu0 %v7170_v16  ;;  %v1603_v13 = vrot.slane %v1501_v2, 5  ;;  %v7185_v16 = vld [vmem:[%s9104_s3 + $0x48] sm:$0xff]   ;;  %v821_v2 = vshll.u32 %v689_v40, 16  ;;  %v694_v40 = vld [vmem:[%s7339_s7 + $0x40] sm:$0xf] }
  0x32   : > { %6747 = vmatprep.subr.bf16.mxu1 %v7169_v18  ;;  %6795 = vmatprep.subr.bf16.mxu0 %v7174_v20 }
  0x34   : > { %6732 = vmatmul.mubr.bf16.gmra.mxu1 %v7168_v19  ;;  %6716 = vmatmul.mubr.bf16.gmra.mxu0 %v7173_v21  ;;  %v1607_v19 = vrot.slane %v1503_v9, 5  ;;  %v7437_v21 = vcombine.low %v742_v3, %v752_v11  ;;  %v1507_v3 = vld [vmem:[%s7339_s7 + $0x20] sm:$0x1]  ;;  %v1508_v9 = vld [vmem:[%s7339_s7 + $0x24] sm:$0xe] }
  0x35   : > { %6748 = vmatpush3.bf16.msra.mxu1 %v7169_v18  ;;  %6796 = vmatpush3.bf16.msra.mxu0 %v7174_v20  ;;  %v771_v18 = vrot.slane %v770_v5, 4  ;;  %v684_v20 = vld [vmem:[%s7339_s7 + $0x18] sm:$0xf] }
  0x36   : > { %6749 = vmatprep.subr.bf16.mxu1 %v7172_v22  ;;  %6735 = vmatprep.mubr.bf16.mxu1 %v7175_v23  ;;  %v1602_v23 = vrot.slane %v1600_v12, 4  ;;  %v7457_v32 = vsel %vm7423_vm5, %v6150_v15, %v1607_v19  ;;  %v1609_v33 = vrot.slane %v1607_v19, 4  ;;  %v778_v38 = vshrl.u32 %v684_v20, 16  ;;  %v1509_v15 = vld [vmem:[%s7339_s7 + $0x28] sm:$0xf] }
  0x37   : > { %6797 = vmatprep.subr.bf16.mxu0 %v7178_v24  ;;  %6719 = vmatprep.mubr.bf16.mxu0 %v7179_v30  ;;  %v766_v30 = vsel %vm7403_vm4, %v761_v17, %v765_v59  ;;  %v776_v31 = vsel %vm7403_vm4, %v771_v18, %v775_v0  ;;  %v781_v39 = vshll.u32 %v684_v20, 16  ;;  %v804_v0 = vrot.slane %v802_v53, 4  ;;  %v1510_v19 = vld [vmem:[%s7339_s7 + $0x2c] sm:$0x1] }
  0x38   : > { %v7461_v36 = vcombine.low %v766_v30, %v776_v31  ;;  %v1604_v37 = vsel %vm7423_vm5, %v1602_v23, %v1603_v13  ;;  %v780_v47 = vrot.slane %v778_v38, 4  ;;  %v7194_v13 = vld [vmem:[%s9104_s3 + $0x138] sm:$0xff]   ;;  %v1617_v18 = vrot.slane %v1507_v3, 5 }
  0x39   : > { %6750 = vmatpush3.bf16.msra.mxu1 %v7172_v22  ;;  %6798 = vmatpush3.bf16.msra.mxu0 %v7178_v24  ;;  %v7441_v22 = vsel %vm7423_vm5, %v6149_v7, %v1600_v12  ;;  %v1610_v24 = vrot.slane %v1504_v14, 5  ;;  %v783_v48 = vrot.slane %v781_v39, 5  ;;  %v808_v11 = vor.u32 %v807_v1, %v804_v0  ;;  %v693_v39 = vld [vmem:[%s7339_s7 + $0x3c] sm:$0xf] }
  0x3a   : > { %6751 = vmatprep.subr.bf16.mxu1 %v7177_v35  ;;  %6799 = vmatprep.subr.bf16.mxu0 %v7182_v46  ;;  %v6181_v41 = vcombine.low %v7441_v22, %v1604_v37  ;;  %v823_v12 = vrot.slane %v821_v2, 5  ;;  %v1614_v14 = vrot.slane %v1506_v61, 5  ;;  %v6152_v20 = vrot.slane %v1508_v9, 9  ;;  %v1512_v61 = vld [vmem:[%s7339_s7 + $0x34] sm:$0xf] }
  0x3b   : > { %v7469_v42 = vsel %vm7423_vm5, %v1609_v33, %v1610_v24  ;;  %v784_v57 = vor.u32 %v783_v48, %v780_v47  ;;  %v809_v23 = vrot.slane %v808_v11, 4  ;;  %v1621_v30 = vrot.slane %v1509_v15, 5  ;;  %v692_v33 = vld [vmem:[%s7339_s7 + $0x38] sm:$0x1]  ;;  %v695_v47 = vld [vmem:[%s7339_s7 + $0x44] sm:$0x1] }
  0x3c   : > { %6736 = vmatmul.mubr.bf16.gmra.mxu1 %v7176_v44  ;;  %6720 = vmatmul.mubr.bf16.gmra.mxu0 %v7181_v45  ;;  %v791_v44 = vshrl.u32 %v685_v25, 16  ;;  %v7188_v45 = vld [vmem:[%s9104_s3 + $0x40] sm:$0xff]   ;;  %v1616_v25 = vrot.slane %v1614_v14, 4  ;;  %v1624_v31 = vrot.slane %v1510_v19, 5  ;;  %v7196_v48 = vld [vmem:[%s9104_s3 + $0x130] sm:$0xff]   ;;  %v835_v53 = vshll.u32 %v691_v26, 16 }
  0x3d   : > { %6752 = vmatpush3.bf16.msra.mxu1 %v7177_v35  ;;  %6800 = vmatpush3.bf16.msra.mxu0 %v7182_v46  ;;  %v688_v35 = vld [vmem:[%s7339_s7 + $0x28] sm:$0xf]  ;;  %v6182_v46 = vcombine.low %v7457_v32, %v7469_v42  ;;  %v785_v4 = vrot.slane %v784_v57, 4  ;;  %v850_v57 = vshrl.u32 %v693_v39, 16  ;;  %v859_v1 = vshll.u32 %v694_v40, 16 }
  0x3e   : > { %6753 = vmatprep.subr.bf16.mxu1 %v7410_v55  ;;  %6739 = vmatprep.mubr.bf16.mxu1 %v7183_v56  ;;  %v793_v52 = vrot.slane %v791_v44, 4  ;;  %v7192_v56 = vld [vmem:[%s9104_s3 + $0x80] sm:$0xff]   ;;  %v811_v59 = vshll.u32 %v688_v35, 16  ;;  %v815_v60 = vshrl.u32 %v688_v35, 16  ;;  %v1618_v35 = vsel %vm7423_vm5, %v1616_v25, %v1617_v18  ;;  %v7198_v32 = vld [vmem:[%s9104_s3 + $0x128] sm:$0xff]  }
  0x3f   : > { %6801 = vmatprep.subr.bf16.mxu0 %v7186_v62  ;;  %6723 = vmatprep.mubr.bf16.mxu0 %v7187_v10  ;;  %v1622_v44 = vsel %vm7423_vm5, %v6152_v20, %v1621_v30  ;;  %v852_v0 = vrot.slane %v850_v57, 4  ;;  %v1513_v2 = vld [vmem:[%s7339_s7 + $0x38] sm:$0x1]  ;;  %v1516_v19 = vld [vmem:[%s7339_s7 + $0x44] sm:$0x1] }
  0x40   : > { %v794_v63 = vor.u32 %v793_v52, %v789_v50  ;;  %v813_v5 = vrot.slane %v811_v59, 5  ;;  %v817_v7 = vrot.slane %v815_v60, 4  ;;  %v853_v59 = vshll.u32 %v693_v39, 16  ;;  %v1511_v60 = vld [vmem:[%s7339_s7 + $0x30] sm:$0xe]  ;;  %v7200_v25 = vld [vmem:[%s9104_s3 + $0x120] sm:$0xff]  }
  0x41   : > { %6754 = vmatpush3.bf16.msra.mxu1 %v7410_v55  ;;  %6802 = vmatpush3.bf16.msra.mxu0 %v7186_v62  ;;  %v1505_v55 = vld [vmem:[%s7339_s7 + $0x18] sm:$0xe]  ;;  %v6153_v11 = vrot.slane %v1511_v60, 9  ;;  %v696_v20 = vld [vmem:[%s7339_s7 + $0x48] sm:$0xf] }
  0x42   : > { %6755 = vmatprep.subr.bf16.mxu1 %v7185_v16  ;;  %6803 = vmatprep.subr.bf16.mxu0 %v7190_v29  ;;  %v7191_v62 = vld [vmem:[%s9104_s3 + $0xf8] sm:$0xff]   ;;  %v6151_v8 = vrot.slane %v1505_v55, 9  ;;  %v795_v10 = vrot.slane %v794_v63, 4  ;;  %v818_v17 = vor.u32 %v817_v7, %v813_v5  ;;  %v814_v34 = vsel %vm7403_vm4, %v809_v23, %v813_v5 }
  0x43   : > { %v863_v5 = vshrl.u32 %v694_v40, 16  ;;  %v869_v7 = vshll.u32 %v695_v47, 16 }
  0x44   : > { %6740 = vmatmul.mubr.bf16.gmra.mxu1 %v7184_v27  ;;  %6724 = vmatmul.mubr.bf16.gmra.mxu0 %v7189_v28  ;;  %v800_v22 = vsel %vm7403_vm4, %v795_v10, %v799_v58  ;;  %v1615_v24 = vsel %vm7423_vm5, %v6151_v8, %v1614_v14  ;;  %v819_v28 = vrot.slane %v818_v17, 4  ;;  %v837_v58 = vrot.slane %v835_v53, 5  ;;  %v1514_v8 = vld [vmem:[%s7339_s7 + $0x3c] sm:$0xe]  ;;  %v7197_v14 = vld [vmem:[%s9104_s3 + $0xe0] sm:$0xff]  }
  0x45   : > { %6756 = vmatpush3.bf16.msra.mxu1 %v7185_v16  ;;  %6804 = vmatpush3.bf16.msra.mxu0 %v7190_v29  ;;  %v790_v16 = vsel %vm7403_vm4, %v785_v4, %v789_v50  ;;  %v7193_v29 = vld [vmem:[%s9104_s3 + $0xf0] sm:$0xff]   ;;  %v6183_v43 = vcombine.low %v1615_v24, %v1618_v35  ;;  %v855_v4 = vrot.slane %v853_v59, 5  ;;  %v861_v10 = vrot.slane %v859_v1, 5  ;;  %v7202_v53 = vld [vmem:[%s9104_s3 + $0x118] sm:$0xff]  }
  0x46   : > { %6757 = vmatprep.subr.bf16.mxu1 %v7188_v45  ;;  %6759 = vmatprep.mubr.bf16.mxu1 %v7437_v21  ;;  %v690_v21 = vld [vmem:[%s7339_s7 + $0x30] sm:$0xf]  ;;  %v6127_v27 = vcombine.low %v790_v16, %v800_v22  ;;  %v865_v17 = vrot.slane %v863_v5, 4  ;;  %v871_v18 = vrot.slane %v869_v7, 5  ;;  %v1631_v24 = vrot.slane %v1513_v2, 5 }
  0x47   : > { %6805 = vmatprep.subr.bf16.mxu0 %v7192_v56  ;;  %6807 = vmatprep.mubr.bf16.mxu0 %v6181_v41  ;;  %v826_v37 = vshrl.u32 %v690_v21, 16  ;;  %v829_v38 = vshll.u32 %v690_v21, 16  ;;  %v824_v41 = vsel %vm7403_vm4, %v819_v28, %v823_v12  ;;  %v1628_v12 = vrot.slane %v1512_v61, 5  ;;  %v698_v35 = vld [vmem:[%s7339_s7 + $0x50] sm:$0x1] }
  0x48   : > { %v6128_v49 = vcombine.low %v814_v34, %v824_v41  ;;  %v856_v16 = vor.u32 %v855_v4, %v852_v0  ;;  %v6154_v28 = vrot.slane %v1514_v8, 9  ;;  %v1638_v34 = vrot.slane %v1516_v19, 5  ;;  %v7201_v0 = vld [vmem:[%s9104_s3 + $0xd0] sm:$0xff]  }
  0x49   : > { %6758 = vmatpush3.bf16.msra.mxu1 %v7188_v45  ;;  %6806 = vmatpush3.bf16.msra.mxu0 %v7192_v56  ;;  %v1623_v45 = vrot.slane %v1621_v30, 4  ;;  %v828_v50 = vrot.slane %v826_v37, 4  ;;  %v831_v52 = vrot.slane %v829_v38, 5  ;;  %v845_v56 = vshll.u32 %v692_v33, 16  ;;  %v697_v30 = vld [vmem:[%s7339_s7 + $0x4c] sm:$0xf] }
  0x4a   : > { %6839 = vmatprep.subr.bf16.mxu1 %v7191_v62  ;;  %6887 = vmatprep.subr.bf16.mxu0 %v7194_v13  ;;  %v1629_v22 = vsel %vm7423_vm5, %v6153_v11, %v1628_v12  ;;  %v1630_v23 = vrot.slane %v1628_v12, 4  ;;  %v874_v37 = vshrl.u32 %v696_v20, 16  ;;  %v699_v38 = vld [vmem:[%s7339_s7 + $0x54] sm:$0xf]  ;;  %v1519_v5 = vld [vmem:[%s7339_s7 + $0x50] sm:$0x1] }
  0x4b   : > { %v1625_v55 = vsel %vm7423_vm5, %v1623_v45, %v1624_v31  ;;  %v847_v63 = vrot.slane %v845_v56, 5  ;;  %v7199_v45 = vld [vmem:[%s9104_s3 + $0xd8] sm:$0xff]   ;;  %v893_v56 = vshll.u32 %v698_v35, 16  ;;  %v7204_v7 = vld [vmem:[%s9104_s3 + $0x110] sm:$0xff]   ;;  %v703_v35 = vld [vmem:[%s7339_s7 + $0x64] sm:$0xf] }
  0x4c   : > { %6760 = vmatmul.mubr.bf16.vlgmr.msra.gmra.mxu1 %v7461_v36  ;;  %6808 = vmatmul.mubr.bf16.vlgmr.msra.gmra.mxu0 %v6182_v46  ;;  %v839_v36 = vshrl.u32 %v691_v26, 16  ;;  %v6184_v42 = vcombine.low %v1622_v44, %v1625_v55  ;;  %v832_v46 = vor.u32 %v831_v52, %v828_v50  ;;  %v857_v26 = vrot.slane %v856_v16, 4  ;;  %v700_v44 = vld [vmem:[%s7339_s7 + $0x58] sm:$0xf]  ;;  %v701_v52 = vld [vmem:[%s7339_s7 + $0x5c] sm:$0x1] }
  0x4d   : > { %6840 = vmatpush3.bf16.msra.mxu1 %v7191_v62  ;;  %6763 = vmatprep.mubr.bf16.mxu1 %v6127_v27  ;;  %v866_v27 = vor.u32 %v865_v17, %v861_v10  ;;  %v1632_v33 = vsel %vm7423_vm5, %v1630_v23, %v1631_v24  ;;  %v877_v50 = vshll.u32 %v696_v20, 16  ;;  %v883_v55 = vshll.u32 %v697_v30, 16  ;;  %v1520_v12 = vld [vmem:[%s7339_s7 + $0x54] sm:$0xe]  ;;  %v1522_v23 = vld [vmem:[%s7339_s7 + $0x5c] sm:$0x1] }
  0x4e   : > { %6841 = vmatprep.subr.bf16.mxu1 %v7193_v29  ;;  %6888 = vmatpush3.bf16.msra.mxu0 %v7194_v13  ;;  %v841_v62 = vrot.slane %v839_v36, 4  ;;  %v833_v3 = vrot.slane %v832_v46, 4  ;;  %v1515_v13 = vld [vmem:[%s7339_s7 + $0x40] sm:$0xf]  ;;  %v862_v40 = vsel %vm7403_vm4, %v857_v26, %v861_v10  ;;  %v887_v36 = vshrl.u32 %v697_v30, 16 }
  0x4f   : > { %6811 = vmatprep.mubr.bf16.mxu0 %v6183_v43  ;;  %6889 = vmatprep.subr.bf16.mxu0 %v7196_v48  ;;  %v867_v41 = vrot.slane %v866_v27, 4  ;;  %v6185_v43 = vcombine.low %v1629_v22, %v1632_v33  ;;  %v898_v46 = vshrl.u32 %v699_v38, 16  ;;  %v885_v60 = vrot.slane %v883_v55, 5  ;;  %v7210_v55 = vld [vmem:[%s9104_s3 + $0x100] sm:$0xff]  }
  0x50   : > { %v842_v9 = vor.u32 %v841_v62, %v837_v58  ;;  %v838_v15 = vsel %vm7403_vm4, %v833_v3, %v837_v58  ;;  %v1517_v58 = vld [vmem:[%s7339_s7 + $0x48] sm:$0xe]  ;;  %v889_v61 = vrot.slane %v887_v36, 4  ;;  %v895_v62 = vrot.slane %v893_v56, 5 }
  0x51   : > { %6842 = vmatpush3.bf16.msra.mxu1 %v7193_v29  ;;  %v1635_v29 = vrot.slane %v1515_v13, 5  ;;  %v900_v2 = vrot.slane %v898_v46, 4  ;;  %v901_v3 = vshll.u32 %v699_v38, 16  ;;  %v907_v4 = vshll.u32 %v700_v44, 16  ;;  %v7203_v13 = vld [vmem:[%s9104_s3 + $0xc8] sm:$0xff]   ;;  %v7619_v46 = vld [vmem:[%s9104_s3 + $0x178] sm:$0xff]  }
  0x52   : > { %6843 = vmatprep.subr.bf16.mxu1 %v7195_v54  ;;  %6890 = vmatpush3.bf16.msra.mxu0 %v7196_v48  ;;  %v843_v21 = vrot.slane %v842_v9, 4  ;;  %v890_v8 = vor.u32 %v889_v61, %v885_v60  ;;  %v911_v9 = vshrl.u32 %v700_v44, 16  ;;  %v917_v10 = vshll.u32 %v701_v52, 16  ;;  %v705_v44 = vld [vmem:[%s7339_s7 + $0x6c] sm:$0xf] }
  0x53   : > { %6891 = vmatprep.subr.bf16.mxu0 %v7198_v32  ;;  %v1636_v47 = vsel %vm7423_vm5, %v6154_v28, %v1635_v29  ;;  %v1637_v48 = vrot.slane %v1635_v29, 4  ;;  %v6155_v11 = vrot.slane %v1517_v58, 9  ;;  %v909_v16 = vrot.slane %v907_v4, 5  ;;  %v7206_v28 = vld [vmem:[%s9104_s3 + $0x108] sm:$0xff]   ;;  %v1524_v4 = vld [vmem:[%s7339_s7 + $0x64] sm:$0xf] }
  0x54   : > { %6764 = vmatmul.mubr.bf16.gmra.mxu1 %v6128_v49  ;;  %6812 = vmatmul.mubr.bf16.gmra.mxu0 %v6184_v42  ;;  %v848_v31 = vsel %vm7403_vm4, %v843_v21, %v847_v63  ;;  %v876_v49 = vrot.slane %v874_v37, 4  ;;  %v879_v42 = vrot.slane %v877_v50, 5  ;;  %v1518_v63 = vld [vmem:[%s7339_s7 + $0x4c] sm:$0xf]  ;;  %v891_v19 = vrot.slane %v890_v8, 4  ;;  %v7205_v37 = vld [vmem:[%s9104_s3 + $0xc0] sm:$0xff]  }
  0x55   : > { %6844 = vmatpush3.bf16.msra.mxu1 %v7195_v54  ;;  %v6129_v39 = vcombine.low %v838_v15, %v848_v31  ;;  %v872_v54 = vsel %vm7403_vm4, %v867_v41, %v871_v18  ;;  %6815 = vmatprep.mubr.bf16.mxu0 %v6185_v43  ;;  %v903_v15 = vrot.slane %v901_v3, 5  ;;  %v1642_v17 = vrot.slane %v1518_v63, 5  ;;  %v1521_v18 = vld [vmem:[%s7339_s7 + $0x58] sm:$0xf]  ;;  %v704_v43 = vld [vmem:[%s7339_s7 + $0x68] sm:$0x1] }
  0x56   : > { %6845 = vmatprep.subr.bf16.mxu1 %v7197_v14  ;;  %6892 = vmatpush3.bf16.msra.mxu0 %v7198_v32  ;;  %v6130_v57 = vcombine.low %v862_v40, %v872_v54  ;;  %v1639_v32 = vsel %vm7423_vm5, %v1637_v48, %v1638_v34  ;;  %v880_v1 = vor.u32 %v879_v42, %v876_v49  ;;  %v913_v20 = vrot.slane %v911_v9, 4  ;;  %v702_v34 = vld [vmem:[%s7339_s7 + $0x60] sm:$0xf]  ;;  %v706_v42 = vld [vmem:[%s7339_s7 + $0x70] sm:$0xf] }
  0x57   : > { %6893 = vmatprep.subr.bf16.mxu0 %v7200_v25  ;;  %6767 = vmatprep.mubr.bf16.mxu1 %v6129_v39  ;;  %v6186_v59 = vcombine.low %v1636_v47, %v1639_v32  ;;  %v919_v21 = vrot.slane %v917_v10, 5  ;;  %v1645_v22 = vrot.slane %v1519_v5, 5  ;;  %v1643_v26 = vsel %vm7423_vm5, %v6155_v11, %v1642_v17  ;;  %v1523_v63 = vld [vmem:[%s7339_s7 + $0x60] sm:$0xe]  ;;  %v1525_v10 = vld [vmem:[%s7339_s7 + $0x68] sm:$0x1] }
  0x58   : > { %v1644_v27 = vrot.slane %v1642_v17, 4  ;;  %v896_v29 = vsel %vm7403_vm4, %v891_v19, %v895_v62  ;;  %v914_v30 = vor.u32 %v913_v20, %v909_v16  ;;  %v6156_v31 = vrot.slane %v1520_v12, 9  ;;  %v707_v62 = vld [vmem:[%s7339_s7 + $0x74] sm:$0x1]  ;;  %v7628_v11 = vld [vmem:[%s9104_s3 + $0x1b8] sm:$0xff]  }
  0x59   : > { %6846 = vmatpush3.bf16.msra.mxu1 %v7197_v14  ;;  %v881_v14 = vrot.slane %v880_v1, 4  ;;  %v1649_v33 = vrot.slane %v1521_v18, 5  ;;  %v1652_v41 = vrot.slane %v1522_v23, 5  ;;  %v922_v52 = vshrl.u32 %v702_v34, 16 }
  0x5a   : > { %6847 = vmatprep.subr.bf16.mxu1 %v7199_v45  ;;  %6894 = vmatpush3.bf16.msra.mxu0 %v7200_v25  ;;  %v904_v25 = vor.u32 %v903_v15, %v900_v2  ;;  %v1646_v40 = vsel %vm7423_vm5, %v1644_v27, %v1645_v22  ;;  %v931_v54 = vshll.u32 %v703_v35, 16  ;;  %v941_v32 = vshll.u32 %v704_v43, 16 }
  0x5b   : > { %6895 = vmatprep.subr.bf16.mxu0 %v7202_v53  ;;  %v886_v24 = vsel %vm7403_vm4, %v881_v14, %v885_v60  ;;  %v6187_v47 = vcombine.low %v1643_v26, %v1646_v40  ;;  %v1650_v48 = vsel %vm7423_vm5, %v6156_v31, %v1649_v33  ;;  %v1651_v49 = vrot.slane %v1649_v33, 4  ;;  %v1528_v26 = vld [vmem:[%s7339_s7 + $0x74] sm:$0x1]  ;;  %v708_v31 = vld [vmem:[%s7339_s7 + $0x78] sm:$0xf] }
  0x5c   : > { %6768 = vmatmul.mubr.bf16.gmra.mxu1 %v6130_v57  ;;  %6816 = vmatmul.mubr.bf16.gmra.mxu0 %v6186_v59  ;;  %v6131_v38 = vcombine.low %v886_v24, %v896_v29  ;;  %v905_v39 = vrot.slane %v904_v25, 4  ;;  %v935_v57 = vshrl.u32 %v703_v35, 16  ;;  %v924_v60 = vrot.slane %v922_v52, 4 }
  0x5d   : > { %6848 = vmatpush3.bf16.msra.mxu1 %v7199_v45  ;;  %v915_v45 = vrot.slane %v914_v30, 4  ;;  %6819 = vmatprep.mubr.bf16.mxu0 %v6187_v47  ;;  %v1653_v56 = vsel %vm7423_vm5, %v1651_v49, %v1652_v41  ;;  %v943_v2 = vrot.slane %v941_v32, 5  ;;  %v946_v3 = vshrl.u32 %v705_v44, 16 }
  0x5e   : > { %6849 = vmatprep.subr.bf16.mxu1 %v7201_v0  ;;  %6896 = vmatpush3.bf16.msra.mxu0 %v7202_v53  ;;  %v910_v50 = vsel %vm7403_vm4, %v905_v39, %v909_v16  ;;  %v925_v53 = vshll.u32 %v702_v34, 16  ;;  %v6188_v59 = vcombine.low %v1650_v48, %v1653_v56  ;;  %v937_v1 = vrot.slane %v935_v57, 4  ;;  %v1526_v16 = vld [vmem:[%s7339_s7 + $0x6c] sm:$0xe]  ;;  %v710_v39 = vld [vmem:[%s7339_s7 + $0x80] sm:$0x1] }
  0x5f   : > { %6897 = vmatprep.subr.bf16.mxu0 %v7204_v7  ;;  %6771 = vmatprep.mubr.bf16.mxu1 %v6131_v38  ;;  %v920_v36 = vsel %vm7403_vm4, %v915_v45, %v919_v21  ;;  %v955_v8 = vshll.u32 %v706_v42, 16  ;;  %v959_v9 = vshrl.u32 %v706_v42, 16  ;;  %v965_v14 = vshll.u32 %v707_v62, 16  ;;  %v1527_v21 = vld [vmem:[%s7339_s7 + $0x70] sm:$0xf] }
  0x60   : > { %v6132_v58 = vcombine.low %v910_v50, %v920_v36  ;;  %v927_v61 = vrot.slane %v925_v53, 5  ;;  %v6157_v15 = vrot.slane %v1523_v63, 9  ;;  %v1656_v24 = vrot.slane %v1524_v4, 5  ;;  %v709_v38 = vld [vmem:[%s7339_s7 + $0x7c] sm:$0xf] }
  0x61   : > { %6850 = vmatpush3.bf16.msra.mxu1 %v7201_v0  ;;  %v933_v0 = vrot.slane %v931_v54, 5  ;;  %v957_v19 = vrot.slane %v955_v8, 5  ;;  %v961_v20 = vrot.slane %v959_v9, 4  ;;  %v967_v23 = vrot.slane %v965_v14, 5  ;;  %v711_v45 = vld [vmem:[%s7339_s7 + $0x84] sm:$0xf] }
  0x62   : > { %6851 = vmatprep.subr.bf16.mxu1 %v7203_v13  ;;  %6898 = vmatpush3.bf16.msra.mxu0 %v7204_v7  ;;  %v928_v5 = vor.u32 %v927_v61, %v924_v60  ;;  %v949_v7 = vshll.u32 %v705_v44, 16  ;;  %v1659_v25 = vrot.slane %v1525_v10, 5  ;;  %v6158_v30 = vrot.slane %v1526_v16, 9  ;;  %v712_v36 = vld [vmem:[%s7339_s7 + $0x88] sm:$0xf] }
  0x63   : > { %6899 = vmatprep.subr.bf16.mxu0 %v7206_v28  ;;  %v938_v12 = vor.u32 %v937_v1, %v933_v0  ;;  %v962_v29 = vor.u32 %v961_v20, %v957_v19  ;;  %v1657_v34 = vsel %vm7423_vm5, %v6157_v15, %v1656_v24  ;;  %v1658_v35 = vrot.slane %v1656_v24, 4 }
  0x64   : > { %6772 = vmatmul.mubr.bf16.gmra.mxu1 %v6132_v58  ;;  %6820 = vmatmul.mubr.bf16.gmra.mxu0 %v6188_v59  ;;  %v929_v17 = vrot.slane %v928_v5, 4  ;;  %v951_v18 = vrot.slane %v949_v7, 5  ;;  %v1666_v44 = vrot.slane %v1528_v26, 5  ;;  %v970_v50 = vshrl.u32 %v708_v31, 16  ;;  %v713_v58 = vld [vmem:[%s7339_s7 + $0x8c] sm:$0x1] }
  0x65   : > { %6852 = vmatpush3.bf16.msra.mxu1 %v7203_v13  ;;  %v948_v13 = vrot.slane %v946_v3, 4  ;;  %v939_v22 = vrot.slane %v938_v12, 4  ;;  %v963_v43 = vrot.slane %v962_v29, 4  ;;  %v1660_v47 = vsel %vm7423_vm5, %v1658_v35, %v1659_v25  ;;  %v1529_v59 = vld [vmem:[%s7339_s7 + $0x78] sm:$0xe] }
  0x66   : > { %6853 = vmatprep.subr.bf16.mxu1 %v7205_v37  ;;  %6900 = vmatpush3.bf16.msra.mxu0 %v7206_v28  ;;  %v934_v27 = vsel %vm7403_vm4, %v929_v17, %v933_v0  ;;  %v6189_v54 = vcombine.low %v1657_v34, %v1660_v47  ;;  %v972_v32 = vrot.slane %v970_v50, 4  ;;  %v979_v42 = vshll.u32 %v709_v38, 16  ;;  %v1530_v0 = vld [vmem:[%s7339_s7 + $0x7c] sm:$0xf]  ;;  %v1531_v5 = vld [vmem:[%s7339_s7 + $0x80] sm:$0x1] }
  0x67   : > { %6901 = vmatprep.subr.bf16.mxu0 %v7210_v55  ;;  %v952_v28 = vor.u32 %v951_v18, %v948_v13  ;;  %v944_v33 = vsel %vm7403_vm4, %v939_v22, %v943_v2  ;;  %v968_v53 = vsel %vm7403_vm4, %v963_v43, %v967_v23  ;;  %v983_v62 = vshrl.u32 %v709_v38, 16  ;;  %v1532_v12 = vld [vmem:[%s7339_s7 + $0x84] sm:$0xe]  ;;  %v1533_v17 = vld [vmem:[%s7339_s7 + $0x88] sm:$0xf] }
  0x68   : > { %v6133_v40 = vcombine.low %v934_v27, %v944_v33  ;;  %6823 = vmatprep.mubr.bf16.mxu0 %v6189_v54  ;;  %v989_v63 = vshll.u32 %v710_v39, 16  ;;  %v981_v1 = vrot.slane %v979_v42, 5  ;;  %v994_v2 = vshrl.u32 %v711_v45, 16  ;;  %v1534_v22 = vld [vmem:[%s7339_s7 + $0x8c] sm:$0x1] }
  0x69   : > { %6854 = vmatpush3.bf16.msra.mxu1 %v7205_v37  ;;  %v1663_v37 = vrot.slane %v1527_v21, 5  ;;  %v953_v41 = vrot.slane %v952_v28, 4  ;;  %v997_v3 = vshll.u32 %v711_v45, 16  ;;  %v1003_v4 = vshll.u32 %v712_v36, 16  ;;  %v714_v27 = vld [vmem:[%s7339_s7 + $0x90] sm:$0xf] }
  0x6a   : > { %6935 = vmatprep.subr.bf16.mxu1 %v7619_v46  ;;  %6902 = vmatpush3.bf16.msra.mxu0 %v7210_v55  ;;  %v973_v55 = vshll.u32 %v708_v31, 16  ;;  %v985_v8 = vrot.slane %v983_v62, 4  ;;  %v991_v9 = vrot.slane %v989_v63, 5  ;;  %v1007_v10 = vshrl.u32 %v712_v36, 16  ;;  %v715_v33 = vld [vmem:[%s7339_s7 + $0x94] sm:$0xf] }
  0x6b   : > { %6983 = vmatprep.subr.bf16.mxu0 %v7628_v11  ;;  %v1664_v48 = vsel %vm7423_vm5, %v6158_v30, %v1663_v37  ;;  %v1665_v49 = vrot.slane %v1663_v37, 4  ;;  %6775 = vmatprep.mubr.bf16.mxu1 %v6133_v40  ;;  %v958_v52 = vsel %vm7403_vm4, %v953_v41, %v957_v19  ;;  %v996_v13 = vrot.slane %v994_v2, 4  ;;  %v716_v39 = vld [vmem:[%s7339_s7 + $0x98] sm:$0x1]  ;;  %v717_v40 = vld [vmem:[%s7339_s7 + $0x9c] sm:$0xf] }
  0x6c   : > { %v6134_v56 = vcombine.low %v958_v52, %v968_v53  ;;  %v975_v61 = vrot.slane %v973_v55, 5  ;;  %v999_v14 = vrot.slane %v997_v3, 5  ;;  %v1005_v15 = vrot.slane %v1003_v4, 5  ;;  %v718_v36 = vld [vmem:[%s7339_s7 + $0xa0] sm:$0xf] }
  0x6d   : > { %v1667_v57 = vsel %vm7423_vm5, %v1665_v49, %v1666_v44  ;;  %v1013_v16 = vshll.u32 %v713_v58, 16  ;;  %v986_v19 = vor.u32 %v985_v8, %v981_v1  ;;  %v1009_v20 = vrot.slane %v1007_v10, 4  ;;  %v719_v58 = vld [vmem:[%s7339_s7 + $0xa4] sm:$0x1]  ;;  %v1535_v63 = vld [vmem:[%s7339_s7 + $0x90] sm:$0xe] }
  0x6e   : > { %v6190_v60 = vcombine.low %v1664_v48, %v1667_v57  ;;  %6776 = vmatmul.mubr.bf16.gmra.mxu1 %v6134_v56  ;;  %v976_v7 = vor.u32 %v975_v61, %v972_v32  ;;  %v6159_v21 = vrot.slane %v1529_v59, 9  ;;  %v1000_v23 = vor.u32 %v999_v14, %v996_v13  ;;  %v1536_v4 = vld [vmem:[%s7339_s7 + $0x94] sm:$0xf]  ;;  %v1537_v10 = vld [vmem:[%s7339_s7 + $0x98] sm:$0x1] }
  0x6f   : > { %v1015_v24 = vrot.slane %v1013_v16, 5  ;;  %v1670_v25 = vrot.slane %v1530_v0, 5  ;;  %v1673_v26 = vrot.slane %v1531_v5, 5  ;;  %v987_v29 = vrot.slane %v986_v19, 4  ;;  %v1538_v16 = vld [vmem:[%s7339_s7 + $0x9c] sm:$0xe] }
  0x70   : > { %6824 = vmatmul.mubr.bf16.gmra.mxu0 %v6190_v60  ;;  %v977_v18 = vrot.slane %v976_v7, 4  ;;  %v1010_v30 = vor.u32 %v1009_v20, %v1005_v15  ;;  %v6160_v31 = vrot.slane %v1532_v12, 9  ;;  %v1001_v34 = vrot.slane %v1000_v23, 4 }
  0x71   : > { %v1671_v35 = vsel %vm7423_vm5, %v6159_v21, %v1670_v25  ;;  %v1672_v37 = vrot.slane %v1670_v25, 4  ;;  %v1677_v38 = vrot.slane %v1533_v17, 5  ;;  %v992_v41 = vsel %vm7403_vm4, %v987_v29, %v991_v9  ;;  %v1539_v17 = vld [vmem:[%s7339_s7 + $0xa0] sm:$0xf] }
  0x72   : > { %v982_v28 = vsel %vm7403_vm4, %v977_v18, %v981_v1  ;;  %v1011_v43 = vrot.slane %v1010_v30, 4  ;;  %v1680_v44 = vrot.slane %v1534_v22, 5  ;;  %v1018_v45 = vshrl.u32 %v714_v27, 16  ;;  %v1540_v22 = vld [vmem:[%s7339_s7 + $0xa4] sm:$0x1] }
  0x73   : > { %v6135_v47 = vcombine.low %v982_v28, %v992_v41  ;;  %v1006_v48 = vsel %vm7403_vm4, %v1001_v34, %v1005_v15  ;;  %v1674_v49 = vsel %vm7423_vm5, %v1672_v37, %v1673_v26  ;;  %v1678_v50 = vsel %vm7423_vm5, %v6160_v31, %v1677_v38 }
  0x74   : > { %v1016_v52 = vsel %vm7403_vm4, %v1011_v43, %v1015_v24  ;;  %v6191_v53 = vcombine.low %v1671_v35, %v1674_v49  ;;  %v1679_v54 = vrot.slane %v1677_v38, 4  ;;  %v1020_v55 = vrot.slane %v1018_v45, 4  ;;  %v723_v45 = vld [vmem:[%s7339_s7 + $0xb4] sm:$0xf] }
  0x75   : > { %6779 = vmatprep.mubr.bf16.mxu1 %v6135_v47  ;;  %v6136_v56 = vcombine.low %v1006_v48, %v1016_v52  ;;  %v1021_v57 = vshll.u32 %v714_v27, 16  ;;  %v1027_v32 = vshll.u32 %v715_v33, 16  ;;  %v1031_v42 = vshrl.u32 %v715_v33, 16  ;;  %v720_v27 = vld [vmem:[%s7339_s7 + $0xa8] sm:$0xf] }
  0x76   : > { %6827 = vmatprep.mubr.bf16.mxu0 %v6191_v53  ;;  %v1681_v59 = vsel %vm7423_vm5, %v1679_v54, %v1680_v44  ;;  %v1037_v60 = vshll.u32 %v716_v39, 16  ;;  %v1042_v61 = vshrl.u32 %v717_v40, 16  ;;  %v1045_v62 = vshll.u32 %v717_v40, 16  ;;  %v721_v33 = vld [vmem:[%s7339_s7 + $0xac] sm:$0xf] }
  0x77   : > { %6780 = vmatmul.mubr.bf16.gmra.mxu1 %v6136_v56  ;;  %v6192_v0 = vcombine.low %v1678_v50, %v1681_v59  ;;  %v1023_v1 = vrot.slane %v1021_v57, 5  ;;  %v1029_v2 = vrot.slane %v1027_v32, 5  ;;  %v1033_v3 = vrot.slane %v1031_v42, 4  ;;  %v722_v39 = vld [vmem:[%s7339_s7 + $0xb0] sm:$0x1] }
  0x78   : > { %v1039_v5 = vrot.slane %v1037_v60, 5  ;;  %v1044_v7 = vrot.slane %v1042_v61, 4  ;;  %v1047_v8 = vrot.slane %v1045_v62, 5  ;;  %v1051_v9 = vshll.u32 %v718_v36, 16  ;;  %v724_v52 = vld [vmem:[%s7339_s7 + $0xb8] sm:$0xf] }
  0x79   : > { %6828 = vmatmul.mubr.bf16.gmra.mxu0 %v6192_v0  ;;  %v1024_v12 = vor.u32 %v1023_v1, %v1020_v55  ;;  %v1034_v13 = vor.u32 %v1033_v3, %v1029_v2  ;;  %v1055_v14 = vshrl.u32 %v718_v36, 16  ;;  %v1061_v15 = vshll.u32 %v719_v58, 16  ;;  %v725_v56 = vld [vmem:[%s7339_s7 + $0xbc] sm:$0x1]  ;;  %v1541_v59 = vld [vmem:[%s7339_s7 + $0xa8] sm:$0xe] }
  0x7a   : > { %v1048_v18 = vor.u32 %v1047_v8, %v1044_v7  ;;  %v1053_v19 = vrot.slane %v1051_v9, 5  ;;  %v6161_v20 = vrot.slane %v1535_v63, 9  ;;  %v1684_v21 = vrot.slane %v1536_v4, 5  ;;  %v1542_v0 = vld [vmem:[%s7339_s7 + $0xac] sm:$0xf] }
  0x7b   : > { %v1025_v23 = vrot.slane %v1024_v12, 4  ;;  %v1035_v24 = vrot.slane %v1034_v13, 4  ;;  %v1057_v25 = vrot.slane %v1055_v14, 4  ;;  %v1063_v26 = vrot.slane %v1061_v15, 5  ;;  %v1543_v1 = vld [vmem:[%s7339_s7 + $0xb0] sm:$0x1] }
  0x7c   : > { %v1049_v28 = vrot.slane %v1048_v18, 4  ;;  %v1685_v29 = vsel %vm7423_vm5, %v6161_v20, %v1684_v21  ;;  %v1686_v30 = vrot.slane %v1684_v21, 4  ;;  %v1687_v31 = vrot.slane %v1537_v10, 5  ;;  %v1544_v7 = vld [vmem:[%s7339_s7 + $0xb4] sm:$0xe] }
  0x7d   : > { %v1030_v34 = vsel %vm7403_vm4, %v1025_v23, %v1029_v2  ;;  %v1040_v35 = vsel %vm7403_vm4, %v1035_v24, %v1039_v5  ;;  %v1058_v37 = vor.u32 %v1057_v25, %v1053_v19  ;;  %v6162_v38 = vrot.slane %v1538_v16, 9  ;;  %v1545_v13 = vld [vmem:[%s7339_s7 + $0xb8] sm:$0xf]  ;;  %v1546_v18 = vld [vmem:[%s7339_s7 + $0xbc] sm:$0x1] }
  0x7e   : > { %v6137_v40 = vcombine.low %v1030_v34, %v1040_v35  ;;  %v1054_v41 = vsel %vm7403_vm4, %v1049_v28, %v1053_v19  ;;  %v1688_v43 = vsel %vm7423_vm5, %v1686_v30, %v1687_v31  ;;  %v1691_v44 = vrot.slane %v1539_v17, 5 }
  0x7f   : > { %v1059_v47 = vrot.slane %v1058_v37, 4  ;;  %v6193_v48 = vcombine.low %v1685_v29, %v1688_v43  ;;  %v1694_v49 = vrot.slane %v1540_v22, 5  ;;  %v1066_v50 = vshrl.u32 %v720_v27, 16 }
  0x80   : > { %6783 = vmatprep.mubr.bf16.mxu1 %v6137_v40  ;;  %v1692_v53 = vsel %vm7423_vm5, %v6162_v38, %v1691_v44  ;;  %v1693_v54 = vrot.slane %v1691_v44, 4  ;;  %v1069_v55 = vshll.u32 %v720_v27, 16  ;;  %v1075_v36 = vshll.u32 %v721_v33, 16 }
  0x81   : > { %v1064_v57 = vsel %vm7403_vm4, %v1059_v47, %v1063_v26  ;;  %6831 = vmatprep.mubr.bf16.mxu0 %v6193_v48  ;;  %v1068_v32 = vrot.slane %v1066_v50, 4  ;;  %v1079_v42 = vshrl.u32 %v721_v33, 16  ;;  %v1085_v58 = vshll.u32 %v722_v39, 16  ;;  %v2547_v47 = vld [vmem:[%s7722_s25 + $0x4] sm:$0xf] }
  0x82   : > { %v6138_v60 = vcombine.low %v1054_v41, %v1064_v57  ;;  %v1695_v61 = vsel %vm7423_vm5, %v1693_v54, %v1694_v49  ;;  %v1071_v62 = vrot.slane %v1069_v55, 5  ;;  %v1077_v63 = vrot.slane %v1075_v36, 5  ;;  %v2549_v55 = vld [vmem:[%s7722_s25 + $0xc] sm:$0xf] }
  0x83   : > { %v6194_v2 = vcombine.low %v1692_v53, %v1695_v61  ;;  %v1081_v3 = vrot.slane %v1079_v42, 4  ;;  %v1087_v4 = vrot.slane %v1085_v58, 5  ;;  %v1090_v5 = vshrl.u32 %v723_v45, 16  ;;  %v2548_v53 = vld [vmem:[%s7722_s25 + $0x8] sm:$0x1] }
  0x84   : > { %6784 = vmatmul.mubr.bf16.gmra.mxu1 %v6138_v60  ;;  %v1072_v8 = vor.u32 %v1071_v62, %v1068_v32  ;;  %v1093_v9 = vshll.u32 %v723_v45, 16  ;;  %v1099_v10 = vshll.u32 %v724_v52, 16  ;;  %v1103_v12 = vshrl.u32 %v724_v52, 16  ;;  %v2546_v45 = vld [vmem:[%s7722_s25] sm:$0xf] }
  0x85   : > { %6832 = vmatmul.mubr.bf16.gmra.mxu0 %v6194_v2  ;;  %v1082_v14 = vor.u32 %v1081_v3, %v1077_v63  ;;  %v1092_v15 = vrot.slane %v1090_v5, 4  ;;  %v1109_v16 = vshll.u32 %v725_v56, 16  ;;  %v6163_v17 = vrot.slane %v1541_v59, 9  ;;  %v7207_v52 = vld [vmem:[%s7722_s25] sm:$0xff]   ;;  %v2550_v42 = vld [vmem:[%s7722_s25 + $0x10] sm:$0xf] }
  0x86   : > { %v1073_v19 = vrot.slane %v1072_v8, 4  ;;  %v1095_v20 = vrot.slane %v1093_v9, 5  ;;  %v1101_v21 = vrot.slane %v1099_v10, 5  ;;  %v1105_v22 = vrot.slane %v1103_v12, 4  ;;  %v2551_v58 = vld [vmem:[%s7722_s25 + $0x14] sm:$0x1] }
  0x87   : > { %v1083_v23 = vrot.slane %v1082_v14, 4  ;;  %v1111_v24 = vrot.slane %v1109_v16, 5  ;;  %v1698_v25 = vrot.slane %v1542_v0, 5  ;;  %v1701_v26 = vrot.slane %v1543_v1, 5  ;;  %v7208_v8 = vld [vmem:[%s7722_s25 + $0xc] sm:$0xff]  }
  0x88   : > { %v1078_v27 = vsel %vm7403_vm4, %v1073_v19, %v1077_v63  ;;  %v1096_v28 = vor.u32 %v1095_v20, %v1092_v15  ;;  %v1106_v29 = vor.u32 %v1105_v22, %v1101_v21  ;;  %v6164_v30 = vrot.slane %v1544_v7, 9  ;;  %v7211_v19 = vld [vmem:[%s7722_s25 + $0x18] sm:$0xff]  }
  0x89   : > { %v1088_v31 = vsel %vm7403_vm4, %v1083_v23, %v1087_v4  ;;  %v1699_v33 = vsel %vm7423_vm5, %v6163_v17, %v1698_v25  ;;  %v1700_v34 = vrot.slane %v1698_v25, 4  ;;  %v1705_v35 = vrot.slane %v1545_v13, 5  ;;  %v2552_v23 = vld [vmem:[%s7722_s25 + $0x18] sm:$0xf] }
  0x8a   : > { %v6139_v37 = vcombine.low %v1078_v27, %v1088_v31  ;;  %v1097_v38 = vrot.slane %v1096_v28, 4  ;;  %v1107_v39 = vrot.slane %v1106_v29, 4  ;;  %v1708_v40 = vrot.slane %v1546_v18, 5  ;;  %v7213_v27 = vld [vmem:[%s9104_s3 + $0x170] sm:$0xff]   ;;  %v2554_v28 = vld [vmem:[%s7722_s25 + $0x20] sm:$0x1] }
  0x8b   : > { %v1702_v41 = vsel %vm7423_vm5, %v1700_v34, %v1701_v26  ;;  %v1706_v43 = vsel %vm7423_vm5, %v6164_v30, %v1705_v35  ;;  %v1707_v44 = vrot.slane %v1705_v35, 4  ;;  %v2595_v54 = vshrl.u32 %v2546_v45, 16 }
  0x8c   : > { %6787 = vmatprep.mubr.bf16.mxu1 %v6139_v37  ;;  %v1102_v48 = vsel %vm7403_vm4, %v1097_v38, %v1101_v21  ;;  %v1112_v49 = vsel %vm7403_vm4, %v1107_v39, %v1111_v24  ;;  %v6195_v50 = vcombine.low %v1699_v33, %v1702_v41  ;;  %v2598_v57 = vshll.u32 %v2546_v45, 16  ;;  %v2553_v24 = vld [vmem:[%s7722_s25 + $0x1c] sm:$0xf]  ;;  %v2555_v37 = vld [vmem:[%s7722_s25 + $0x24] sm:$0xf]  ;;  %v7217_v45 = vld [vmem:[%s9104_s3 + $0x168] sm:$0xff]  }
  0x8d   : > { %v6140_v36 = vcombine.low %v1102_v48, %v1112_v49  ;;  %v1709_v56 = vsel %vm7423_vm5, %v1707_v44, %v1708_v40  ;;  %v2604_v32 = vshll.u32 %v2547_v47, 16  ;;  %v2597_v60 = vrot.slane %v2595_v54, 4  ;;  %v2557_v44 = vld [vmem:[%s7722_s25 + $0x2c] sm:$0x1]  ;;  %v7212_v54 = vld [vmem:[%s7722_s25 + $0x24] sm:$0xff]  }
  0x8e   : > { %6835 = vmatprep.mubr.bf16.mxu0 %v6195_v50  ;;  %v6196_v59 = vcombine.low %v1706_v43, %v1709_v56  ;;  %v2608_v61 = vshrl.u32 %v2547_v47, 16  ;;  %v2614_v62 = vshll.u32 %v2548_v53, 16  ;;  %v2600_v63 = vrot.slane %v2598_v57, 5  ;;  %v2556_v43 = vld [vmem:[%s7722_s25 + $0x28] sm:$0xf] }
  0x8f   : > { %6788 = vmatmul.mubr.bf16.gmra.mxu1 %v6140_v36  ;;  %v2606_v0 = vrot.slane %v2604_v32, 5  ;;  %v2619_v1 = vshrl.u32 %v2549_v55, 16  ;;  %v2622_v2 = vshll.u32 %v2549_v55, 16  ;;  %v2628_v5 = vshll.u32 %v2550_v42, 16 }
  0x90   : > { %6836 = vmatmul.mubr.bf16.gmra.mxu0 %v6196_v59  ;;  %6855 = vmatprep.mubr.bf16.mxu1 %v7207_v52  ;;  %v2610_v3 = vrot.slane %v2608_v61, 4  ;;  %v2616_v4 = vrot.slane %v2614_v62, 5  ;;  %v2632_v7 = vshrl.u32 %v2550_v42, 16  ;;  %v2601_v9 = vor.u32 %v2600_v63, %v2597_v60  ;;  %v7218_v52 = vld [vmem:[%s9104_s3 + $0x1b0] sm:$0xff]  }
  0x91   : > { %v2621_v10 = vrot.slane %v2619_v1, 4  ;;  %v2624_v12 = vrot.slane %v2622_v2, 5  ;;  %v2638_v13 = vshll.u32 %v2551_v58, 16  ;;  %v2630_v15 = vrot.slane %v2628_v5, 5  ;;  %v7215_v58 = vld [vmem:[%s7722_s25 + $0x30] sm:$0xff]   ;;  %v7221_v2 = vld [vmem:[%s9104_s3 + $0x160] sm:$0xff]  }
  0x92   : > { %v2611_v14 = vor.u32 %v2610_v3, %v2606_v0  ;;  %v2634_v16 = vrot.slane %v2632_v7, 4  ;;  %v2602_v17 = vrot.slane %v2601_v9, 4  ;;  %v2643_v29 = vshrl.u32 %v2552_v23, 16  ;;  %v7222_v7 = vld [vmem:[%s9104_s3 + $0x1a8] sm:$0xff]   ;;  %v2558_v9 = vld [vmem:[%s7722_s25 + $0x30] sm:$0xf] }
  0x93   : > { %v2625_v18 = vor.u32 %v2624_v12, %v2621_v10  ;;  %v2640_v22 = vrot.slane %v2638_v13, 5  ;;  %v2646_v30 = vshll.u32 %v2552_v23, 16  ;;  %v2652_v34 = vshll.u32 %v2553_v24, 16  ;;  %v2559_v10 = vld [vmem:[%s7722_s25 + $0x34] sm:$0xf] }
  0x94   : > { %v2612_v20 = vrot.slane %v2611_v14, 4  ;;  %v2635_v21 = vor.u32 %v2634_v16, %v2630_v15  ;;  %v2607_v25 = vsel %vm7403_vm4, %v2602_v17, %v2606_v0  ;;  %v2656_v35 = vshrl.u32 %v2553_v24, 16  ;;  %v2560_v12 = vld [vmem:[%s7722_s25 + $0x38] sm:$0x1]  ;;  %v2561_v17 = vld [vmem:[%s7722_s25 + $0x3c] sm:$0xf] }
  0x95   : > { %v2626_v26 = vrot.slane %v2625_v18, 4  ;;  %v2645_v40 = vrot.slane %v2643_v29, 4  ;;  %v2648_v41 = vrot.slane %v2646_v30, 5  ;;  %v2654_v48 = vrot.slane %v2652_v34, 5  ;;  %v7216_v24 = vld [vmem:[%s7722_s25 + $0x3c] sm:$0xff]  }
  0x96   : > { %v2617_v31 = vsel %vm7403_vm4, %v2612_v20, %v2616_v4  ;;  %v2636_v33 = vrot.slane %v2635_v21, 4  ;;  %v2658_v49 = vrot.slane %v2656_v35, 4  ;;  %v2662_v50 = vshll.u32 %v2554_v28, 16  ;;  %v7225_v29 = vld [vmem:[%s9104_s3 + $0x158] sm:$0xff]   ;;  %v7219_v35 = vld [vmem:[%s7722_s25 + $0x48] sm:$0xff]  }
  0x97   : > { %6856 = vmatmul.mubr.bf16.vlgmr.msra.gmra.mxu1 %v7208_v8  ;;  %v6261_v38 = vcombine.low %v2607_v25, %v2617_v31  ;;  %v2631_v39 = vsel %vm7403_vm4, %v2626_v26, %v2630_v15  ;;  %v2649_v55 = vor.u32 %v2648_v41, %v2645_v40  ;;  %v2667_v36 = vshrl.u32 %v2555_v37, 16 }
  0x98   : > { %6936 = vmatpush3.bf16.msra.mxu1 %v7619_v46  ;;  %v2641_v47 = vsel %vm7403_vm4, %v2636_v33, %v2640_v22  ;;  %6859 = vmatprep.mubr.bf16.mxu1 %v7211_v19  ;;  %v2670_v56 = vshll.u32 %v2555_v37, 16  ;;  %v2659_v46 = vor.u32 %v2658_v49, %v2654_v48  ;;  %v2664_v57 = vrot.slane %v2662_v50, 5  ;;  %v2562_v22 = vld [vmem:[%s7722_s25 + $0x40] sm:$0xf] }
  0x99   : > { %6903 = vmatprep.mubr.bf16.mxu0 %v6261_v38  ;;  %v6262_v53 = vcombine.low %v2631_v39, %v2641_v47  ;;  %6937 = vmatprep.subr.bf16.mxu1 %v7213_v27  ;;  %v2676_v32 = vshll.u32 %v2556_v43, 16  ;;  %v2680_v42 = vshrl.u32 %v2556_v43, 16  ;;  %v2650_v59 = vrot.slane %v2649_v55, 4  ;;  %v7226_v37 = vld [vmem:[%s9104_s3 + $0x1a0] sm:$0xff]  }
  0x9a   : > { %v2669_v60 = vrot.slane %v2667_v36, 4  ;;  %v2672_v61 = vrot.slane %v2670_v56, 5  ;;  %v2686_v62 = vshll.u32 %v2557_v44, 16  ;;  %v2660_v63 = vrot.slane %v2659_v46, 4 }
  0x9b   : > { %6904 = vmatmul.mubr.bf16.vlgmr.msra.gmra.mxu0 %v6262_v53  ;;  %v2678_v0 = vrot.slane %v2676_v32, 5  ;;  %v2682_v1 = vrot.slane %v2680_v42, 4  ;;  %v2655_v3 = vsel %vm7403_vm4, %v2650_v59, %v2654_v48  ;;  %v2691_v15 = vshrl.u32 %v2558_v9, 16  ;;  %v7229_v48 = vld [vmem:[%s9104_s3 + $0x150] sm:$0xff]   ;;  %v2565_v32 = vld [vmem:[%s7722_s25 + $0x4c] sm:$0xf] }
  0x9c   : > { %6938 = vmatpush3.bf16.msra.mxu1 %v7213_v27  ;;  %6984 = vmatpush3.bf16.msra.mxu0 %v7628_v11  ;;  %v2673_v4 = vor.u32 %v2672_v61, %v2669_v60  ;;  %v2688_v5 = vrot.slane %v2686_v62, 5  ;;  %v2665_v11 = vsel %vm7403_vm4, %v2660_v63, %v2664_v57  ;;  %v2694_v16 = vshll.u32 %v2558_v9, 16  ;;  %v2563_v27 = vld [vmem:[%s7722_s25 + $0x44] sm:$0x1]  ;;  %v2564_v57 = vld [vmem:[%s7722_s25 + $0x48] sm:$0xf] }
  0x9d   : > { %6939 = vmatprep.subr.bf16.mxu1 %v7217_v45  ;;  %6985 = vmatprep.subr.bf16.mxu0 %v7218_v52  ;;  %v2683_v8 = vor.u32 %v2682_v1, %v2678_v0  ;;  %v6263_v13 = vcombine.low %v2655_v3, %v2665_v11  ;;  %v2700_v19 = vshll.u32 %v2559_v10, 16  ;;  %v2704_v20 = vshrl.u32 %v2559_v10, 16  ;;  %v2566_v59 = vld [vmem:[%s7722_s25 + $0x50] sm:$0x1]  ;;  %v2567_v62 = vld [vmem:[%s7722_s25 + $0x54] sm:$0xf] }
  0x9e   : > { %v2674_v14 = vrot.slane %v2673_v4, 4  ;;  %v2710_v21 = vshll.u32 %v2560_v12, 16  ;;  %v2693_v25 = vrot.slane %v2691_v15, 4  ;;  %v2696_v26 = vrot.slane %v2694_v16, 5  ;;  %v7220_v1 = vld [vmem:[%s7722_s25 + $0x54] sm:$0xff]   ;;  %v7223_v12 = vld [vmem:[%s7722_s25 + $0x60] sm:$0xff]  }
  0x9f   : > { %6860 = vmatmul.mubr.bf16.gmra.mxu1 %v7212_v54  ;;  %v2684_v18 = vrot.slane %v2683_v8, 4  ;;  %6907 = vmatprep.mubr.bf16.mxu0 %v6263_v13  ;;  %v2715_v28 = vshrl.u32 %v2561_v17, 16  ;;  %v2702_v31 = vrot.slane %v2700_v19, 5  ;;  %v2706_v33 = vrot.slane %v2704_v20, 4  ;;  %v2568_v4 = vld [vmem:[%s7722_s25 + $0x58] sm:$0xf] }
  0xa0   : > { %6863 = vmatprep.mubr.bf16.mxu1 %v7215_v58  ;;  %6940 = vmatpush3.bf16.msra.mxu1 %v7217_v45  ;;  %v2679_v23 = vsel %vm7403_vm4, %v2674_v14, %v2678_v0  ;;  %v2712_v34 = vrot.slane %v2710_v21, 5  ;;  %v2697_v39 = vor.u32 %v2696_v26, %v2693_v25  ;;  %v2718_v41 = vshll.u32 %v2561_v17, 16  ;;  %v2569_v10 = vld [vmem:[%s7722_s25 + $0x5c] sm:$0x1]  ;;  %v7234_v17 = vld [vmem:[%s9104_s3 + $0x190] sm:$0xff]  }
  0xa1   : > { %6986 = vmatpush3.bf16.msra.mxu0 %v7218_v52  ;;  %v2689_v30 = vsel %vm7403_vm4, %v2684_v18, %v2688_v5  ;;  %6941 = vmatprep.subr.bf16.mxu1 %v7221_v2  ;;  %v2717_v40 = vrot.slane %v2715_v28, 4  ;;  %v2707_v43 = vor.u32 %v2706_v33, %v2702_v31  ;;  %v2724_v44 = vshll.u32 %v2562_v22, 16  ;;  %v7230_v52 = vld [vmem:[%s9104_s3 + $0x198] sm:$0xff]   ;;  %v7233_v5 = vld [vmem:[%s9104_s3 + $0x148] sm:$0xff]   ;;  %v7237_v18 = vld [vmem:[%s9104_s3 + $0x140] sm:$0xff]  }
  0xa2   : > { %6987 = vmatprep.subr.bf16.mxu0 %v7222_v7  ;;  %v6264_v38 = vcombine.low %v2679_v23, %v2689_v30  ;;  %v2728_v45 = vshrl.u32 %v2562_v22, 16  ;;  %v2734_v47 = vshll.u32 %v2563_v27, 16  ;;  %v2698_v49 = vrot.slane %v2697_v39, 4  ;;  %v7238_v27 = vld [vmem:[%s9104_s3 + $0x188] sm:$0xff]  }
  0xa3   : > { %v2720_v50 = vrot.slane %v2718_v41, 5  ;;  %v2708_v53 = vrot.slane %v2707_v43, 4  ;;  %v2726_v54 = vrot.slane %v2724_v44, 5  ;;  %v2739_v60 = vshrl.u32 %v2564_v57, 16  ;;  %v2570_v41 = vld [vmem:[%s7722_s25 + $0x60] sm:$0xf] }
  0xa4   : > { %6942 = vmatpush3.bf16.msra.mxu1 %v7221_v2  ;;  %6908 = vmatmul.mubr.bf16.gmra.mxu0 %v6264_v38  ;;  %v2730_v55 = vrot.slane %v2728_v45, 4  ;;  %v2736_v36 = vrot.slane %v2734_v47, 5  ;;  %v2703_v56 = vsel %vm7403_vm4, %v2698_v49, %v2702_v31  ;;  %v2742_v61 = vshll.u32 %v2564_v57, 16  ;;  %v2571_v43 = vld [vmem:[%s7722_s25 + $0x64] sm:$0xf]  ;;  %v7224_v45 = vld [vmem:[%s7722_s25 + $0x6c] sm:$0xff]  }
  0xa5   : > { %6943 = vmatprep.subr.bf16.mxu1 %v7225_v29  ;;  %6988 = vmatpush3.bf16.msra.mxu0 %v7222_v7  ;;  %v2721_v46 = vor.u32 %v2720_v50, %v2717_v40  ;;  %v2713_v42 = vsel %vm7403_vm4, %v2708_v53, %v2712_v34  ;;  %v2748_v2 = vshll.u32 %v2565_v32, 16  ;;  %v2752_v3 = vshrl.u32 %v2565_v32, 16  ;;  %v2572_v47 = vld [vmem:[%s7722_s25 + $0x68] sm:$0x1] }
  0xa6   : > { %6989 = vmatprep.subr.bf16.mxu0 %v7226_v37  ;;  %v2731_v58 = vor.u32 %v2730_v55, %v2726_v54  ;;  %v6265_v63 = vcombine.low %v2703_v56, %v2713_v42  ;;  %v2741_v11 = vrot.slane %v2739_v60, 4  ;;  %v2744_v8 = vrot.slane %v2742_v61, 5  ;;  %v2573_v56 = vld [vmem:[%s7722_s25 + $0x6c] sm:$0xf] }
  0xa7   : > { %6864 = vmatmul.mubr.bf16.gmra.mxu1 %v7216_v24  ;;  %v2722_v0 = vrot.slane %v2721_v46, 4  ;;  %v2758_v9 = vshll.u32 %v2566_v59, 16  ;;  %v2750_v14 = vrot.slane %v2748_v2, 5  ;;  %v2754_v15 = vrot.slane %v2752_v3, 4  ;;  %v2574_v46 = vld [vmem:[%s7722_s25 + $0x70] sm:$0xf] }
  0xa8   : > { %6867 = vmatprep.mubr.bf16.mxu1 %v7219_v35  ;;  %6944 = vmatpush3.bf16.msra.mxu1 %v7225_v29  ;;  %v2732_v7 = vrot.slane %v2731_v58, 4  ;;  %v2763_v16 = vshrl.u32 %v2567_v62, 16  ;;  %v2745_v20 = vor.u32 %v2744_v8, %v2741_v11  ;;  %v2766_v22 = vshll.u32 %v2567_v62, 16  ;;  %v7842_v35 = vld [vmem:[%s9104_s3 + $0x1f8] sm:$0xff]   ;;  %v2575_v59 = vld [vmem:[%s7722_s25 + $0x74] sm:$0x1] }
  0xa9   : > { %6945 = vmatprep.subr.bf16.mxu1 %v7229_v48  ;;  %6990 = vmatpush3.bf16.msra.mxu0 %v7226_v37  ;;  %v2727_v13 = vsel %vm7403_vm4, %v2722_v0, %v2726_v54  ;;  %v2760_v21 = vrot.slane %v2758_v9, 5  ;;  %v2755_v24 = vor.u32 %v2754_v15, %v2750_v14  ;;  %v2772_v26 = vshll.u32 %v2568_v4, 16  ;;  %v7227_v0 = vld [vmem:[%s7722_s25 + $0x78] sm:$0xff]  }
  0xaa   : > { %6911 = vmatprep.mubr.bf16.mxu0 %v6265_v63  ;;  %6991 = vmatprep.subr.bf16.mxu0 %v7230_v52  ;;  %v2737_v19 = vsel %vm7403_vm4, %v2732_v7, %v2736_v36  ;;  %v2765_v25 = vrot.slane %v2763_v16, 4  ;;  %v2746_v28 = vrot.slane %v2745_v20, 4  ;;  %v2768_v29 = vrot.slane %v2766_v22, 5  ;;  %v7228_v20 = vld [vmem:[%s7722_s25 + $0x84] sm:$0xff]  }
  0xab   : > { %v6266_v23 = vcombine.low %v2727_v13, %v2737_v19  ;;  %v2776_v30 = vshrl.u32 %v2568_v4, 16  ;;  %v2782_v31 = vshll.u32 %v2569_v10, 16  ;;  %v2756_v33 = vrot.slane %v2755_v24, 4 }
  0xac   : > { %6946 = vmatpush3.bf16.msra.mxu1 %v7229_v48  ;;  %v2774_v34 = vrot.slane %v2772_v26, 5  ;;  %v2751_v37 = vsel %vm7403_vm4, %v2746_v28, %v2750_v14  ;;  %v2769_v38 = vor.u32 %v2768_v29, %v2765_v25  ;;  %v2787_v48 = vshrl.u32 %v2570_v41, 16  ;;  %v7867_v14 = vld [vmem:[%s9104_s3 + $0x238] sm:$0xff]   ;;  %v2578_v26 = vld [vmem:[%s7722_s25 + $0x80] sm:$0x1] }
  0xad   : > { %6947 = vmatprep.subr.bf16.mxu1 %v7233_v5  ;;  %6992 = vmatpush3.bf16.msra.mxu0 %v7230_v52  ;;  %v2778_v39 = vrot.slane %v2776_v30, 4  ;;  %v2784_v40 = vrot.slane %v2782_v31, 5  ;;  %v2761_v44 = vsel %vm7403_vm4, %v2756_v33, %v2760_v21  ;;  %v2790_v49 = vshll.u32 %v2570_v41, 16  ;;  %v7240_v52 = vld [vmem:[%s9104_s3 + $0x180] sm:$0xff]   ;;  %v2576_v21 = vld [vmem:[%s7722_s25 + $0x78] sm:$0xf] }
  0xae   : > { %6912 = vmatmul.mubr.bf16.gmra.mxu0 %v6266_v23  ;;  %v2796_v50 = vshll.u32 %v2571_v43, 16  ;;  %6993 = vmatprep.subr.bf16.mxu0 %v7234_v17  ;;  %v6267_v53 = vcombine.low %v2751_v37, %v2761_v44  ;;  %v2770_v54 = vrot.slane %v2769_v38, 4  ;;  %v2800_v36 = vshrl.u32 %v2571_v43, 16  ;;  %v2577_v25 = vld [vmem:[%s7722_s25 + $0x7c] sm:$0xf] }
  0xaf   : > { %6868 = vmatmul.mubr.bf16.gmra.mxu1 %v7220_v1  ;;  %v2779_v55 = vor.u32 %v2778_v39, %v2774_v34  ;;  %v2789_v57 = vrot.slane %v2787_v48, 4  ;;  %v2792_v32 = vrot.slane %v2790_v49, 5  ;;  %v2806_v58 = vshll.u32 %v2572_v47, 16  ;;  %v2579_v33 = vld [vmem:[%s7722_s25 + $0x84] sm:$0xf] }
  0xb0   : > { %6871 = vmatprep.mubr.bf16.mxu1 %v7223_v12  ;;  %6948 = vmatpush3.bf16.msra.mxu1 %v7233_v5  ;;  %v2798_v42 = vrot.slane %v2796_v50, 5  ;;  %v2775_v60 = vsel %vm7403_vm4, %v2770_v54, %v2774_v34  ;;  %v2802_v62 = vrot.slane %v2800_v36, 4  ;;  %v2811_v63 = vshrl.u32 %v2573_v56, 16  ;;  %v7231_v34 = vld [vmem:[%s7722_s25 + $0x90] sm:$0xff]   ;;  %v2580_v41 = vld [vmem:[%s7722_s25 + $0x88] sm:$0xf] }
  0xb1   : > { %6949 = vmatprep.subr.bf16.mxu1 %v7237_v18  ;;  %6994 = vmatpush3.bf16.msra.mxu0 %v7234_v17  ;;  %v2780_v61 = vrot.slane %v2779_v55, 4  ;;  %v2793_v1 = vor.u32 %v2792_v32, %v2789_v57  ;;  %v2808_v2 = vrot.slane %v2806_v58, 5  ;;  %v2814_v3 = vshll.u32 %v2573_v56, 16  ;;  %v2581_v47 = vld [vmem:[%s7722_s25 + $0x8c] sm:$0x1] }
  0xb2   : > { %6995 = vmatprep.subr.bf16.mxu0 %v7238_v27  ;;  %6915 = vmatprep.mubr.bf16.mxu0 %v6267_v53  ;;  %v2820_v4 = vshll.u32 %v2574_v46, 16  ;;  %v2803_v7 = vor.u32 %v2802_v62, %v2798_v42  ;;  %v2813_v11 = vrot.slane %v2811_v63, 4  ;;  %v2824_v8 = vshrl.u32 %v2574_v46, 16 }
  0xb3   : > { %v2785_v5 = vsel %vm7403_vm4, %v2780_v61, %v2784_v40  ;;  %v2794_v10 = vrot.slane %v2793_v1, 4  ;;  %v2816_v12 = vrot.slane %v2814_v3, 5  ;;  %v2830_v17 = vshll.u32 %v2575_v59, 16  ;;  %v7235_v1 = vld [vmem:[%s7722_s25 + $0xa8] sm:$0xff]   ;;  %v2582_v3 = vld [vmem:[%s7722_s25 + $0x90] sm:$0xf] }
  0xb4   : > { %6950 = vmatpush3.bf16.msra.mxu1 %v7237_v18  ;;  %v6268_v9 = vcombine.low %v2775_v60, %v2785_v5  ;;  %v2822_v13 = vrot.slane %v2820_v4, 5  ;;  %v2804_v15 = vrot.slane %v2803_v7, 4  ;;  %v2826_v16 = vrot.slane %v2824_v8, 4  ;;  %v7232_v60 = vld [vmem:[%s7722_s25 + $0x9c] sm:$0xff]   ;;  %v2583_v4 = vld [vmem:[%s7722_s25 + $0x94] sm:$0xf] }
  0xb5   : > { %7031 = vmatprep.subr.bf16.mxu1 %v7842_v35  ;;  %6996 = vmatpush3.bf16.msra.mxu0 %v7238_v27  ;;  %v2799_v18 = vsel %vm7403_vm4, %v2794_v10, %v2798_v42  ;;  %v2817_v19 = vor.u32 %v2816_v12, %v2813_v11  ;;  %v2832_v24 = vrot.slane %v2830_v17, 5  ;;  %v2835_v27 = vshrl.u32 %v2576_v21, 16  ;;  %v2584_v8 = vld [vmem:[%s7722_s25 + $0x98] sm:$0x1]  ;;  %v2585_v10 = vld [vmem:[%s7722_s25 + $0x9c] sm:$0xf] }
  0xb6   : > { %6997 = vmatprep.subr.bf16.mxu0 %v7240_v52  ;;  %6916 = vmatmul.mubr.bf16.gmra.mxu0 %v6268_v9  ;;  %v2809_v22 = vsel %vm7403_vm4, %v2804_v15, %v2808_v2  ;;  %v2827_v23 = vor.u32 %v2826_v16, %v2822_v13  ;;  %v2838_v30 = vshll.u32 %v2576_v21, 16  ;;  %v2844_v31 = vshll.u32 %v2577_v25, 16  ;;  %v2586_v17 = vld [vmem:[%s7722_s25 + $0xa0] sm:$0xf] }
  0xb7   : > { %6872 = vmatmul.mubr.bf16.gmra.mxu1 %v7224_v45  ;;  %v6269_v28 = vcombine.low %v2799_v18, %v2809_v22  ;;  %v2818_v29 = vrot.slane %v2817_v19, 4  ;;  %v2837_v38 = vrot.slane %v2835_v27, 4  ;;  %v2848_v39 = vshrl.u32 %v2577_v25, 16  ;;  %v2587_v22 = vld [vmem:[%s7722_s25 + $0xa4] sm:$0x1] }
  0xb8   : > { %6875 = vmatprep.mubr.bf16.mxu1 %v7227_v0  ;;  %v2828_v37 = vrot.slane %v2827_v23, 4  ;;  %v2854_v40 = vshll.u32 %v2578_v26, 16  ;;  %v2840_v44 = vrot.slane %v2838_v30, 5  ;;  %v2846_v45 = vrot.slane %v2844_v31, 5 }
  0xb9   : > { %6998 = vmatpush3.bf16.msra.mxu0 %v7240_v52  ;;  %6919 = vmatprep.mubr.bf16.mxu0 %v6269_v28  ;;  %v2823_v43 = vsel %vm7403_vm4, %v2818_v29, %v2822_v13  ;;  %v2859_v48 = vshrl.u32 %v2579_v33, 16  ;;  %v2850_v50 = vrot.slane %v2848_v39, 4  ;;  %v2862_v53 = vshll.u32 %v2579_v33, 16 }
  0xba   : > { %7079 = vmatprep.subr.bf16.mxu0 %v7867_v14  ;;  %v2833_v49 = vsel %vm7403_vm4, %v2828_v37, %v2832_v24  ;;  %v2856_v52 = vrot.slane %v2854_v40, 5  ;;  %v2841_v55 = vor.u32 %v2840_v44, %v2837_v38  ;;  %v2868_v56 = vshll.u32 %v2580_v41, 16  ;;  %v7236_v38 = vld [vmem:[%s7722_s25 + $0xb4] sm:$0xff]  }
  0xbb   : > { %v6270_v54 = vcombine.low %v2823_v43, %v2833_v49  ;;  %v2861_v36 = vrot.slane %v2859_v48, 4  ;;  %v2851_v46 = vor.u32 %v2850_v50, %v2846_v45  ;;  %v2864_v57 = vrot.slane %v2862_v53, 5  ;;  %v2588_v50 = vld [vmem:[%s7722_s25 + $0xa8] sm:$0xf] }
  0xbc   : > { %v2872_v32 = vshrl.u32 %v2580_v41, 16  ;;  %v2878_v42 = vshll.u32 %v2581_v47, 16  ;;  %v2842_v58 = vrot.slane %v2841_v55, 4  ;;  %v2870_v59 = vrot.slane %v2868_v56, 5  ;;  %v2590_v55 = vld [vmem:[%s7722_s25 + $0xb0] sm:$0x1] }
  0xbd   : > { %v2852_v61 = vrot.slane %v2851_v46, 4  ;;  %v2865_v62 = vor.u32 %v2864_v57, %v2861_v36  ;;  %v2883_v9 = vshrl.u32 %v2582_v3, 16  ;;  %v2886_v13 = vshll.u32 %v2582_v3, 16 }
  0xbe   : > { %6920 = vmatmul.mubr.bf16.gmra.mxu0 %v6270_v54  ;;  %v2874_v63 = vrot.slane %v2872_v32, 4  ;;  %v2880_v0 = vrot.slane %v2878_v42, 5  ;;  %v2847_v2 = vsel %vm7403_vm4, %v2842_v58, %v2846_v45  ;;  %v2892_v15 = vshll.u32 %v2583_v4, 16  ;;  %v2589_v54 = vld [vmem:[%s7722_s25 + $0xac] sm:$0xf] }
  0xbf   : > { %6876 = vmatmul.mubr.bf16.gmra.mxu1 %v7228_v20  ;;  %v2857_v5 = vsel %vm7403_vm4, %v2852_v61, %v2856_v52  ;;  %v2866_v7 = vrot.slane %v2865_v62, 4  ;;  %v2896_v16 = vshrl.u32 %v2583_v4, 16  ;;  %v2885_v20 = vrot.slane %v2883_v9, 4  ;;  %v2591_v58 = vld [vmem:[%s7722_s25 + $0xb4] sm:$0xf] }
  0xc0   : > { %6879 = vmatprep.mubr.bf16.mxu1 %v7231_v34  ;;  %v2875_v11 = vor.u32 %v2874_v63, %v2870_v59  ;;  %v6271_v12 = vcombine.low %v2847_v2, %v2857_v5  ;;  %v2902_v21 = vshll.u32 %v2584_v8, 16  ;;  %v2888_v23 = vrot.slane %v2886_v13, 5  ;;  %v3364_v5 = vld [vmem:[%s7722_s25] sm:$0xe] }
  0xc1   : > { %v2871_v18 = vsel %vm7403_vm4, %v2866_v7, %v2870_v59  ;;  %v2894_v24 = vrot.slane %v2892_v15, 5  ;;  %v2898_v25 = vrot.slane %v2896_v16, 4  ;;  %v2907_v26 = vshrl.u32 %v2585_v10, 16  ;;  %v2592_v59 = vld [vmem:[%s7722_s25 + $0xb8] sm:$0xf] }
  0xc2   : > { %v2876_v19 = vrot.slane %v2875_v11, 4  ;;  %6923 = vmatprep.mubr.bf16.mxu0 %v6271_v12  ;;  %v2904_v28 = vrot.slane %v2902_v21, 5  ;;  %v2910_v29 = vshll.u32 %v2585_v10, 16  ;;  %v2916_v30 = vshll.u32 %v2586_v17, 16  ;;  %v3365_v10 = vld [vmem:[%s7722_s25 + $0x4] sm:$0xf] }
  0xc3   : > { %v2889_v33 = vor.u32 %v2888_v23, %v2885_v20  ;;  %v2899_v34 = vor.u32 %v2898_v25, %v2894_v24  ;;  %v2909_v37 = vrot.slane %v2907_v26, 4  ;;  %v2920_v41 = vshrl.u32 %v2586_v17, 16  ;;  %v3366_v17 = vld [vmem:[%s7722_s25 + $0x8] sm:$0x1]  ;;  %v3368_v23 = vld [vmem:[%s7722_s25 + $0x10] sm:$0xf] }
  0xc4   : > { %v2881_v27 = vsel %vm7403_vm4, %v2876_v19, %v2880_v0  ;;  %v2912_v39 = vrot.slane %v2910_v29, 5  ;;  %v2918_v40 = vrot.slane %v2916_v30, 5  ;;  %v2926_v43 = vshll.u32 %v2587_v22, 16  ;;  %v2593_v0 = vld [vmem:[%s7722_s25 + $0xbc] sm:$0x1] }
  0xc5   : > { %v6272_v31 = vcombine.low %v2871_v18, %v2881_v27  ;;  %v2890_v44 = vrot.slane %v2889_v33, 4  ;;  %v2900_v45 = vrot.slane %v2899_v34, 4  ;;  %v2922_v48 = vrot.slane %v2920_v41, 4  ;;  %v3367_v22 = vld [vmem:[%s7722_s25 + $0xc] sm:$0xe] }
  0xc6   : > { %v2913_v47 = vor.u32 %v2912_v39, %v2909_v37  ;;  %v2928_v49 = vrot.slane %v2926_v43, 5  ;;  %v2931_v36 = vshrl.u32 %v2588_v50, 16  ;;  %v2934_v56 = vshll.u32 %v2588_v50, 16 }
  0xc7   : > { %6880 = vmatmul.mubr.bf16.gmra.mxu1 %v7232_v60  ;;  %6924 = vmatmul.mubr.bf16.gmra.mxu0 %v6272_v31  ;;  %v2895_v52 = vsel %vm7403_vm4, %v2890_v44, %v2894_v24  ;;  %v2905_v53 = vsel %vm7403_vm4, %v2900_v45, %v2904_v28  ;;  %v2923_v32 = vor.u32 %v2922_v48, %v2918_v40  ;;  %v2940_v42 = vshll.u32 %v2589_v54, 16  ;;  %v3369_v28 = vld [vmem:[%s7722_s25 + $0x14] sm:$0x1] }
  0xc8   : > { %6883 = vmatprep.mubr.bf16.mxu1 %v7235_v1  ;;  %v6273_v46 = vcombine.low %v2895_v52, %v2905_v53  ;;  %v2914_v57 = vrot.slane %v2913_v47, 4  ;;  %v2933_v60 = vrot.slane %v2931_v36, 4  ;;  %v2936_v61 = vrot.slane %v2934_v56, 5  ;;  %v3370_v53 = vld [vmem:[%s7722_s25 + $0x18] sm:$0xe] }
  0xc9   : > { %v2944_v62 = vshrl.u32 %v2589_v54, 16  ;;  %v2950_v63 = vshll.u32 %v2590_v55, 16  ;;  %v2924_v2 = vrot.slane %v2923_v32, 4  ;;  %v2942_v3 = vrot.slane %v2940_v42, 5  ;;  %v3372_v32 = vld [vmem:[%s7722_s25 + $0x20] sm:$0x1] }
  0xca   : > { %6927 = vmatprep.mubr.bf16.mxu0 %v6273_v46  ;;  %v2919_v1 = vsel %vm7403_vm4, %v2914_v57, %v2918_v40  ;;  %v2955_v4 = vshrl.u32 %v2591_v58, 16  ;;  %v2937_v7 = vor.u32 %v2936_v61, %v2933_v60  ;;  %v2958_v9 = vshll.u32 %v2591_v58, 16  ;;  %v7241_v46 = vld [vmem:[%s7930_s16] sm:$0xff]   ;;  %v3371_v57 = vld [vmem:[%s7722_s25 + $0x1c] sm:$0xf] }
  0xcb   : > { %v2946_v11 = vrot.slane %v2944_v62, 4  ;;  %v2952_v8 = vrot.slane %v2950_v63, 5  ;;  %v2929_v12 = vsel %vm7403_vm4, %v2924_v2, %v2928_v49  ;;  %v2964_v15 = vshll.u32 %v2592_v59, 16  ;;  %v3373_v61 = vld [vmem:[%s7722_s25 + $0x24] sm:$0xe]  ;;  %v7243_v2 = vld [vmem:[%s9104_s3 + $0x1f0] sm:$0xff]  }
  0xcc   : > { %v2957_v13 = vrot.slane %v2955_v4, 4  ;;  %v2968_v16 = vshrl.u32 %v2592_v59, 16  ;;  %v6274_v18 = vcombine.low %v2919_v1, %v2929_v12  ;;  %v2938_v19 = vrot.slane %v2937_v7, 4  ;;  %v3374_v63 = vld [vmem:[%s7722_s25 + $0x28] sm:$0xf] }
  0xcd   : > { %v2947_v20 = vor.u32 %v2946_v11, %v2942_v3  ;;  %v2960_v21 = vrot.slane %v2958_v9, 5  ;;  %v2966_v24 = vrot.slane %v2964_v15, 5  ;;  %v2974_v26 = vshll.u32 %v2593_v0, 16  ;;  %v3375_v0 = vld [vmem:[%s7722_s25 + $0x2c] sm:$0x1] }
  0xce   : > { %v2970_v25 = vrot.slane %v2968_v16, 4  ;;  %v6285_v27 = vrot.slane %v3364_v5, 9  ;;  %v2943_v29 = vsel %vm7403_vm4, %v2938_v19, %v2942_v3  ;;  %v3462_v33 = vrot.slane %v3365_v10, 5  ;;  %v7247_v12 = vld [vmem:[%s9104_s3 + $0x1e8] sm:$0xff]   ;;  %v7245_v16 = vld [vmem:[%s7930_s16 + $0x18] sm:$0xff]  }
  0xcf   : > { %6884 = vmatmul.mubr.bf16.gmra.mxu1 %v7236_v38  ;;  %6928 = vmatmul.mubr.bf16.gmra.mxu0 %v6274_v18  ;;  %v2948_v30 = vrot.slane %v2947_v20, 4  ;;  %v2961_v31 = vor.u32 %v2960_v21, %v2957_v13  ;;  %v2976_v37 = vrot.slane %v2974_v26, 5  ;;  %v3465_v38 = vrot.slane %v3366_v17, 5  ;;  %v3376_v17 = vld [vmem:[%s7722_s25 + $0x30] sm:$0xe] }
  0xd0   : > { %v2971_v34 = vor.u32 %v2970_v25, %v2966_v24  ;;  %v6286_v39 = vrot.slane %v3367_v22, 9  ;;  %v3463_v43 = vsel %vm7423_vm5, %v6285_v27, %v3462_v33  ;;  %v3464_v44 = vrot.slane %v3462_v33, 4  ;;  %v3377_v19 = vld [vmem:[%s7722_s25 + $0x34] sm:$0xf]  ;;  %v3378_v20 = vld [vmem:[%s7722_s25 + $0x38] sm:$0x1] }
  0xd1   : > { %v2953_v40 = vsel %vm7403_vm4, %v2948_v30, %v2952_v8  ;;  %v2962_v41 = vrot.slane %v2961_v31, 4  ;;  %v3469_v48 = vrot.slane %v3368_v23, 5  ;;  %v3472_v49 = vrot.slane %v3369_v28, 5  ;;  %v7242_v8 = vld [vmem:[%s7930_s16 + $0xc] sm:$0xff]   ;;  %v3380_v25 = vld [vmem:[%s7722_s25 + $0x40] sm:$0xf] }
  0xd2   : > { %v6275_v45 = vcombine.low %v2943_v29, %v2953_v40  ;;  %v2972_v47 = vrot.slane %v2971_v34, 4  ;;  %v3466_v52 = vsel %vm7423_vm5, %v3464_v44, %v3465_v38  ;;  %v6287_v58 = vrot.slane %v3370_v53, 9  ;;  %v7248_v22 = vld [vmem:[%s9104_s3 + $0x230] sm:$0xff]   ;;  %v3381_v27 = vld [vmem:[%s7722_s25 + $0x44] sm:$0x1]  ;;  %v7252_v38 = vld [vmem:[%s9104_s3 + $0x228] sm:$0xff]  }
  0xd3   : > { %v2967_v50 = vsel %vm7403_vm4, %v2962_v41, %v2966_v24  ;;  %v6317_v55 = vcombine.low %v3463_v43, %v3466_v52  ;;  %v3470_v36 = vsel %vm7423_vm5, %v6286_v39, %v3469_v48  ;;  %v3471_v56 = vrot.slane %v3469_v48, 4  ;;  %v3379_v24 = vld [vmem:[%s7722_s25 + $0x3c] sm:$0xe]  ;;  %v7251_v30 = vld [vmem:[%s9104_s3 + $0x1e0] sm:$0xff]   ;;  %v3383_v48 = vld [vmem:[%s7722_s25 + $0x4c] sm:$0xf] }
  0xd4   : > { %6931 = vmatprep.mubr.bf16.mxu0 %v6275_v45  ;;  %v2977_v54 = vsel %vm7403_vm4, %v2972_v47, %v2976_v37  ;;  %v3476_v59 = vrot.slane %v3371_v57, 5  ;;  %v3479_v60 = vrot.slane %v3372_v32, 5  ;;  %v6288_v1 = vrot.slane %v3373_v61, 9  ;;  %v7246_v43 = vld [vmem:[%s7930_s16 + $0x24] sm:$0xff]   ;;  %v7249_v53 = vld [vmem:[%s7930_s16 + $0x30] sm:$0xff]   ;;  %v7255_v32 = vld [vmem:[%s9104_s3 + $0x1d8] sm:$0xff]  }
  0xd5   : > { %v6276_v42 = vcombine.low %v2967_v50, %v2977_v54  ;;  %6951 = vmatprep.mubr.bf16.mxu1 %v6317_v55  ;;  %v3473_v62 = vsel %vm7423_vm5, %v3471_v56, %v3472_v49  ;;  %v3483_v7 = vrot.slane %v3374_v63, 5  ;;  %v3486_v11 = vrot.slane %v3375_v0, 5  ;;  %v3382_v47 = vld [vmem:[%s7722_s25 + $0x48] sm:$0xe]  ;;  %v3385_v56 = vld [vmem:[%s7722_s25 + $0x54] sm:$0xe] }
  0xd6   : > { %v6318_v3 = vcombine.low %v3470_v36, %v3473_v62  ;;  %v3477_v4 = vsel %vm7423_vm5, %v6287_v58, %v3476_v59  ;;  %v3478_v5 = vrot.slane %v3476_v59, 4  ;;  %v6289_v21 = vrot.slane %v3376_v17, 9  ;;  %v3387_v57 = vld [vmem:[%s7722_s25 + $0x5c] sm:$0x1]  ;;  %v7256_v63 = vld [vmem:[%s9104_s3 + $0x220] sm:$0xff]  }
  0xd7   : > { %6932 = vmatmul.mubr.bf16.gmra.mxu0 %v6276_v42  ;;  %v3485_v10 = vrot.slane %v3483_v7, 4  ;;  %v3484_v15 = vsel %vm7423_vm5, %v6288_v1, %v3483_v7  ;;  %v3493_v23 = vrot.slane %v3378_v20, 5  ;;  %v6290_v28 = vrot.slane %v3379_v24, 9  ;;  %v7250_v17 = vld [vmem:[%s7930_s16 + $0x3c] sm:$0xff]   ;;  %v3391_v20 = vld [vmem:[%s7722_s25 + $0x6c] sm:$0xe] }
  0xd8   : > { %6999 = vmatprep.mubr.bf16.mxu0 %v7241_v46  ;;  %6952 = vmatmul.mubr.bf16.vlgmr.msra.gmra.mxu1 %v6318_v3  ;;  %v3480_v9 = vsel %vm7423_vm5, %v3478_v5, %v3479_v60  ;;  %v3497_v29 = vrot.slane %v3380_v25, 5  ;;  %v3500_v34 = vrot.slane %v3381_v27, 5  ;;  %v6291_v54 = vrot.slane %v3382_v47, 9  ;;  %v3386_v46 = vld [vmem:[%s7722_s25 + $0x58] sm:$0xf]  ;;  %v7253_v25 = vld [vmem:[%s7930_s16 + $0x48] sm:$0xff]  }
  0xd9   : > { %7032 = vmatpush3.bf16.msra.mxu1 %v7842_v35  ;;  %v6319_v13 = vcombine.low %v3477_v4, %v3480_v9  ;;  %v3487_v18 = vsel %vm7423_vm5, %v3485_v10, %v3486_v11  ;;  %v3490_v35 = vrot.slane %v3377_v19, 5  ;;  %v3504_v55 = vrot.slane %v3383_v48, 5  ;;  %v3394_v48 = vld [vmem:[%s7722_s25 + $0x78] sm:$0xe] }
  0xda   : > { %7033 = vmatprep.subr.bf16.mxu1 %v7243_v2  ;;  %v6320_v26 = vcombine.low %v3484_v15, %v3487_v18  ;;  %v3499_v37 = vrot.slane %v3497_v29, 4  ;;  %v3498_v45 = vsel %vm7423_vm5, %v6290_v28, %v3497_v29  ;;  %v6292_v61 = vrot.slane %v3385_v56, 9  ;;  %v7263_v28 = vld [vmem:[%s9104_s3 + $0x1c8] sm:$0xff]   ;;  %v7267_v56 = vld [vmem:[%s9104_s3 + $0x1c0] sm:$0xff]  }
  0xdb   : > { %6955 = vmatprep.mubr.bf16.mxu1 %v6319_v13  ;;  %v3491_v31 = vsel %vm7423_vm5, %v6289_v21, %v3490_v35  ;;  %v3492_v33 = vrot.slane %v3490_v35, 4  ;;  %v3505_v59 = vsel %vm7423_vm5, %v6291_v54, %v3504_v55  ;;  %v3506_v60 = vrot.slane %v3504_v55, 4  ;;  %v3390_v13 = vld [vmem:[%s7722_s25 + $0x68] sm:$0x1]  ;;  %v3392_v21 = vld [vmem:[%s7722_s25 + $0x70] sm:$0xf] }
  0xdc   : > { %v3501_v52 = vsel %vm7423_vm5, %v3499_v37, %v3500_v34  ;;  %v3511_v62 = vrot.slane %v3386_v46, 5  ;;  %v3514_v7 = vrot.slane %v3387_v57, 5  ;;  %v3521_v19 = vrot.slane %v3390_v13, 5  ;;  %v7264_v37 = vld [vmem:[%s9104_s3 + $0x210] sm:$0xff]   ;;  %v3397_v46 = vld [vmem:[%s7722_s25 + $0x84] sm:$0xe] }
  0xdd   : > { %7034 = vmatpush3.bf16.msra.mxu1 %v7243_v2  ;;  %v3494_v41 = vsel %vm7423_vm5, %v3492_v33, %v3493_v23  ;;  %v6322_v0 = vcombine.low %v3498_v45, %v3501_v52  ;;  %v7259_v2 = vld [vmem:[%s9104_s3 + $0x1d0] sm:$0xff]   ;;  %v3525_v27 = vrot.slane %v3392_v21, 5  ;;  %v6295_v52 = vrot.slane %v3394_v48, 9  ;;  %v3398_v57 = vld [vmem:[%s7722_s25 + $0x88] sm:$0xf] }
  0xde   : > { %7035 = vmatprep.subr.bf16.mxu1 %v7247_v12  ;;  %v6321_v44 = vcombine.low %v3491_v31, %v3494_v41  ;;  %v3513_v5 = vrot.slane %v3511_v62, 4  ;;  %v3512_v23 = vsel %vm7423_vm5, %v6292_v61, %v3511_v62  ;;  %v6294_v31 = vrot.slane %v3391_v20, 9  ;;  %v3400_v13 = vld [vmem:[%s7722_s25 + $0x90] sm:$0xe] }
  0xdf   : > { %7000 = vmatmul.mubr.bf16.vlgmr.msra.gmra.mxu0 %v7242_v8  ;;  %v3388_v8 = vld [vmem:[%s7722_s25 + $0x60] sm:$0xe] }
  0xe0   : > { %7080 = vmatpush3.bf16.msra.mxu0 %v7867_v14  ;;  %7003 = vmatprep.mubr.bf16.mxu0 %v7245_v16  ;;  %v3384_v14 = vld [vmem:[%s7722_s25 + $0x50] sm:$0x1]  ;;  %v6293_v15 = vrot.slane %v3388_v8, 9  ;;  %v7260_v16 = vld [vmem:[%s9104_s3 + $0x218] sm:$0xff]   ;;  %v3515_v24 = vsel %vm7423_vm5, %v3513_v5, %v3514_v7  ;;  %v6296_v7 = vrot.slane %v3397_v46, 9 }
  0xe1   : > { %6956 = vmatmul.mubr.bf16.gmra.mxu1 %v6320_v26  ;;  %7081 = vmatprep.subr.bf16.mxu0 %v7248_v22  ;;  %v3507_v36 = vrot.slane %v3384_v14, 5  ;;  %v3393_v26 = vld [vmem:[%s7722_s25 + $0x74] sm:$0x1]  ;;  %v6324_v41 = vcombine.low %v3512_v23, %v3515_v24  ;;  %v3395_v14 = vld [vmem:[%s7722_s25 + $0x7c] sm:$0xf] }
  0xe2   : > { %7036 = vmatpush3.bf16.msra.mxu1 %v7247_v12  ;;  %6959 = vmatprep.mubr.bf16.mxu1 %v6321_v44  ;;  %v3389_v12 = vld [vmem:[%s7722_s25 + $0x64] sm:$0xf]  ;;  %v7261_v46 = vld [vmem:[%s7930_s16 + $0x78] sm:$0xff]  }
  0xe3   : > { %7037 = vmatprep.subr.bf16.mxu1 %v7251_v30  ;;  %v3508_v4 = vsel %vm7423_vm5, %v3506_v60, %v3507_v36  ;;  %v3518_v18 = vrot.slane %v3389_v12, 5  ;;  %v3539_v60 = vrot.slane %v3398_v57, 5  ;;  %v7271_v12 = vld [vmem:[%s9104_s3 + $0x200] sm:$0xff]  }
  0xe4   : > { %7082 = vmatpush3.bf16.msra.mxu0 %v7248_v22  ;;  %v6323_v11 = vcombine.low %v3505_v59, %v3508_v4 }
  0xe5   : > { %7083 = vmatprep.subr.bf16.mxu0 %v7252_v38  ;;  %v3519_v29 = vsel %vm7423_vm5, %v6293_v15, %v3518_v18 }
  0xe6   : > { %7038 = vmatpush3.bf16.msra.mxu1 %v7251_v30  ;;  %v3520_v30 = vrot.slane %v3518_v18, 4  ;;  %v3402_v18 = vld [vmem:[%s7722_s25 + $0x98] sm:$0x1] }
  0xe7   : > { %7004 = vmatmul.mubr.bf16.gmra.mxu0 %v7246_v43  ;;  %7039 = vmatprep.subr.bf16.mxu1 %v7255_v32  ;;  %v3549_v24 = vrot.slane %v3402_v18, 5 }
  0xe8   : > { %7007 = vmatprep.mubr.bf16.mxu0 %v7249_v53  ;;  %7084 = vmatpush3.bf16.msra.mxu0 %v7252_v38  ;;  %v3527_v38 = vrot.slane %v3525_v27, 4  ;;  %v3522_v43 = vsel %vm7423_vm5, %v3520_v30, %v3521_v19  ;;  %v3532_v53 = vrot.slane %v3395_v14, 5  ;;  %v6297_v19 = vrot.slane %v3400_v13, 9 }
  0xe9   : > { %6960 = vmatmul.mubr.bf16.gmra.mxu1 %v6322_v0  ;;  %7085 = vmatprep.subr.bf16.mxu0 %v7256_v63  ;;  %v6325_v47 = vcombine.low %v3519_v29, %v3522_v43  ;;  %v3526_v0 = vsel %vm7423_vm5, %v6294_v31, %v3525_v27  ;;  %v3405_v27 = vld [vmem:[%s7722_s25 + $0xa4] sm:$0x1] }
  0xea   : > { %6963 = vmatprep.mubr.bf16.mxu1 %v6323_v11  ;;  %7040 = vmatpush3.bf16.msra.mxu1 %v7255_v32  ;;  %v3399_v32 = vld [vmem:[%s7722_s25 + $0x8c] sm:$0x1]  ;;  %v3534_v59 = vrot.slane %v3532_v53, 4  ;;  %v3533_v4 = vsel %vm7423_vm5, %v6295_v52, %v3532_v53  ;;  %v3556_v43 = vrot.slane %v3405_v27, 5  ;;  %v3408_v53 = vld [vmem:[%s7722_s25 + $0xb0] sm:$0x1] }
  0xeb   : > { %7041 = vmatprep.subr.bf16.mxu1 %v7259_v2  ;;  %v3542_v11 = vrot.slane %v3399_v32, 5  ;;  %v3407_v52 = vld [vmem:[%s7722_s25 + $0xac] sm:$0xf] }
  0xec   : > { %v6729_v39 = vpop.f32.mrf.mxu1  ;;  %v8005_v40 = vpop.f32.mrf.mxu0  ;;  %7086 = vmatpush3.bf16.msra.mxu0 %v7256_v63  ;;  %v7268_v63 = vld [vmem:[%s9104_s3 + $0x208] sm:$0xff]   ;;  %v3560_v32 = vrot.slane %v3407_v52, 5 }
  0xed   : > { %664 = vst [vmem:[%s7998_s6 + $0x90] sm:$0xff] %v6729_v39  ;;  %v3528_v39 = vrot.slane %v3393_v26, 5  ;;  %7087 = vmatprep.subr.bf16.mxu0 %v7260_v16  ;;  %v3404_v26 = vld [vmem:[%s7722_s25 + $0xa0] sm:$0xf] }
  0xee   : > { %v583_v49 = vpop.f32.mrf.mxu1  ;;  %v8017_v50 = vpop.f32.mrf.mxu0  ;;  %7042 = vmatpush3.bf16.msra.mxu1 %v7259_v2  ;;  %v7257_v2 = vld [vmem:[%s7930_s16 + $0x60] sm:$0xff]  }
  0xef   : > { %662 = vst [vmem:[%s7998_s6 + $0x80] sm:$0xff] %v583_v49  ;;  %v3396_v49 = vld [vmem:[%s7722_s25 + $0x80] sm:$0x1]  ;;  %7008 = vmatmul.mubr.bf16.gmra.mxu0 %v7250_v17  ;;  %7043 = vmatprep.subr.bf16.mxu1 %v7263_v28  ;;  %v3401_v17 = vld [vmem:[%s7722_s25 + $0x94] sm:$0xf] }
  0xf0   : > { %v6730_v42 = vpop.f32.mrf.mxu1  ;;  %v8029_v58 = vpop.f32.mrf.mxu0  ;;  %v3535_v54 = vrot.slane %v3396_v49, 5  ;;  %7011 = vmatprep.mubr.bf16.mxu0 %v7253_v25  ;;  %7088 = vmatpush3.bf16.msra.mxu0 %v7260_v16  ;;  %v3541_v16 = vrot.slane %v3539_v60, 4  ;;  %v3546_v23 = vrot.slane %v3401_v17, 5  ;;  %v3403_v25 = vld [vmem:[%s7722_s25 + $0x9c] sm:$0xe] }
  0xf1   : > { %665 = vst [vmem:[%s7998_s6 + $0x98] sm:$0xff] %v6730_v42  ;;  %6964 = vmatmul.mubr.bf16.gmra.mxu1 %v6324_v41  ;;  %v7254_v42 = vld [vmem:[%s7930_s16 + $0x54] sm:$0xff]   ;;  %7089 = vmatprep.subr.bf16.mxu0 %v7264_v37  ;;  %v3406_v49 = vld [vmem:[%s7722_s25 + $0xa8] sm:$0xe] }
  0xf2   : > { %v586_v1 = vpop.f32.mrf.mxu1  ;;  %v8040_v3 = vpop.f32.mrf.mxu0  ;;  %6967 = vmatprep.mubr.bf16.mxu1 %v6325_v47  ;;  %7044 = vmatpush3.bf16.msra.mxu1 %v7263_v28  ;;  %v3536_v5 = vsel %vm7423_vm5, %v3534_v59, %v3535_v54  ;;  %v3553_v28 = vrot.slane %v3404_v26, 5  ;;  %v3548_v31 = vrot.slane %v3546_v23, 4  ;;  %v3547_v48 = vsel %vm7423_vm5, %v6297_v19, %v3546_v23  ;;  %v3409_v59 = vld [vmem:[%s7722_s25 + $0xb4] sm:$0xe] }
  0xf3   : > { %663 = vst [vmem:[%s7998_s6 + $0x88] sm:$0xff] %v586_v1  ;;  %v3529_v1 = vsel %vm7423_vm5, %v3527_v38, %v3528_v39  ;;  %7045 = vmatprep.subr.bf16.mxu1 %v7267_v56  ;;  %v3540_v38 = vsel %vm7423_vm5, %v6296_v7, %v3539_v60  ;;  %v3543_v39 = vsel %vm7423_vm5, %v3541_v16, %v3542_v11  ;;  %v6299_v57 = vrot.slane %v3406_v49, 9 }
  0xf4   : > { %v6733_v9 = vpop.f32.mrf.mxu1  ;;  %v8046_v10 = vpop.f32.mrf.mxu0  ;;  %7090 = vmatpush3.bf16.msra.mxu0 %v7264_v37  ;;  %v6326_v15 = vcombine.low %v3526_v0, %v3529_v1  ;;  %v7258_v37 = vld [vmem:[%s7930_s16 + $0x6c] sm:$0xff]   ;;  %v3555_v41 = vrot.slane %v3553_v28, 4  ;;  %v3550_v14 = vsel %vm7423_vm5, %v3548_v31, %v3549_v24  ;;  %v3410_v0 = vld [vmem:[%s7722_s25 + $0xb8] sm:$0xf]  ;;  %v3411_v1 = vld [vmem:[%s7722_s25 + $0xbc] sm:$0x1] }
  0xf5   : > { %668 = vst [vmem:[%s7998_s6 + $0xb0] sm:$0xff] %v6733_v9  ;;  %7091 = vmatprep.subr.bf16.mxu0 %v7268_v63  ;;  %v6329_v60 = vcombine.low %v3547_v48, %v3550_v14  ;;  %v8162_v7 = vsel %vm7423_vm5, %v6299_v57, %v3560_v32  ;;  %v3562_v11 = vrot.slane %v3560_v32, 4  ;;  %v4408_v24 = vld [vmem:[%s7930_s16] sm:$0xf]  ;;  %s6084_s25 = sshll.u32 %s9157_s19, 1 }
  0xf6   : > { %v599_v22 = vpop.f32.mrf.mxu1  ;;  %v8057_v35 = vpop.f32.mrf.mxu0  ;;  %7046 = vmatpush3.bf16.msra.mxu1 %v7267_v56  ;;  %v6328_v56 = vcombine.low %v3540_v38, %v3543_v39  ;;  %v4460_v31 = vshll.u32 %v4408_v24, 16  ;;  %s291_s8 = scalar_lea.vmem %s9106_s5, %s6084_s25 }
  0xf7   : > { %666 = vst [vmem:[%s7998_s6 + $0xa0] sm:$0xff] %v599_v22  ;;  %v6327_v22 = vcombine.low %v3533_v4, %v3536_v5  ;;  %7012 = vmatmul.mubr.bf16.gmra.mxu0 %v7254_v42  ;;  %v3563_v42 = vrot.slane %v3408_v53, 5  ;;  %v4412_v53 = vld [vmem:[%s7930_s16 + $0x10] sm:$0xf] }
  0xf8   : > { %v6734_v33 = vpop.f32.mrf.mxu1  ;;  %v8071_v34 = vpop.f32.mrf.mxu0  ;;  %7015 = vmatprep.mubr.bf16.mxu0 %v7257_v2  ;;  %7092 = vmatpush3.bf16.msra.mxu0 %v7268_v63  ;;  %v8154_v63 = vsel %vm7423_vm5, %v3555_v41, %v3556_v43  ;;  %v6300_v2 = vrot.slane %v3409_v59, 9  ;;  %v4462_v52 = vrot.slane %v4460_v31, 5 }
  0xf9   : > { %669 = vst [vmem:[%s7998_s6 + $0xb8] sm:$0xff] %v6734_v33  ;;  %v6298_v33 = vrot.slane %v3403_v25, 9  ;;  %6968 = vmatmul.mubr.bf16.gmra.mxu1 %v6326_v15  ;;  %7093 = vmatprep.subr.bf16.mxu0 %v7271_v12  ;;  %v8167_v16 = vsel %vm7423_vm5, %v3562_v11, %v3563_v42  ;;  %v5227_v11 = vld [vmem:[%s7930_s16 + $0x4] sm:$0xf] }
  0xfa   : > { %v602_v44 = vpop.f32.mrf.mxu1  ;;  %v8079_v45 = vpop.f32.mrf.mxu0  ;;  %6971 = vmatprep.mubr.bf16.mxu1 %v6327_v22  ;;  %v6331_v23 = vcombine.low %v8162_v7, %v8167_v16  ;;  %v5226_v7 = vld [vmem:[%s7930_s16] sm:$0xe] }
  0xfb   : > { %667 = vst [vmem:[%s7998_s6 + $0xa8] sm:$0xff] %v602_v44 }
  0xfc   : > { %v6737_v55 = vpop.f32.mrf.mxu1  ;;  %v8085_v36 = vpop.f32.mrf.mxu0  ;;  %7094 = vmatpush3.bf16.msra.mxu0 %v7271_v12  ;;  %v3570_v12 = vrot.slane %v3411_v1, 5  ;;  %v4494_v1 = vshrl.u32 %v4412_v53, 16 }
  0xfd   : > { %672 = vst [vmem:[%s7998_s6 + $0xd0] sm:$0xff] %v6737_v55 }
  0xfe   : > { %v615_v61 = vpop.f32.mrf.mxu1  ;;  %v8095_v62 = vpop.f32.mrf.mxu0 }
  0xff   : > { %670 = vst [vmem:[%s7998_s6 + $0xc0] sm:$0xff] %v615_v61  ;;  %v8150_v61 = vsel %vm7423_vm5, %v6298_v33, %v3553_v28  ;;  %7016 = vmatmul.mubr.bf16.gmra.mxu0 %v7258_v37  ;;  %v4410_v28 = vld [vmem:[%s7930_s16 + $0x8] sm:$0x1]  ;;  %v7265_v37 = vld [vmem:[%s7930_s16 + $0x90] sm:$0xff]  }
 0x100   : > { %v6738_v8 = vpop.f32.mrf.mxu1  ;;  %v8110_v9 = vpop.f32.mrf.mxu0  ;;  %7019 = vmatprep.mubr.bf16.mxu0 %v7261_v46  ;;  %v6330_v22 = vcombine.low %v8150_v61, %v8154_v63  ;;  %v4476_v43 = vshll.u32 %v4410_v28, 16  ;;  %v5324_v28 = vrot.slane %v5227_v11, 5 }
 0x101   : > { %673 = vst [vmem:[%s7998_s6 + $0xd8] sm:$0xff] %v6738_v8  ;;  %v3567_v8 = vrot.slane %v3410_v0, 5  ;;  %6972 = vmatmul.mubr.bf16.gmra.mxu1 %v6328_v56  ;;  %v4490_v0 = vshll.u32 %v4412_v53, 16 }
 0x102   : > { %v618_v20 = vpop.f32.mrf.mxu1  ;;  %v8119_v21 = vpop.f32.mrf.mxu0  ;;  %6975 = vmatprep.mubr.bf16.mxu1 %v6329_v60  ;;  %v4478_v32 = vrot.slane %v4476_v43, 5  ;;  %v5326_v53 = vrot.slane %v5324_v28, 4 }
 0x103   : > { %671 = vst [vmem:[%s7998_s6 + $0xc8] sm:$0xff] %v618_v20  ;;  %v8171_v17 = vsel %vm7423_vm5, %v6300_v2, %v3567_v8  ;;  %v3569_v18 = vrot.slane %v3567_v8, 4  ;;  %v7262_v20 = vld [vmem:[%s7930_s16 + $0x84] sm:$0xff]  }
 0x104   : > { %v6741_v29 = vpop.f32.mrf.mxu1  ;;  %v8125_v30 = vpop.f32.mrf.mxu0 }
 0x105   : > { %676 = vst [vmem:[%s7998_s6 + $0xf0] sm:$0xff] %v6741_v29  ;;  %v8184_v27 = vsel %vm7423_vm5, %v3569_v18, %v3570_v12  ;;  %v4457_v29 = vshrl.u32 %v4408_v24, 16  ;;  %v4492_v18 = vrot.slane %v4490_v0, 5 }
 0x106   : > { %v631_v44 = vpop.f32.mrf.mxu1  ;;  %v8133_v47 = vpop.f32.mrf.mxu0  ;;  %v6332_v38 = vcombine.low %v8171_v17, %v8184_v27 }
 0x107   : > { %674 = vst [vmem:[%s7998_s6 + $0xe0] sm:$0xff] %v631_v44  ;;  %v4411_v44 = vld [vmem:[%s7930_s16 + $0xc] sm:$0xf]  ;;  %v4459_v49 = vrot.slane %v4457_v29, 4  ;;  %7020 = vmatmul.mubr.bf16.gmra.mxu0 %v7262_v20  ;;  %v5228_v20 = vld [vmem:[%s7930_s16 + $0x8] sm:$0x1] }
 0x108   : > { %v6742_v54 = vpop.f32.mrf.mxu1  ;;  %v8143_v55 = vpop.f32.mrf.mxu0  ;;  %v4481_v42 = vshrl.u32 %v4411_v44, 16  ;;  %v4484_v63 = vshll.u32 %v4411_v44, 16  ;;  %7023 = vmatprep.mubr.bf16.mxu0 %v7265_v37  ;;  %v5327_v43 = vrot.slane %v5228_v20, 5  ;;  %v5230_v44 = vld [vmem:[%s7930_s16 + $0x10] sm:$0xf] }
 0x109   : > { %677 = vst [vmem:[%s7998_s6 + $0xf8] sm:$0xff] %v6742_v54  ;;  %v4413_v54 = vld [vmem:[%s7930_s16 + $0x14] sm:$0x1]  ;;  %v4463_v61 = vor.u32 %v4462_v52, %v4459_v49  ;;  %6976 = vmatmul.mubr.bf16.gmra.mxu1 %v6330_v22 }
 0x10a   : > { %v634_v4 = vpop.f32.mrf.mxu1  ;;  %v8158_v5 = vpop.f32.mrf.mxu0  ;;  %v4486_v16 = vrot.slane %v4484_v63, 5  ;;  %6979 = vmatprep.mubr.bf16.mxu1 %v6331_v23  ;;  %v5231_v22 = vld [vmem:[%s7930_s16 + $0x14] sm:$0x1]  ;;  %v5331_v63 = vrot.slane %v5230_v44, 5 }
 0x10b   : > { %675 = vst [vmem:[%s7998_s6 + $0xe8] sm:$0xff] %v634_v4  ;;  %v4500_v4 = vshll.u32 %v4413_v54, 16  ;;  %v4414_v54 = vld [vmem:[%s7930_s16 + $0x18] sm:$0xf]  ;;  %v5334_v0 = vrot.slane %v5231_v22, 5 }
 0x10c   : > { %v6761_v13 = vpop.f32.mrf.mxu1  ;;  %v6809_v15 = vpop.f32.mrf.mxu0 }
 0x10d   : > { %v1437_v19 = vadd.f32 %v6761_v13, %v8005_v40  ;;  %v4409_v40 = vld [vmem:[%s7930_s16 + $0x4] sm:$0xf] }
 0x10e   : > { %v1276_v25 = vpop.f32.mrf.mxu1  ;;  %v8180_v26 = vpop.f32.mrf.mxu0  ;;  %v4466_v39 = vshll.u32 %v4409_v40, 16  ;;  %v4470_v41 = vshrl.u32 %v4409_v40, 16  ;;  %v6421_v40 = vrot.slane %v5226_v7, 9 }
 0x10f   : > { %v8189_v33 = vadd.f32 %v1276_v25, %v8017_v50  ;;  %v2034_v50 = vadd.f32 %v6809_v15, %v1437_v19  ;;  %v4464_v15 = vrot.slane %v4463_v61, 4  ;;  %v4496_v19 = vrot.slane %v4494_v1, 4 }
 0x110   : > { %v6762_v48 = vpop.f32.mrf.mxu1  ;;  %v8195_v14 = vpop.f32.mrf.mxu0  ;;  %v4468_v46 = vrot.slane %v4466_v39, 5  ;;  %v4472_v57 = vrot.slane %v4470_v41, 4  ;;  %v4502_v25 = vrot.slane %v4500_v4, 5  ;;  %v8227_v52 = vsel %vm7423_vm5, %v6421_v40, %v5324_v28 }
 0x111   : > { %v8200_v56 = vadd.f32 %v6762_v48, %v8029_v58  ;;  %2066 = vst [vmem:[%s7998_s6 + $0x10] sm:$0xff] %v2034_v50  ;;  %v4483_v58 = vrot.slane %v4481_v42, 4  ;;  %v4497_v41 = vor.u32 %v4496_v19, %v4492_v18  ;;  %v7266_v48 = vld [vmem:[%s7930_s16 + $0x9c] sm:$0xff]   ;;  %v2032_v1 = vadd.f32 %v8180_v26, %v8189_v33  ;;  %v4417_v33 = vld [vmem:[%s7930_s16 + $0x24] sm:$0xf]  ;;  %6980 = vmatmul.mubr.bf16.gmra.mxu1 %v6332_v38  ;;  %v7270_v38 = vld [vmem:[%s7930_s16 + $0xb4] sm:$0xff]  }
 0x112   : > { %v1279_v59 = vpop.f32.mrf.mxu1  ;;  %v8202_v60 = vpop.f32.mrf.mxu0  ;;  %v4473_v2 = vor.u32 %v4472_v57, %v4468_v46  ;;  %v4469_v37 = vsel %vm7403_vm4, %v4464_v15, %v4468_v46  ;;  %v7269_v57 = vld [vmem:[%s7930_s16 + $0xa8] sm:$0xff]   ;;  %v4505_v4 = vshrl.u32 %v4414_v54, 16  ;;  %7024 = vmatmul.mubr.bf16.gmra.mxu0 %v7266_v48 }
 0x113   : > { %v8208_v8 = vadd.f32 %v1279_v59, %v8040_v3  ;;  %v5229_v3 = vld [vmem:[%s7930_s16 + $0xc] sm:$0xe]  ;;  %v4487_v39 = vor.u32 %v4486_v16, %v4483_v58  ;;  %v4498_v61 = vrot.slane %v4497_v41, 4  ;;  %v4416_v58 = vld [vmem:[%s7930_s16 + $0x20] sm:$0x1]  ;;  %2064 = vst [vmem:[%s7998_s6] sm:$0xff] %v2032_v1  ;;  %7027 = vmatprep.mubr.bf16.mxu0 %v7269_v57 }
 0x114   : > { %v6765_v12 = vpop.f32.mrf.mxu1  ;;  %v8210_v13 = vpop.f32.mrf.mxu0  ;;  %v4474_v24 = vrot.slane %v4473_v2, 4  ;;  %v6422_v23 = vrot.slane %v5229_v3, 9  ;;  %v4415_v2 = vld [vmem:[%s7930_s16 + $0x1c] sm:$0xf]  ;;  %v4507_v40 = vrot.slane %v4505_v4, 4 }
 0x115   : > { %v4488_v59 = vrot.slane %v4487_v39, 4  ;;  %v4503_v16 = vsel %vm7403_vm4, %v4498_v61, %v4502_v25  ;;  %v4514_v3 = vshll.u32 %v4415_v2, 16  ;;  %v4524_v39 = vshll.u32 %v4416_v58, 16  ;;  %v4419_v48 = vld [vmem:[%s7930_s16 + $0x2c] sm:$0x1] }
 0x116   : > { %v8214_v29 = vpop.f32.mrf.mxu1  ;;  %v8216_v31 = vpop.f32.mrf.mxu0  ;;  %v4479_v49 = vsel %vm7403_vm4, %v4474_v24, %v4478_v32  ;;  %v8237_v32 = vsel %vm7423_vm5, %v5326_v53, %v5327_v43  ;;  %v8255_v26 = vsel %vm7423_vm5, %v6422_v23, %v5331_v63  ;;  %v5333_v24 = vrot.slane %v5331_v63, 4  ;;  %v4418_v43 = vld [vmem:[%s7930_s16 + $0x28] sm:$0xf]  ;;  %v5232_v58 = vld [vmem:[%s7930_s16 + $0x18] sm:$0xe] }
 0x117   : > { %v6397_v42 = vcombine.low %v4469_v37, %v4479_v49  ;;  %v4493_v15 = vsel %vm7403_vm4, %v4488_v59, %v4492_v18  ;;  %v6453_v19 = vcombine.low %v8227_v52, %v8237_v32  ;;  %v4508_v18 = vshll.u32 %v4414_v54, 16 }
 0x118   : > { %v8230_v50 = vpop.f32.mrf.mxu1  ;;  %v8232_v46 = vpop.f32.mrf.mxu0  ;;  %v8258_v20 = vcombine.low %v4493_v15, %v4503_v16  ;;  %v4518_v37 = vshrl.u32 %v4415_v2, 16  ;;  %v1441_v41 = vadd.f32 %v6765_v12, %v8046_v10  ;;  %v8272_v44 = vsel %vm7423_vm5, %v5333_v24, %v5334_v0  ;;  %v5233_v24 = vld [vmem:[%s7930_s16 + $0x1c] sm:$0xf] }
 0x119   : > { %v4510_v22 = vrot.slane %v4508_v18, 5  ;;  %v4529_v49 = vshrl.u32 %v4417_v33, 16  ;;  %v4532_v52 = vshll.u32 %v4417_v33, 16  ;;  %7047 = vmatprep.mubr.bf16.mxu1 %v6397_v42  ;;  %v6454_v10 = vcombine.low %v8255_v26, %v8272_v44 }
 0x11a   : > { %v8243_v7 = vpop.f32.mrf.mxu1  ;;  %v8245_v11 = vpop.f32.mrf.mxu0  ;;  %v4516_v12 = vrot.slane %v4514_v3, 5  ;;  %v4520_v17 = vrot.slane %v4518_v37, 4  ;;  %v4526_v27 = vrot.slane %v4524_v39, 5  ;;  %v4538_v61 = vshll.u32 %v4418_v43, 16  ;;  %7028 = vmatmul.mubr.bf16.gmra.mxu0 %v7270_v38  ;;  %v5237_v38 = vld [vmem:[%s7930_s16 + $0x2c] sm:$0x1]  ;;  %7048 = vmatmul.mubr.bf16.vlgmr.msra.gmra.mxu1 %v8258_v20 }
 0x11b   : > { %v4511_v54 = vor.u32 %v4510_v22, %v4507_v40  ;;  %v4531_v57 = vrot.slane %v4529_v49, 4  ;;  %v4534_v59 = vrot.slane %v4532_v52, 5  ;;  %v4542_v0 = vshrl.u32 %v4418_v43, 16  ;;  %v5234_v40 = vld [vmem:[%s7930_s16 + $0x20] sm:$0x1]  ;;  %7095 = vmatprep.mubr.bf16.mxu0 %v6453_v19 }
 0x11c   : > { %v8261_v28 = vpop.f32.mrf.mxu1  ;;  %v8263_v25 = vpop.f32.mrf.mxu0  ;;  %v4521_v42 = vor.u32 %v4520_v17, %v4516_v12  ;;  %v4548_v1 = vshll.u32 %v4419_v48, 16  ;;  %v2035_v2 = vadd.f32 %v8195_v14, %v8200_v56  ;;  %v4540_v16 = vrot.slane %v4538_v61, 5  ;;  %v5235_v14 = vld [vmem:[%s7930_s16 + $0x24] sm:$0xe]  ;;  %v5236_v49 = vld [vmem:[%s7930_s16 + $0x28] sm:$0xf] }
 0x11d   : > { %v4512_v4 = vrot.slane %v4511_v54, 4  ;;  %v4535_v15 = vor.u32 %v4534_v59, %v4531_v57  ;;  %v1439_v33 = vadd.f32 %v8214_v29, %v8057_v35  ;;  %v4544_v3 = vrot.slane %v4542_v0, 4  ;;  %v4420_v54 = vld [vmem:[%s7930_s16 + $0x30] sm:$0xf] }
 0x11e   : > { %v8275_v53 = vpop.f32.mrf.mxu1  ;;  %v8277_v23 = vpop.f32.mrf.mxu0  ;;  %v4522_v18 = vrot.slane %v4521_v42, 4  ;;  %v4550_v37 = vrot.slane %v4548_v1, 5  ;;  %2067 = vst [vmem:[%s7998_s6 + $0x18] sm:$0xff] %v2035_v2  ;;  %v2033_v39 = vadd.f32 %v8202_v60, %v8208_v8  ;;  %v8305_v22 = vadd.f32 %v8230_v50, %v8071_v34  ;;  %v4422_v2 = vld [vmem:[%s7930_s16 + $0x38] sm:$0x1] }
 0x11f   : > { %v4517_v35 = vsel %vm7403_vm4, %v4512_v4, %v4516_v12  ;;  %v4536_v29 = vrot.slane %v4535_v15, 4  ;;  %v6423_v48 = vrot.slane %v5232_v58, 9  ;;  %v4545_v8 = vor.u32 %v4544_v3, %v4540_v16 }
 0x120   : > { %v8282_v63 = vpop.f32.mrf.mxu1  ;;  %v8284_v32 = vpop.f32.mrf.mxu0  ;;  %v4527_v60 = vsel %vm7403_vm4, %v4522_v18, %v4526_v27  ;;  %2065 = vst [vmem:[%s7998_s6 + $0x8] sm:$0xff] %v2033_v39  ;;  %v5338_v52 = vrot.slane %v5233_v24, 5  ;;  %v5341_v17 = vrot.slane %v5234_v40, 5  ;;  %v2038_v50 = vadd.f32 %v8210_v13, %v1441_v41  ;;  %v4421_v41 = vld [vmem:[%s7930_s16 + $0x34] sm:$0xf] }
 0x121   : > { %v6399_v12 = vcombine.low %v4517_v35, %v4527_v60  ;;  %v4541_v34 = vsel %vm7403_vm4, %v4536_v29, %v4540_v16  ;;  %v6424_v19 = vrot.slane %v5235_v14, 9  ;;  %v4546_v57 = vrot.slane %v4545_v8, 4  ;;  %v4423_v40 = vld [vmem:[%s7930_s16 + $0x3c] sm:$0xf]  ;;  %v4424_v29 = vld [vmem:[%s7930_s16 + $0x40] sm:$0xf] }
 0x122   : > { %v8297_v56 = vpop.f32.mrf.mxu1  ;;  %v8299_v43 = vpop.f32.mrf.mxu0  ;;  %v5339_v27 = vsel %vm7423_vm5, %v6423_v48, %v5338_v52  ;;  %v5340_v59 = vrot.slane %v5338_v52, 4  ;;  %v5345_v61 = vrot.slane %v5236_v49, 5  ;;  %2070 = vst [vmem:[%s7998_s6 + $0x30] sm:$0xff] %v2038_v50  ;;  %v5348_v20 = vrot.slane %v5237_v38, 5  ;;  %7096 = vmatmul.mubr.bf16.vlgmr.msra.gmra.mxu0 %v6454_v10 }
 0x123   : > { %7051 = vmatprep.mubr.bf16.mxu1 %v6399_v12  ;;  %v1440_v1 = vadd.f32 %v8243_v7, %v8079_v45  ;;  %v2036_v13 = vadd.f32 %v8216_v31, %v1439_v33  ;;  %v4553_v58 = vshrl.u32 %v4420_v54, 16  ;;  %v4551_v4 = vsel %vm7403_vm4, %v4546_v57, %v4550_v37 }
 0x124   : > { %v8319_v42 = vpop.f32.mrf.mxu1  ;;  %v8321_v0 = vpop.f32.mrf.mxu0  ;;  %v5342_v15 = vsel %vm7423_vm5, %v5340_v59, %v5341_v17  ;;  %v8335_v16 = vsel %vm7423_vm5, %v6424_v19, %v5345_v61  ;;  %v5347_v24 = vrot.slane %v5345_v61, 4  ;;  %v6400_v31 = vcombine.low %v4541_v34, %v4551_v4  ;;  %v4425_v17 = vld [vmem:[%s7930_s16 + $0x44] sm:$0x1]  ;;  %v5238_v61 = vld [vmem:[%s7930_s16 + $0x30] sm:$0xe] }
 0x125   : > { %v6455_v7 = vcombine.low %v5339_v27, %v5342_v15  ;;  %2068 = vst [vmem:[%s7998_s6 + $0x20] sm:$0xff] %v2036_v13  ;;  %v4555_v33 = vrot.slane %v4553_v58, 4  ;;  %v4556_v3 = vshll.u32 %v4420_v54, 16  ;;  %v4562_v39 = vshll.u32 %v4421_v41, 16  ;;  %v5240_v15 = vld [vmem:[%s7930_s16 + $0x38] sm:$0x1] }
 0x126   : > { %v8338_v18 = vpop.f32.mrf.mxu1  ;;  %v8340_v45 = vpop.f32.mrf.mxu0  ;;  %v5349_v37 = vsel %vm7423_vm5, %v5347_v24, %v5348_v20  ;;  %v4566_v14 = vshrl.u32 %v4421_v41, 16  ;;  %v4572_v35 = vshll.u32 %v4422_v2, 16  ;;  %v1445_v52 = vadd.f32 %v8261_v28, %v8085_v36  ;;  %7052 = vmatmul.mubr.bf16.gmra.mxu1 %v6400_v31  ;;  %v5239_v20 = vld [vmem:[%s7930_s16 + $0x34] sm:$0xf] }
 0x127   : > { %v6456_v60 = vcombine.low %v8335_v16, %v5349_v37  ;;  %v4558_v8 = vrot.slane %v4556_v3, 5  ;;  %v4577_v38 = vshrl.u32 %v4423_v40, 16  ;;  %7099 = vmatprep.mubr.bf16.mxu0 %v6455_v7  ;;  %v4564_v54 = vrot.slane %v4562_v39, 5 }
 0x128   : > { %v8346_v48 = vpop.f32.mrf.mxu1  ;;  %v8348_v49 = vpop.f32.mrf.mxu0  ;;  %v4568_v12 = vrot.slane %v4566_v14, 4  ;;  %v4574_v34 = vrot.slane %v4572_v35, 5  ;;  %v4580_v50 = vshll.u32 %v4423_v40, 16  ;;  %v4586_v44 = vshll.u32 %v4424_v29, 16  ;;  %v5243_v14 = vld [vmem:[%s7930_s16 + $0x44] sm:$0x1] }
 0x129   : > { %v4559_v19 = vor.u32 %v4558_v8, %v4555_v33  ;;  %v4579_v26 = vrot.slane %v4577_v38, 4  ;;  %v4590_v10 = vshrl.u32 %v4424_v29, 16  ;;  %v4596_v28 = vshll.u32 %v4425_v17, 16 }
 0x12a   : > { %v8357_v57 = vpop.f32.mrf.mxu1  ;;  %v4569_v27 = vor.u32 %v4568_v12, %v4564_v54  ;;  %v4582_v36 = vrot.slane %v4580_v50, 5  ;;  %v2039_v59 = vadd.f32 %v8232_v46, %v8305_v22  ;;  %v8363_v13 = vpop.f32.mrf.mxu0  ;;  %v4588_v2 = vrot.slane %v4586_v44, 5  ;;  %v5241_v22 = vld [vmem:[%s7930_s16 + $0x3c] sm:$0xe]  ;;  %7100 = vmatmul.mubr.bf16.gmra.mxu0 %v6456_v60  ;;  %v4426_v50 = vld [vmem:[%s7930_s16 + $0x48] sm:$0xf] }
 0x12b   : > { %v4560_v41 = vrot.slane %v4559_v19, 4  ;;  %v4592_v58 = vrot.slane %v4590_v10, 4  ;;  %v1443_v4 = vadd.f32 %v8275_v53, %v8095_v62  ;;  %v4598_v40 = vrot.slane %v4596_v28, 5  ;;  %v5242_v62 = vld [vmem:[%s7930_s16 + $0x40] sm:$0xf] }
 0x12c   : > { %v4570_v16 = vrot.slane %v4569_v27, 4  ;;  %v4583_v24 = vor.u32 %v4582_v36, %v4579_v26  ;;  %2071 = vst [vmem:[%s7998_s6 + $0x38] sm:$0xff] %v2039_v59  ;;  %v2037_v46 = vadd.f32 %v8245_v11, %v1440_v1  ;;  %v8375_v33 = vadd.f32 %v8282_v63, %v8110_v9  ;;  %v4427_v19 = vld [vmem:[%s7930_s16 + $0x4c] sm:$0xf]  ;;  %v4428_v10 = vld [vmem:[%s7930_s16 + $0x50] sm:$0x1] }
 0x12d   : > { %v4565_v31 = vsel %vm7403_vm4, %v4560_v41, %v4564_v54  ;;  %v4593_v7 = vor.u32 %v4592_v58, %v4588_v2  ;;  %v6425_v3 = vrot.slane %v5238_v61, 9  ;;  %v5352_v11 = vrot.slane %v5239_v20, 5 }
 0x12e   : > { %v8378_v53 = vpop.f32.mrf.mxu1  ;;  %v4575_v37 = vsel %vm7403_vm4, %v4570_v16, %v4574_v34  ;;  %v4584_v39 = vrot.slane %v4583_v24, 4  ;;  %2069 = vst [vmem:[%s7998_s6 + $0x28] sm:$0xff] %v2037_v46  ;;  %v5355_v1 = vrot.slane %v5240_v15, 5  ;;  %v2042_v29 = vadd.f32 %v8263_v25, %v1445_v52  ;;  %v4430_v24 = vld [vmem:[%s7930_s16 + $0x58] sm:$0xf] }
 0x12f   : > { %v6401_v9 = vcombine.low %v4565_v31, %v4575_v37  ;;  %v4594_v63 = vrot.slane %v4593_v7, 4  ;;  %v6426_v8 = vrot.slane %v5241_v22, 9  ;;  %v5353_v54 = vsel %vm7423_vm5, %v6425_v3, %v5352_v11 }
 0x130   : > { %v8384_v35 = vpop.f32.mrf.mxu0  ;;  %v8387_v17 = vpop.f32.mrf.mxu1  ;;  %v4589_v38 = vsel %vm7403_vm4, %v4584_v39, %v4588_v2  ;;  %v5354_v12 = vrot.slane %v5352_v11, 4  ;;  %v5359_v34 = vrot.slane %v5242_v62, 5  ;;  %2074 = vst [vmem:[%s7998_s6 + $0x50] sm:$0xff] %v2042_v29  ;;  %v5362_v52 = vrot.slane %v5243_v14, 5 }
 0x131   : > { %7055 = vmatprep.mubr.bf16.mxu1 %v6401_v9  ;;  %v4599_v25 = vsel %vm7403_vm4, %v4594_v63, %v4598_v40  ;;  %v1444_v26 = vadd.f32 %v8297_v56, %v8119_v21  ;;  %v2040_v44 = vadd.f32 %v8277_v23, %v1443_v4  ;;  %v4601_v41 = vshrl.u32 %v4426_v50, 16  ;;  %v4429_v56 = vld [vmem:[%s7930_s16 + $0x54] sm:$0xf]  ;;  %v4431_v40 = vld [vmem:[%s7930_s16 + $0x5c] sm:$0x1] }
 0x132   : > { %v8395_v60 = vpop.f32.mrf.mxu0  ;;  %v8404_v27 = vpop.f32.mrf.mxu1  ;;  %v6402_v36 = vcombine.low %v4589_v38, %v4599_v25  ;;  %v5356_v28 = vsel %vm7423_vm5, %v5354_v12, %v5355_v1  ;;  %v5360_v59 = vsel %vm7423_vm5, %v6426_v8, %v5359_v34  ;;  %v5361_v61 = vrot.slane %v5359_v34, 4  ;;  %v5245_v12 = vld [vmem:[%s7930_s16 + $0x4c] sm:$0xf] }
 0x133   : > { %v6457_v20 = vcombine.low %v5353_v54, %v5356_v28  ;;  %2072 = vst [vmem:[%s7998_s6 + $0x40] sm:$0xff] %v2040_v44  ;;  %v4604_v2 = vshll.u32 %v4426_v50, 16  ;;  %v4610_v21 = vshll.u32 %v4427_v19, 16  ;;  %v4614_v4 = vshrl.u32 %v4427_v19, 16  ;;  %v5244_v54 = vld [vmem:[%s7930_s16 + $0x48] sm:$0xe] }
 0x134   : > { %v8412_v23 = vpop.f32.mrf.mxu0  ;;  %7056 = vmatmul.mubr.bf16.gmra.mxu1 %v6402_v36  ;;  %v5363_v58 = vsel %vm7423_vm5, %v5361_v61, %v5362_v52  ;;  %v4620_v15 = vshll.u32 %v4428_v10, 16  ;;  %v1449_v16 = vadd.f32 %v8319_v42, %v8125_v30  ;;  %v4603_v22 = vrot.slane %v4601_v41, 4  ;;  %v8420_v3 = vpop.f32.mrf.mxu1  ;;  %v5246_v52 = vld [vmem:[%s7930_s16 + $0x50] sm:$0x1] }
 0x135   : > { %7103 = vmatprep.mubr.bf16.mxu0 %v6457_v20  ;;  %v6458_v46 = vcombine.low %v5360_v59, %v5363_v58  ;;  %v4606_v31 = vrot.slane %v4604_v2, 5  ;;  %v4612_v7 = vrot.slane %v4610_v21, 5  ;;  %v4616_v62 = vrot.slane %v4614_v4, 4  ;;  %v5248_v2 = vld [vmem:[%s7930_s16 + $0x58] sm:$0xf] }
 0x136   : > { %v4622_v37 = vrot.slane %v4620_v15, 5  ;;  %v4625_v39 = vshrl.u32 %v4429_v56, 16  ;;  %v4628_v11 = vshll.u32 %v4429_v56, 16  ;;  %v4634_v14 = vshll.u32 %v4430_v24, 16  ;;  %v8422_v9 = vpop.f32.mrf.mxu0  ;;  %v5249_v58 = vld [vmem:[%s7930_s16 + $0x5c] sm:$0x1] }
 0x137   : > { %7104 = vmatmul.mubr.bf16.gmra.mxu0 %v6458_v46  ;;  %v4607_v1 = vor.u32 %v4606_v31, %v4603_v22  ;;  %v4638_v30 = vshrl.u32 %v4430_v24, 16  ;;  %v4644_v42 = vshll.u32 %v4431_v40, 16  ;;  %v4617_v63 = vor.u32 %v4616_v62, %v4612_v7  ;;  %v8431_v44 = vpop.f32.mrf.mxu1  ;;  %v4433_v62 = vld [vmem:[%s7930_s16 + $0x64] sm:$0xf] }
 0x138   : > { %v4627_v29 = vrot.slane %v4625_v39, 4  ;;  %v4630_v8 = vrot.slane %v4628_v11, 5  ;;  %v8426_v38 = vadd.f32 %v8284_v32, %v8375_v33  ;;  %v4636_v50 = vrot.slane %v4634_v14, 5  ;;  %v5247_v32 = vld [vmem:[%s7930_s16 + $0x54] sm:$0xe] }
 0x139   : > { %v4608_v34 = vrot.slane %v4607_v1, 4  ;;  %v4640_v19 = vrot.slane %v4638_v30, 4  ;;  %v4646_v25 = vrot.slane %v4644_v42, 5  ;;  %v4618_v10 = vrot.slane %v4617_v63, 4  ;;  %v8446_v21 = vpop.f32.mrf.mxu1  ;;  %v8448_v56 = vpop.f32.mrf.mxu0  ;;  %v4434_v1 = vld [vmem:[%s7930_s16 + $0x68] sm:$0x1] }
 0x13a   : > { %v4631_v36 = vor.u32 %v4630_v8, %v4627_v29  ;;  %v1447_v28 = vadd.f32 %v8338_v18, %v8133_v47  ;;  %v8436_v59 = vadd.f32 %v8299_v43, %v1444_v26  ;;  %v8443_v20 = vadd.f32 %v8346_v48, %v8143_v55 }
 0x13b   : > { %v4613_v33 = vsel %vm7403_vm4, %v4608_v34, %v4612_v7  ;;  %v4641_v61 = vor.u32 %v4640_v19, %v4636_v50  ;;  %v6427_v41 = vrot.slane %v5244_v54, 9  ;;  %v4623_v47 = vsel %vm7403_vm4, %v4618_v10, %v4622_v37  ;;  %v8456_v24 = vpop.f32.mrf.mxu0  ;;  %v4432_v7 = vld [vmem:[%s7930_s16 + $0x60] sm:$0xf]  ;;  %v8464_v37 = vpop.f32.mrf.mxu1  ;;  %v4437_v10 = vld [vmem:[%s7930_s16 + $0x74] sm:$0x1] }
 0x13c   : > { %v4632_v43 = vrot.slane %v4631_v36, 4  ;;  %v5366_v18 = vrot.slane %v5245_v12, 5  ;;  %v5369_v26 = vrot.slane %v5246_v52, 5  ;;  %v6403_v4 = vcombine.low %v4613_v33, %v4623_v47  ;;  %v4436_v52 = vld [vmem:[%s7930_s16 + $0x70] sm:$0xf] }
 0x13d   : > { %v4642_v15 = vrot.slane %v4641_v61, 4  ;;  %v8454_v55 = vadd.f32 %v8321_v0, %v1449_v16  ;;  %v6428_v48 = vrot.slane %v5247_v32, 9  ;;  %v5373_v31 = vrot.slane %v5248_v2, 5  ;;  %v8474_v14 = vpop.f32.mrf.mxu0  ;;  %v8487_v36 = vpop.f32.mrf.mxu1 }
 0x13e   : > { %v4637_v40 = vsel %vm7403_vm4, %v4632_v43, %v4636_v50  ;;  %v5367_v46 = vsel %vm7423_vm5, %v6427_v41, %v5366_v18  ;;  %v5368_v22 = vrot.slane %v5366_v18, 4  ;;  %7059 = vmatprep.mubr.bf16.mxu1 %v6403_v4  ;;  %v5376_v16 = vrot.slane %v5249_v58, 5 }
 0x13f   : > { %v4647_v0 = vsel %vm7403_vm4, %v4642_v15, %v4646_v25  ;;  %v1448_v39 = vadd.f32 %v8357_v57, %v8158_v5  ;;  %v8471_v11 = vadd.f32 %v8340_v45, %v1447_v28  ;;  %v5374_v63 = vsel %vm7423_vm5, %v6428_v48, %v5373_v31  ;;  %v1421_v57 = vld [vmem:[%s7998_s6 + $0x90] sm:$0xff]  ;;  %v4435_v45 = vld [vmem:[%s7930_s16 + $0x6c] sm:$0xf]  ;;  %v8489_v41 = vpop.f32.mrf.mxu0  ;;  %v1419_v15 = vld [vmem:[%s7998_s6 + $0x80] sm:$0xff] }
 0x140   : > { %v6404_v30 = vcombine.low %v4637_v40, %v4647_v0  ;;  %v5370_v42 = vsel %vm7423_vm5, %v5368_v22, %v5369_v26  ;;  %v5375_v29 = vrot.slane %v5373_v31, 4  ;;  %v4649_v54 = vshrl.u32 %v4432_v7, 16  ;;  %v5250_v31 = vld [vmem:[%s7930_s16 + $0x60] sm:$0xe] }
 0x141   : > { %v6459_v8 = vcombine.low %v5367_v46, %v5370_v42  ;;  %v4652_v12 = vshll.u32 %v4432_v7, 16  ;;  %v4658_v5 = vshll.u32 %v4433_v62, 16  ;;  %v4662_v50 = vshrl.u32 %v4433_v62, 16  ;;  %v5251_v7 = vld [vmem:[%s7930_s16 + $0x64] sm:$0xf] }
 0x142   : > { %7060 = vmatmul.mubr.bf16.gmra.mxu1 %v6404_v30  ;;  %v5377_v34 = vsel %vm7423_vm5, %v5375_v29, %v5376_v16  ;;  %v4668_v19 = vshll.u32 %v4434_v1, 16  ;;  %v1453_v25 = vadd.f32 %v8378_v53, %v1421_v57  ;;  %v4651_v32 = vrot.slane %v4649_v54, 4  ;;  %v5252_v42 = vld [vmem:[%s7930_s16 + $0x68] sm:$0x1] }
 0x143   : > { %7107 = vmatprep.mubr.bf16.mxu0 %v6459_v8  ;;  %v6460_v28 = vcombine.low %v5374_v63, %v5377_v34  ;;  %v4654_v33 = vrot.slane %v4652_v12, 5  ;;  %v4660_v61 = vrot.slane %v4658_v5, 5  ;;  %v4664_v2 = vrot.slane %v4662_v50, 4  ;;  %v5253_v12 = vld [vmem:[%s7930_s16 + $0x6c] sm:$0xe] }
 0x144   : > { %v4670_v47 = vrot.slane %v4668_v19, 5  ;;  %v4673_v43 = vshrl.u32 %v4435_v45, 16  ;;  %v4676_v18 = vshll.u32 %v4435_v45, 16  ;;  %v4682_v26 = vshll.u32 %v4436_v52, 16  ;;  %v8498_v62 = vpop.f32.mrf.mxu1  ;;  %v5254_v19 = vld [vmem:[%s7930_s16 + $0x70] sm:$0xf] }
 0x145   : > { %7108 = vmatmul.mubr.bf16.gmra.mxu0 %v6460_v28  ;;  %v4655_v53 = vor.u32 %v4654_v33, %v4651_v32  ;;  %v4686_v58 = vshrl.u32 %v4436_v52, 16  ;;  %v4692_v4 = vshll.u32 %v4437_v10, 16  ;;  %v4665_v48 = vor.u32 %v4664_v2, %v4660_v61  ;;  %v8501_v63 = vpop.f32.mrf.mxu0  ;;  %v5255_v28 = vld [vmem:[%s7930_s16 + $0x74] sm:$0x1] }
 0x146   : > { %v4675_v40 = vrot.slane %v4673_v43, 4  ;;  %v4678_v46 = vrot.slane %v4676_v18, 5  ;;  %v8494_v22 = vadd.f32 %v8348_v49, %v8443_v20  ;;  %v4684_v16 = vrot.slane %v4682_v26, 5  ;;  %v1422_v20 = vld [vmem:[%s7998_s6 + $0x98] sm:$0xff]  ;;  %v8509_v5 = vpop.f32.mrf.mxu1  ;;  %v1420_v43 = vld [vmem:[%s7998_s6 + $0x88] sm:$0xff] }
 0x147   : > { %v4656_v0 = vrot.slane %v4655_v53, 4  ;;  %v4688_v1 = vrot.slane %v4686_v58, 4  ;;  %v4694_v30 = vrot.slane %v4692_v4, 5  ;;  %v4666_v29 = vrot.slane %v4665_v48, 4  ;;  %v8517_v52 = vpop.f32.mrf.mxu0  ;;  %v4438_v4 = vld [vmem:[%s7930_s16 + $0x78] sm:$0xf] }
 0x148   : > { %v4679_v8 = vor.u32 %v4678_v46, %v4675_v40  ;;  %v1451_v54 = vadd.f32 %v1419_v15, %v8387_v17  ;;  %v8505_v49 = vadd.f32 %v8363_v13, %v1448_v39  ;;  %v8514_v34 = vadd.f32 %v8404_v27, %v1422_v20  ;;  %v8522_v32 = vpop.f32.mrf.mxu1  ;;  %v4439_v15 = vld [vmem:[%s7930_s16 + $0x7c] sm:$0xf]  ;;  %v4440_v46 = vld [vmem:[%s7930_s16 + $0x80] sm:$0x1] }
 0x149   : > { %v4661_v57 = vsel %vm7403_vm4, %v4656_v0, %v4660_v61  ;;  %v4689_v45 = vor.u32 %v4688_v1, %v4684_v16  ;;  %v6429_v50 = vrot.slane %v5250_v31, 9  ;;  %v4671_v13 = vsel %vm7403_vm4, %v4666_v29, %v4670_v47  ;;  %v8528_v18 = vpop.f32.mrf.mxu0 }
 0x14a   : > { %9112 = vst [vmem:[#allocation2_spill] sm:$0xff] %v8505_v49  ;;  %v4680_v17 = vrot.slane %v4679_v8, 4  ;;  %v5380_v39 = vrot.slane %v5251_v7, 5  ;;  %v5383_v10 = vrot.slane %v5252_v42, 5  ;;  %v6405_v33 = vcombine.low %v4661_v57, %v4671_v13  ;;  %v8543_v31 = vpop.f32.mrf.mxu1  ;;  %v1425_v8 = vld [vmem:[%s7998_s6 + $0xb0] sm:$0xff] }
 0x14b   : > { %v4690_v61 = vrot.slane %v4689_v45, 4  ;;  %v8525_v27 = vadd.f32 %v8384_v35, %v1453_v25  ;;  %v6430_v2 = vrot.slane %v5253_v12, 9  ;;  %v5387_v58 = vrot.slane %v5254_v19, 5  ;;  %v4443_v19 = vld [vmem:[%s7930_s16 + $0x8c] sm:$0x1] }
 0x14c   : > { %v4685_v47 = vsel %vm7403_vm4, %v4680_v17, %v4684_v16  ;;  %v5381_v53 = vsel %vm7423_vm5, %v6429_v50, %v5380_v39  ;;  %v5382_v26 = vrot.slane %v5380_v39, 4  ;;  %7063 = vmatprep.mubr.bf16.mxu1 %v6405_v33  ;;  %v5390_v25 = vrot.slane %v5255_v28, 5  ;;  %v4442_v50 = vld [vmem:[%s7930_s16 + $0x88] sm:$0xf] }
 0x14d   : > { %9113 = vst [vmem:[#allocation3_spill] sm:$0xff] %v8525_v27  ;;  %v4695_v35 = vsel %vm7403_vm4, %v4690_v61, %v4694_v30  ;;  %v1452_v48 = vadd.f32 %v1420_v43, %v8420_v3  ;;  %v8540_v40 = vadd.f32 %v8395_v60, %v1451_v54  ;;  %v5388_v16 = vsel %vm7423_vm5, %v6430_v2, %v5387_v58  ;;  %v8549_v30 = vpop.f32.mrf.mxu0  ;;  %v4441_v54 = vld [vmem:[%s7930_s16 + $0x84] sm:$0xf]  ;;  %v5272_v27 = vld [vmem:[%s7930_s16 + $0xb8] sm:$0xf] }
 0x14e   : > { %v6406_v7 = vcombine.low %v4685_v47, %v4695_v35  ;;  %v5384_v0 = vsel %vm7423_vm5, %v5382_v26, %v5383_v10  ;;  %v5389_v1 = vrot.slane %v5387_v58, 4  ;;  %v4697_v3 = vshrl.u32 %v4438_v4, 16 }
 0x14f   : > { %9114 = vst [vmem:[#allocation4_spill] sm:$0xff] %v8540_v40  ;;  %v6461_v42 = vcombine.low %v5381_v53, %v5384_v0  ;;  %v4700_v29 = vshll.u32 %v4438_v4, 16  ;;  %v4706_v60 = vshll.u32 %v4439_v15, 16  ;;  %v4710_v12 = vshrl.u32 %v4439_v15, 16  ;;  %v8558_v28 = vpop.f32.mrf.mxu1  ;;  %v1423_v4 = vld [vmem:[%s7998_s6 + $0xa0] sm:$0xff] }
 0x150   : > { %7064 = vmatmul.mubr.bf16.gmra.mxu1 %v6406_v7  ;;  %v5391_v20 = vsel %vm7423_vm5, %v5389_v1, %v5390_v25  ;;  %v4716_v57 = vshll.u32 %v4440_v46, 16  ;;  %v1457_v45 = vadd.f32 %v8431_v44, %v1425_v8  ;;  %v4699_v17 = vrot.slane %v4697_v3, 4  ;;  %v8560_v47 = vpop.f32.mrf.mxu0  ;;  %v5256_v0 = vld [vmem:[%s7930_s16 + $0x78] sm:$0xe]  ;;  %v5258_v8 = vld [vmem:[%s7930_s16 + $0x80] sm:$0x1] }
 0x151   : > { %7111 = vmatprep.mubr.bf16.mxu0 %v6461_v42  ;;  %v6462_v13 = vcombine.low %v5388_v16, %v5391_v20  ;;  %v4702_v39 = vrot.slane %v4700_v29, 5  ;;  %v4708_v10 = vrot.slane %v4706_v60, 5  ;;  %v4712_v33 = vrot.slane %v4710_v12, 4  ;;  %v8563_v15 = vpop.f32.mrf.mxu1  ;;  %v5257_v16 = vld [vmem:[%s7930_s16 + $0x7c] sm:$0xf] }
 0x152   : > { %v4718_v61 = vrot.slane %v4716_v57, 5  ;;  %v4721_v2 = vshrl.u32 %v4441_v54, 16  ;;  %v4724_v43 = vshll.u32 %v4441_v54, 16  ;;  %v4730_v53 = vshll.u32 %v4442_v50, 16  ;;  %v8571_v1 = vpop.f32.mrf.mxu0 }
 0x153   : > { %7112 = vmatmul.mubr.bf16.gmra.mxu0 %v6462_v13  ;;  %v4703_v44 = vor.u32 %v4702_v39, %v4699_v17  ;;  %v4734_v26 = vshrl.u32 %v4442_v50, 16  ;;  %v4740_v58 = vshll.u32 %v4443_v19, 16  ;;  %v4713_v35 = vor.u32 %v4712_v33, %v4708_v10  ;;  %v8574_v54 = vpop.f32.mrf.mxu1  ;;  %v5259_v50 = vld [vmem:[%s7930_s16 + $0x84] sm:$0xe] }
 0x154   : > { %v4723_v25 = vrot.slane %v4721_v2, 4  ;;  %v4726_v46 = vrot.slane %v4724_v43, 5  ;;  %v8567_v7 = vadd.f32 %v8412_v23, %v8514_v34  ;;  %v4732_v3 = vrot.slane %v4730_v53, 5  ;;  %v1426_v34 = vld [vmem:[%s7998_s6 + $0xb8] sm:$0xff]  ;;  %v8582_v19 = vpop.f32.mrf.mxu0  ;;  %v5260_v2 = vld [vmem:[%s7930_s16 + $0x88] sm:$0xf] }
 0x155   : > { %v4704_v42 = vrot.slane %v4703_v44, 4  ;;  %v4736_v29 = vrot.slane %v4734_v26, 4  ;;  %v4742_v60 = vrot.slane %v4740_v58, 5  ;;  %v4714_v20 = vrot.slane %v4713_v35, 4  ;;  %v8590_v43 = vpop.f32.mrf.mxu1  ;;  %v5261_v53 = vld [vmem:[%s7930_s16 + $0x8c] sm:$0x1] }
 0x156   : > { %9115 = vst [vmem:[#allocation5_spill] sm:$0xff] %v8567_v7  ;;  %v4727_v12 = vor.u32 %v4726_v46, %v4723_v25  ;;  %v1455_v57 = vadd.f32 %v1423_v4, %v8446_v21  ;;  %v8578_v23 = vadd.f32 %v8422_v9, %v1452_v48  ;;  %v8587_v39 = vadd.f32 %v8464_v37, %v1426_v34  ;;  %v1424_v4 = vld [vmem:[%s7998_s6 + $0xa8] sm:$0xff]  ;;  %v8601_v25 = vpop.f32.mrf.mxu0 }
 0x157   : > { %v4709_v13 = vsel %vm7403_vm4, %v4704_v42, %v4708_v10  ;;  %v4737_v17 = vor.u32 %v4736_v29, %v4732_v3  ;;  %v6431_v33 = vrot.slane %v5256_v0, 9  ;;  %v4719_v9 = vsel %vm7403_vm4, %v4714_v20, %v4718_v61  ;;  %v8599_v35 = vpop.f32.mrf.mxu1  ;;  %v4444_v42 = vld [vmem:[%s7930_s16 + $0x90] sm:$0xf]  ;;  %v4445_v29 = vld [vmem:[%s7930_s16 + $0x94] sm:$0xf] }
 0x158   : > { %9116 = vst [vmem:[#allocation6_spill] sm:$0xff] %v8578_v23  ;;  %v4728_v21 = vrot.slane %v4727_v12, 4  ;;  %v5394_v48 = vrot.slane %v5257_v16, 5  ;;  %v5397_v44 = vrot.slane %v5258_v8, 5  ;;  %v6407_v26 = vcombine.low %v4709_v13, %v4719_v9  ;;  %v1429_v9 = vld [vmem:[%s7998_s6 + $0xd0] sm:$0xff] }
 0x159   : > { %v4738_v58 = vrot.slane %v4737_v17, 4  ;;  %v8596_v10 = vadd.f32 %v8448_v56, %v1457_v45  ;;  %v6432_v37 = vrot.slane %v5259_v50, 9  ;;  %v5401_v16 = vrot.slane %v5260_v2, 5  ;;  %v8616_v12 = vpop.f32.mrf.mxu1 }
 0x15a   : > { %v4733_v61 = vsel %vm7403_vm4, %v4728_v21, %v4732_v3  ;;  %v5395_v46 = vsel %vm7423_vm5, %v6431_v33, %v5394_v48  ;;  %v5396_v0 = vrot.slane %v5394_v48, 4  ;;  %7067 = vmatprep.mubr.bf16.mxu1 %v6407_v26  ;;  %v5404_v45 = vrot.slane %v5261_v53, 5  ;;  %v4446_v3 = vld [vmem:[%s7930_s16 + $0x98] sm:$0x1] }
 0x15b   : > { %9117 = vst [vmem:[#allocation7_spill] sm:$0xff] %v8596_v10  ;;  %v4743_v56 = vsel %vm7403_vm4, %v4738_v58, %v4742_v60  ;;  %v1456_v8 = vadd.f32 %v1424_v4, %v8487_v36  ;;  %v8613_v20 = vadd.f32 %v8456_v24, %v1455_v57  ;;  %v5402_v13 = vsel %vm7423_vm5, %v6432_v37, %v5401_v16  ;;  %v4447_v24 = vld [vmem:[%s7930_s16 + $0x9c] sm:$0xf]  ;;  %v8624_v57 = vpop.f32.mrf.mxu1  ;;  %v8626_v21 = vpop.f32.mrf.mxu0  ;;  %v4448_v58 = vld [vmem:[%s7930_s16 + $0xa0] sm:$0xf] }
 0x15c   : > { %v6408_v34 = vcombine.low %v4733_v61, %v4743_v56  ;;  %v5398_v50 = vsel %vm7423_vm5, %v5396_v0, %v5397_v44  ;;  %v5403_v17 = vrot.slane %v5401_v16, 4  ;;  %v4745_v33 = vshrl.u32 %v4444_v42, 16  ;;  %v4449_v37 = vld [vmem:[%s7930_s16 + $0xa4] sm:$0x1]  ;;  %v5266_v10 = vld [vmem:[%s7930_s16 + $0xa0] sm:$0xf] }
 0x15d   : > { %9118 = vst [vmem:[#allocation8_spill] sm:$0xff] %v8613_v20  ;;  %v6463_v60 = vcombine.low %v5395_v46, %v5398_v50  ;;  %v4748_v2 = vshll.u32 %v4444_v42, 16  ;;  %v4754_v36 = vshll.u32 %v4445_v29, 16  ;;  %v4758_v44 = vshrl.u32 %v4445_v29, 16  ;;  %v8633_v16 = vpop.f32.mrf.mxu1  ;;  %v8635_v42 = vpop.f32.mrf.mxu0 }
 0x15e   : > { %7068 = vmatmul.mubr.bf16.gmra.mxu1 %v6408_v34  ;;  %v5405_v48 = vsel %vm7423_vm5, %v5403_v17, %v5404_v45  ;;  %v4764_v53 = vshll.u32 %v4446_v3, 16  ;;  %v1461_v26 = vadd.f32 %v8498_v62, %v1429_v9  ;;  %v4747_v61 = vrot.slane %v4745_v33, 4 }
 0x15f   : > { %7115 = vmatprep.mubr.bf16.mxu0 %v6463_v60  ;;  %v6464_v4 = vcombine.low %v5402_v13, %v5405_v48  ;;  %v4750_v46 = vrot.slane %v4748_v2, 5  ;;  %v4756_v0 = vrot.slane %v4754_v36, 5  ;;  %v4760_v56 = vrot.slane %v4758_v44, 4  ;;  %v1427_v13 = vld [vmem:[%s7998_s6 + $0xc0] sm:$0xff]  ;;  %v8638_v60 = vpop.f32.mrf.mxu1  ;;  %v8640_v33 = vpop.f32.mrf.mxu0  ;;  %v5263_v44 = vld [vmem:[%s7930_s16 + $0x94] sm:$0xf] }
 0x160   : > { %v4766_v34 = vrot.slane %v4764_v53, 5  ;;  %v4769_v29 = vshrl.u32 %v4447_v24, 16  ;;  %v4772_v45 = vshll.u32 %v4447_v24, 16  ;;  %v4778_v3 = vshll.u32 %v4448_v58, 16  ;;  %v5262_v24 = vld [vmem:[%s7930_s16 + $0x90] sm:$0xe] }
 0x161   : > { %7116 = vmatmul.mubr.bf16.gmra.mxu0 %v6464_v4  ;;  %v4751_v62 = vor.u32 %v4750_v46, %v4747_v61  ;;  %v4782_v50 = vshrl.u32 %v4448_v58, 16  ;;  %v4788_v17 = vshll.u32 %v4449_v37, 16  ;;  %v4761_v2 = vor.u32 %v4760_v56, %v4756_v0  ;;  %v5264_v61 = vld [vmem:[%s7930_s16 + $0x98] sm:$0x1]  ;;  %v8649_v46 = vpop.f32.mrf.mxu1  ;;  %v8651_v20 = vpop.f32.mrf.mxu0 }
 0x162   : > { %v4771_v36 = vrot.slane %v4769_v29, 4  ;;  %v4774_v9 = vrot.slane %v4772_v45, 5  ;;  %v8644_v48 = vadd.f32 %v8474_v14, %v8587_v39  ;;  %v4780_v4 = vrot.slane %v4778_v3, 5  ;;  %v1430_v39 = vld [vmem:[%s7998_s6 + $0xd8] sm:$0xff] }
 0x163   : > { %v4752_v53 = vrot.slane %v4751_v62, 4  ;;  %v4784_v58 = vrot.slane %v4782_v50, 4  ;;  %v4790_v37 = vrot.slane %v4788_v17, 5  ;;  %v4762_v56 = vrot.slane %v4761_v2, 4  ;;  %v8665_v2 = vpop.f32.mrf.mxu1 }
 0x164   : > { %9119 = vst [vmem:[#allocation9_spill] sm:$0xff] %v8644_v48  ;;  %v4775_v29 = vor.u32 %v4774_v9, %v4771_v36  ;;  %v1459_v45 = vadd.f32 %v1427_v13, %v8509_v5  ;;  %v8655_v14 = vadd.f32 %v8489_v41, %v1456_v8  ;;  %v5265_v48 = vld [vmem:[%s7930_s16 + $0x9c] sm:$0xe]  ;;  %v8662_v50 = vadd.f32 %v8522_v32, %v1430_v39  ;;  %v5267_v36 = vld [vmem:[%s7930_s16 + $0xa4] sm:$0x1] }
 0x165   : > { %v4757_v62 = vsel %vm7403_vm4, %v4752_v53, %v4756_v0  ;;  %v4785_v3 = vor.u32 %v4784_v58, %v4780_v4  ;;  %v6433_v17 = vrot.slane %v5262_v24, 9  ;;  %v4767_v5 = vsel %vm7403_vm4, %v4762_v56, %v4766_v34  ;;  %v1428_v24 = vld [vmem:[%s7998_s6 + $0xc8] sm:$0xff]  ;;  %v8674_v53 = vpop.f32.mrf.mxu0  ;;  %v8676_v58 = vpop.f32.mrf.mxu1 }
 0x166   : > { %9120 = vst [vmem:[#allocation10_spill] sm:$0xff] %v8655_v14  ;;  %v4776_v41 = vrot.slane %v4775_v29, 4  ;;  %v5408_v8 = vrot.slane %v5263_v44, 5  ;;  %v5411_v13 = vrot.slane %v5264_v61, 5  ;;  %v6409_v9 = vcombine.low %v4757_v62, %v4767_v5  ;;  %v4450_v29 = vld [vmem:[%s7930_s16 + $0xa8] sm:$0xf] }
 0x167   : > { %v4786_v14 = vrot.slane %v4785_v3, 4  ;;  %v8671_v0 = vadd.f32 %v8501_v63, %v1461_v26  ;;  %v6434_v32 = vrot.slane %v5265_v48, 9  ;;  %v5415_v56 = vrot.slane %v5266_v10, 5  ;;  %v4451_v39 = vld [vmem:[%s7930_s16 + $0xac] sm:$0xf]  ;;  %v8691_v3 = vpop.f32.mrf.mxu0 }
 0x168   : > { %v4781_v34 = vsel %vm7403_vm4, %v4776_v41, %v4780_v4  ;;  %v5409_v44 = vsel %vm7423_vm5, %v6433_v17, %v5408_v8  ;;  %v5410_v61 = vrot.slane %v5408_v8, 4  ;;  %7071 = vmatprep.mubr.bf16.mxu1 %v6409_v9  ;;  %v5418_v26 = vrot.slane %v5267_v36, 5  ;;  %v4452_v4 = vld [vmem:[%s7930_s16 + $0xb0] sm:$0x1]  ;;  %v8693_v17 = vpop.f32.mrf.mxu1  ;;  %v4453_v36 = vld [vmem:[%s7930_s16 + $0xb4] sm:$0xf] }
 0x169   : > { %9121 = vst [vmem:[#allocation11_spill] sm:$0xff] %v8671_v0  ;;  %v4791_v63 = vsel %vm7403_vm4, %v4786_v14, %v4790_v37  ;;  %v1460_v48 = vadd.f32 %v1428_v24, %v8543_v31  ;;  %v8688_v62 = vadd.f32 %v8517_v52, %v1459_v45  ;;  %v5416_v37 = vsel %vm7423_vm5, %v6434_v32, %v5415_v56  ;;  %v1433_v45 = vld [vmem:[%s7998_s6 + $0xf0] sm:$0xff]  ;;  %v8701_v9 = vpop.f32.mrf.mxu0 }
 0x16a   : > { %v6410_v10 = vcombine.low %v4781_v34, %v4791_v63  ;;  %v5412_v5 = vsel %vm7423_vm5, %v5410_v61, %v5411_v13  ;;  %v5417_v14 = vrot.slane %v5415_v56, 4  ;;  %v4793_v31 = vshrl.u32 %v4450_v29, 16  ;;  %v8703_v24 = vpop.f32.mrf.mxu1  ;;  %v4454_v63 = vld [vmem:[%s7930_s16 + $0xb8] sm:$0xf]  ;;  %v4455_v56 = vld [vmem:[%s7930_s16 + $0xbc] sm:$0x1] }
 0x16b   : > { %9122 = vst [vmem:[#allocation12_spill] sm:$0xff] %v8688_v62  ;;  %v6465_v41 = vcombine.low %v5409_v44, %v5412_v5  ;;  %v4796_v8 = vshll.u32 %v4450_v29, 16  ;;  %v4802_v52 = vshll.u32 %v4451_v39, 16  ;;  %v4806_v34 = vshrl.u32 %v4451_v39, 16  ;;  %v8710_v0 = vpop.f32.mrf.mxu0 }
 0x16c   : > { %7072 = vmatmul.mubr.bf16.gmra.mxu1 %v6410_v10  ;;  %v5419_v13 = vsel %vm7423_vm5, %v5417_v14, %v5418_v26  ;;  %v4812_v61 = vshll.u32 %v4452_v4, 16  ;;  %v1465_v32 = vadd.f32 %v8558_v28, %v1433_v45  ;;  %v4795_v29 = vrot.slane %v4793_v31, 4  ;;  %v8712_v23 = vpop.f32.mrf.mxu1 }
 0x16d   : > { %7119 = vmatprep.mubr.bf16.mxu0 %v6465_v41  ;;  %v6466_v44 = vcombine.low %v5416_v37, %v5419_v13  ;;  %v4798_v5 = vrot.slane %v4796_v8, 5  ;;  %v4804_v62 = vrot.slane %v4802_v52, 5  ;;  %v4808_v10 = vrot.slane %v4806_v34, 4  ;;  %v1431_v37 = vld [vmem:[%s7998_s6 + $0xe0] sm:$0xff] }
 0x16e   : > { %v4814_v26 = vrot.slane %v4812_v61, 5  ;;  %v4817_v39 = vshrl.u32 %v4453_v36, 16  ;;  %v4820_v4 = vshll.u32 %v4453_v36, 16  ;;  %v4826_v14 = vshll.u32 %v4454_v63, 16  ;;  %v8715_v31 = vpop.f32.mrf.mxu1  ;;  %v5268_v61 = vld [vmem:[%s7930_s16 + $0xa8] sm:$0xe]  ;;  %v8724_v7 = vpop.f32.mrf.mxu0 }
 0x16f   : > { %7120 = vmatmul.mubr.bf16.gmra.mxu0 %v6466_v44  ;;  %v4799_v28 = vor.u32 %v4798_v5, %v4795_v29  ;;  %v4830_v41 = vshrl.u32 %v4454_v63, 16  ;;  %v4836_v45 = vshll.u32 %v4455_v56, 16  ;;  %v4809_v8 = vor.u32 %v4808_v10, %v4804_v62  ;;  %v5269_v36 = vld [vmem:[%s7930_s16 + $0xac] sm:$0xf]  ;;  %v5270_v56 = vld [vmem:[%s7930_s16 + $0xb0] sm:$0x1] }
 0x170   : > { %v4819_v52 = vrot.slane %v4817_v39, 4  ;;  %v4822_v13 = vrot.slane %v4820_v4, 5  ;;  %v8719_v34 = vadd.f32 %v8528_v18, %v8662_v50  ;;  %v4828_v29 = vrot.slane %v4826_v14, 5  ;;  %v8726_v40 = vpop.f32.mrf.mxu1  ;;  %v1434_v50 = vld [vmem:[%s7998_s6 + $0xf8] sm:$0xff]  ;;  %v8738_v49 = vpop.f32.mrf.mxu0 }
 0x171   : > { %v4800_v44 = vrot.slane %v4799_v28, 4  ;;  %v4832_v5 = vrot.slane %v4830_v41, 4  ;;  %v4838_v63 = vrot.slane %v4836_v45, 5  ;;  %v4810_v10 = vrot.slane %v4809_v8, 4 }
 0x172   : > { %9123 = vst [vmem:[#allocation13_spill] sm:$0xff] %v8719_v34  ;;  %v4823_v39 = vor.u32 %v4822_v13, %v4819_v52  ;;  %v1463_v4 = vadd.f32 %v1431_v37, %v8563_v15  ;;  %v8730_v18 = vadd.f32 %v8549_v30, %v1460_v48  ;;  %v5271_v34 = vld [vmem:[%s7930_s16 + $0xb4] sm:$0xe]  ;;  %v1466_v41 = vadd.f32 %v8574_v54, %v1434_v50  ;;  %v8740_v8 = vpop.f32.mrf.mxu1  ;;  %v5273_v52 = vld [vmem:[%s7930_s16 + $0xbc] sm:$0x1] }
 0x173   : > { %v4805_v28 = vsel %vm7403_vm4, %v4800_v44, %v4804_v62  ;;  %v4833_v14 = vor.u32 %v4832_v5, %v4828_v29  ;;  %v6435_v45 = vrot.slane %v5268_v61, 9  ;;  %v4815_v15 = vsel %vm7403_vm4, %v4810_v10, %v4814_v26  ;;  %v8748_v61 = vpop.f32.mrf.mxu0  ;;  %v1432_v10 = vld [vmem:[%s7998_s6 + $0xe8] sm:$0xff] }
 0x174   : > { %9124 = vst [vmem:[#allocation14_spill] sm:$0xff] %v8730_v18  ;;  %v4824_v30 = vrot.slane %v4823_v39, 4  ;;  %v5422_v48 = vrot.slane %v5269_v36, 5  ;;  %v5425_v37 = vrot.slane %v5270_v56, 5  ;;  %v6411_v13 = vcombine.low %v4805_v28, %v4815_v15  ;;  %v8750_v44 = vpop.f32.mrf.mxu1 }
 0x175   : > { %v4834_v18 = vrot.slane %v4833_v14, 4  ;;  %v8746_v62 = vadd.f32 %v8560_v47, %v1465_v32  ;;  %v6436_v54 = vrot.slane %v5271_v34, 9  ;;  %v5429_v56 = vrot.slane %v5272_v27, 5 }
 0x176   : > { %v4829_v5 = vsel %vm7403_vm4, %v4824_v30, %v4828_v29  ;;  %v5423_v26 = vsel %vm7423_vm5, %v6435_v45, %v5422_v48  ;;  %v5424_v36 = vrot.slane %v5422_v48, 4  ;;  %7075 = vmatprep.mubr.bf16.mxu1 %v6411_v13  ;;  %v5432_v32 = vrot.slane %v5273_v52, 5  ;;  %v3176_v29 = vpop.f32.mrf.mxu0  ;;  %v2374_v50 = vpop.f32.mrf.mxu1  ;;  %v2451_v30 = vld [vmem:[%s7998_s6 + $0x8] sm:$0xff] }
 0x177   : > { %v4839_v47 = vsel %vm7403_vm4, %v4834_v18, %v4838_v63  ;;  %v1464_v34 = vadd.f32 %v1432_v10, %v8590_v43  ;;  %v8761_v39 = vadd.f32 %v8571_v1, %v1463_v4  ;;  %v5430_v27 = vsel %vm7423_vm5, %v6436_v54, %v5429_v56  ;;  %v2452_v63 = vld [vmem:[%s7998_s6 + $0x10] sm:$0xff]  ;;  %v2450_v18 = vld [vmem:[%s7998_s6] sm:$0xff]  ;;  %v2453_v4 = vld [vmem:[%s7998_s6 + $0x18] sm:$0xff] }
 0x178   : > { %v6412_v28 = vcombine.low %v4829_v5, %v4839_v47  ;;  %v5426_v14 = vsel %vm7423_vm5, %v5424_v36, %v5425_v37  ;;  %v5431_v51 = vrot.slane %v5429_v56, 4  ;;  %v2484_v15 = vadd.f32 %v8599_v35, %v2452_v63  ;;  %v6873_v48 = vpop.f32.mrf.mxu1  ;;  %v2456_v35 = vld [vmem:[%s7998_s6 + $0x30] sm:$0xff]  ;;  %v2457_v5 = vld [vmem:[%s7998_s6 + $0x38] sm:$0xff]  ;;  %v2455_v10 = vld [vmem:[%s7998_s6 + $0x28] sm:$0xff] }
 0x179   : > { %v6467_v45 = vcombine.low %v5423_v26, %v5426_v14  ;;  %v8771_v43 = vadd.f32 %v8582_v19, %v1466_v41  ;;  %v2482_v1 = vadd.f32 %v2450_v18, %v8616_v12  ;;  %v8779_v52 = vadd.f32 %v8601_v25, %v1464_v34  ;;  %v2454_v25 = vld [vmem:[%s7998_s6 + $0x20] sm:$0xff]  ;;  %v6917_v26 = vpop.f32.mrf.mxu0  ;;  %v2460_v47 = vld [vmem:[%s7998_s6 + $0x50] sm:$0xff] }
 0x17a   : > { %7076 = vmatmul.mubr.bf16.gmra.mxu1 %v6412_v28  ;;  %v5433_v37 = vsel %vm7423_vm5, %v5431_v51, %v5432_v32  ;;  %v2485_v13 = vadd.f32 %v8624_v57, %v2453_v4  ;;  %v2483_v19 = vadd.f32 %v2451_v30, %v8633_v16  ;;  %v8785_v41 = vadd.f32 %v8626_v21, %v2484_v15  ;;  %v2387_v57 = vpop.f32.mrf.mxu1 }
 0x17b   : > { %7123 = vmatprep.mubr.bf16.mxu0 %v6467_v45  ;;  %v6468_v12 = vcombine.low %v5430_v27, %v5433_v37  ;;  %v8788_v54 = vadd.f32 %v8635_v42, %v2482_v1  ;;  %v2488_v6 = vadd.f32 %v8638_v60, %v2456_v35  ;;  %v2486_v16 = vadd.f32 %v2454_v25, %v8649_v46  ;;  %v2458_v42 = vld [vmem:[%s7998_s6 + $0x40] sm:$0xff]  ;;  %v3189_v28 = vpop.f32.mrf.mxu0 }
 0x17c   : > { %v8794_v36 = vadd.f32 %v8640_v33, %v2485_v13  ;;  %v8798_v56 = vadd.f32 %v8651_v20, %v2483_v19  ;;  %v2489_v21 = vadd.f32 %v8665_v2, %v2457_v5  ;;  %v2487_v32 = vadd.f32 %v2455_v10, %v8676_v58  ;;  %v6874_v46 = vpop.f32.mrf.mxu1 }
 0x17d   : > { %7124 = vmatmul.mubr.bf16.gmra.mxu0 %v6468_v12  ;;  %v8805_v60 = vadd.f32 %v8674_v53, %v2488_v6  ;;  %v2492_v34 = vadd.f32 %v8693_v17, %v2460_v47  ;;  %v2490_v33 = vadd.f32 %v2458_v42, %v8703_v24  ;;  %v8811_v20 = vadd.f32 %v8691_v3, %v2486_v16  ;;  %v9133_v6 = vld [vmem:[#allocation9_spill] sm:$0xff]  ;;  %v9134_v16 = vld [vmem:[#allocation10_spill] sm:$0xff] }
 0x17e   : > { %v8814_v2 = vadd.f32 %v8701_v9, %v2489_v21  ;;  %v2493_v14 = vadd.f32 %v8712_v23, %v8426_v38  ;;  %v2491_v53 = vadd.f32 %v8715_v31, %v8436_v59  ;;  %v8821_v58 = vadd.f32 %v8710_v0, %v2487_v32  ;;  %v6918_v9 = vpop.f32.mrf.mxu0  ;;  %v2390_v27 = vpop.f32.mrf.mxu1  ;;  %v9127_v31 = vld [vmem:[#allocation3_spill] sm:$0xff] }
 0x17f   : > { %v8824_v17 = vadd.f32 %v8724_v7, %v2492_v34  ;;  %v8827_v24 = vadd.f32 %v8738_v49, %v2490_v33  ;;  %v2496_v3 = vadd.f32 %v8726_v40, %v8454_v55  ;;  %v2494_v38 = vadd.f32 %v8740_v8, %v8471_v11  ;;  %v9126_v49 = vld [vmem:[#allocation2_spill] sm:$0xff]  ;;  %v9128_v55 = vld [vmem:[#allocation4_spill] sm:$0xff]  ;;  %v9129_v11 = vld [vmem:[#allocation5_spill] sm:$0xff] }
 0x180   : > { %v8832_v51 = vadd.f32 %v8748_v61, %v2493_v14  ;;  %v8836_v59 = vadd.f32 %v3176_v29, %v2491_v53  ;;  %v2497_v7 = vadd.f32 %v8750_v44, %v8494_v22  ;;  %v2495_v0 = vadd.f32 %v2374_v50, %v9126_v49  ;;  %v3192_v18 = vpop.f32.mrf.mxu0  ;;  %v6877_v45 = vpop.f32.mrf.mxu1  ;;  %v9130_v29 = vld [vmem:[#allocation6_spill] sm:$0xff]  ;;  %v9131_v44 = vld [vmem:[#allocation7_spill] sm:$0xff] }
 0x181   : > { %v8840_v23 = vadd.f32 %v6917_v26, %v2496_v3  ;;  %v2500_v63 = vadd.f32 %v6873_v48, %v9127_v31  ;;  %v2498_v40 = vadd.f32 %v2387_v57, %v9128_v55  ;;  %v8845_v61 = vadd.f32 %v3189_v28, %v2494_v38  ;;  %v9132_v48 = vld [vmem:[#allocation8_spill] sm:$0xff]  ;;  %v9135_v32 = vld [vmem:[#allocation11_spill] sm:$0xff] }
 0x182   : > { %9125 = vst [vmem:[#allocation15_spill] sm:$0xff] %v8836_v59  ;;  %v8847_v15 = vadd.f32 %v6918_v9, %v2497_v7  ;;  %v2501_v8 = vadd.f32 %v6874_v46, %v9129_v11  ;;  %v2499_v1 = vadd.f32 %v2390_v27, %v9130_v29  ;;  %v8851_v4 = vadd.f32 %v3192_v18, %v2495_v0  ;;  %v6921_v22 = vpop.f32.mrf.mxu0  ;;  %v2403_v50 = vpop.f32.mrf.mxu1  ;;  %v9136_v28 = vld [vmem:[#allocation12_spill] sm:$0xff]  ;;  %v9137_v9 = vld [vmem:[#allocation13_spill] sm:$0xff]  ;;  %v9138_v0 = vld [vmem:[#allocation14_spill] sm:$0xff] }
 0x183   : > { %v2504_v30 = vadd.f32 %v6877_v45, %v9131_v44  ;;  %v8854_v37 = vadd.f32 %v6921_v22, %v2500_v63  ;;  %v2502_v13 = vadd.f32 %v2403_v50, %v9132_v48 }
 0x184   : > { %v3205_v19 = vpop.f32.mrf.mxu0  ;;  %v6878_v35 = vpop.f32.mrf.mxu1 }
 0x185   : > { %v8857_v12 = vadd.f32 %v3205_v19, %v2498_v40  ;;  %v2505_v25 = vadd.f32 %v6878_v35, %v9133_v6 }
 0x186   : > { %v6922_v5 = vpop.f32.mrf.mxu0  ;;  %v2406_v26 = vpop.f32.mrf.mxu1 }
 0x187   : > { %v8860_v57 = vadd.f32 %v6922_v5, %v2501_v8  ;;  %v2503_v21 = vadd.f32 %v2406_v26, %v9134_v16 }
 0x188   : > { %v3208_v10 = vpop.f32.mrf.mxu0  ;;  %v6881_v47 = vpop.f32.mrf.mxu1 }
 0x189   : > { %v8863_v42 = vadd.f32 %v3208_v10, %v2499_v1  ;;  %v2508_v34 = vadd.f32 %v6881_v47, %v9135_v32 }
 0x18a   : > { %v2419_v33 = vpop.f32.mrf.mxu1  ;;  %v6925_v14 = vpop.f32.mrf.mxu0 }
 0x18b   : > { %v2506_v46 = vadd.f32 %v2419_v33, %v9136_v28  ;;  %v8867_v3 = vadd.f32 %v6925_v14, %v2504_v30 }
 0x18c   : > { %v6882_v53 = vpop.f32.mrf.mxu1  ;;  %v3221_v38 = vpop.f32.mrf.mxu0 }
 0x18d   : > { %v2509_v27 = vadd.f32 %v6882_v53, %v9137_v9  ;;  %v8870_v49 = vadd.f32 %v3221_v38, %v2502_v13 }
 0x18e   : > { %v2422_v7 = vpop.f32.mrf.mxu1  ;;  %v6926_v63 = vpop.f32.mrf.mxu0 }
 0x18f   : > { %v2507_v31 = vadd.f32 %v2422_v7, %v9138_v0  ;;  %v8873_v40 = vadd.f32 %v6926_v63, %v2505_v25 }
 0x190   : > { %v6885_v55 = vpop.f32.mrf.mxu1  ;;  %v3224_v45 = vpop.f32.mrf.mxu0 }
 0x191   : > { %v2512_v18 = vadd.f32 %v6885_v55, %v8746_v62  ;;  %v8876_v8 = vadd.f32 %v3224_v45, %v2503_v21 }
 0x192   : > { %v2435_v11 = vpop.f32.mrf.mxu1  ;;  %v6929_v44 = vpop.f32.mrf.mxu0 }
 0x193   : > { %v2510_v29 = vadd.f32 %v2435_v11, %v8761_v39  ;;  %v8880_v50 = vadd.f32 %v6929_v44, %v2508_v34 }
 0x194   : > { %v6886_v1 = vpop.f32.mrf.mxu1  ;;  %v3237_v13 = vpop.f32.mrf.mxu0 }
 0x195   : > { %v2513_v22 = vadd.f32 %v6886_v1, %v8771_v43  ;;  %v8883_v19 = vadd.f32 %v3237_v13, %v2506_v46 }
 0x196   : > { %v2438_v30 = vpop.f32.mrf.mxu1  ;;  %v6930_v35 = vpop.f32.mrf.mxu0 }
 0x197   : > { %v2511_v48 = vadd.f32 %v2438_v30, %v8779_v52  ;;  %v8885_v62 = vadd.f32 %v6930_v35, %v2509_v27 }
 0x198   : > { %v3240_v6 = vpop.f32.mrf.mxu0  ;;  %v8891_v43 = vpop.f32.mrf.mxu1 }
 0x199   : > { %v8887_v25 = vadd.f32 %v3240_v6, %v2507_v31 }
 0x19a   : > { %v6933_v5 = vpop.f32.mrf.mxu0  ;;  %v8895_v10 = vpop.f32.mrf.mxu1 }
 0x19b   : > { %v8889_v39 = vadd.f32 %v6933_v5, %v2512_v18 }
 0x19c   : > { %v3253_v26 = vpop.f32.mrf.mxu0  ;;  %v8899_v32 = vpop.f32.mrf.mxu1 }
 0x19d   : > { %v8893_v16 = vadd.f32 %v3253_v26, %v2510_v29 }
 0x19e   : > { %v6934_v21 = vpop.f32.mrf.mxu0  ;;  %v8905_v28 = vpop.f32.mrf.mxu1 }
 0x19f   : > { %v8897_v52 = vadd.f32 %v6934_v21, %v2513_v22 }
 0x1a0   : > { %v3256_v47 = vpop.f32.mrf.mxu0 }
 0x1a1   : > { %v8901_v34 = vadd.f32 %v3256_v47, %v2511_v48  ;;  %v8909_v14 = vpop.f32.mrf.mxu1 }
 0x1a2   : > { %v8903_v33 = vpop.f32.mrf.mxu0 }
 0x1a3   : > { %v8913_v9 = vpop.f32.mrf.mxu1 }
 0x1a4   : > { %v8907_v46 = vpop.f32.mrf.mxu0 }
 0x1a5   : > { %v8917_v38 = vpop.f32.mrf.mxu1 }
 0x1a6   : > { %v8911_v53 = vpop.f32.mrf.mxu0 }
 0x1a7   : > { %v8921_v0 = vpop.f32.mrf.mxu1 }
 0x1a8   : > { %v8915_v27 = vpop.f32.mrf.mxu0 }
 0x1a9   : > { %v8925_v63 = vpop.f32.mrf.mxu1 }
 0x1aa   : > { %v8919_v7 = vpop.f32.mrf.mxu0 }
 0x1ab   : > { %v8929_v18 = vpop.f32.mrf.mxu1 }
 0x1ac   : > { %v8923_v31 = vpop.f32.mrf.mxu0 }
 0x1ad   : > { %v8933_v11 = vpop.f32.mrf.mxu1 }
 0x1ae   : > { %v8927_v55 = vpop.f32.mrf.mxu0  ;;  %9139 = vst [vmem:[#allocation2_spill] sm:$0xff] %v8933_v11 }
 0x1af   : > { %v8937_v1 = vpop.f32.mrf.mxu1 }
 0x1b0   : > { %v8931_v45 = vpop.f32.mrf.mxu0  ;;  %9141 = vst [vmem:[#allocation4_spill] sm:$0xff] %v8937_v1 }
 0x1b1   : > { %v6965_v44 = vpop.f32.mrf.mxu1 }
 0x1b2   : > { %v8935_v29 = vpop.f32.mrf.mxu0  ;;  %v3908_v30 = vadd.f32 %v6965_v44, %v8840_v23 }
 0x1b3   : > { %9140 = vst [vmem:[#allocation3_spill] sm:$0xff] %v8935_v29  ;;  %v3783_v13 = vpop.f32.mrf.mxu1 }
 0x1b4   : > { %v8939_v22 = vpop.f32.mrf.mxu0  ;;  %v3906_v35 = vadd.f32 %v3783_v13, %v8845_v61 }
 0x1b5   : > { %9142 = vst [vmem:[#allocation5_spill] sm:$0xff] %v8939_v22  ;;  %v6966_v5 = vpop.f32.mrf.mxu1 }
 0x1b6   : > { %v8942_v48 = vpop.f32.mrf.mxu0  ;;  %v3909_v26 = vadd.f32 %v6966_v5, %v8847_v15 }
 0x1b7   : > { %9143 = vst [vmem:[#allocation6_spill] sm:$0xff] %v8942_v48  ;;  %v3786_v47 = vpop.f32.mrf.mxu1 }
 0x1b8   : > { %v8945_v6 = vpop.f32.mrf.mxu0  ;;  %v3907_v1 = vadd.f32 %v3786_v47, %v8851_v4 }
 0x1b9   : > { %9144 = vst [vmem:[#allocation7_spill] sm:$0xff] %v8945_v6  ;;  %v6969_v29 = vpop.f32.mrf.mxu1 }
 0x1ba   : > { %v7013_v21 = vpop.f32.mrf.mxu0  ;;  %v3912_v23 = vadd.f32 %v6969_v29, %v8854_v37 }
 0x1bb   : > { %v8948_v59 = vadd.f32 %v7013_v21, %v3908_v30  ;;  %v3799_v48 = vpop.f32.mrf.mxu1 }
 0x1bc   : > { %v4233_v22 = vpop.f32.mrf.mxu0  ;;  %v3910_v13 = vadd.f32 %v3799_v48, %v8857_v12 }
 0x1bd   : > { %v8951_v11 = vadd.f32 %v4233_v22, %v3906_v35  ;;  %v6970_v15 = vpop.f32.mrf.mxu1 }
 0x1be   : > { %v7014_v44 = vpop.f32.mrf.mxu0  ;;  %v3913_v30 = vadd.f32 %v6970_v15, %v8860_v57 }
 0x1bf   : > { %v8954_v61 = vadd.f32 %v7014_v44, %v3909_v26  ;;  %v3802_v4 = vpop.f32.mrf.mxu1 }
 0x1c0   : > { %v4236_v6 = vpop.f32.mrf.mxu0  ;;  %v3911_v22 = vadd.f32 %v3802_v4, %v8863_v42 }
 0x1c1   : > { %v8957_v5 = vadd.f32 %v4236_v6, %v3907_v1  ;;  %v6973_v37 = vpop.f32.mrf.mxu1 }
 0x1c2   : > { %v7017_v21 = vpop.f32.mrf.mxu0  ;;  %v3916_v26 = vadd.f32 %v6973_v37, %v8867_v3 }
 0x1c3   : > { %v8960_v47 = vadd.f32 %v7017_v21, %v3912_v23  ;;  %v3815_v12 = vpop.f32.mrf.mxu1 }
 0x1c4   : > { %v4249_v35 = vpop.f32.mrf.mxu0  ;;  %v3914_v1 = vadd.f32 %v3815_v12, %v8870_v49 }
 0x1c5   : > { %v8963_v29 = vadd.f32 %v4249_v35, %v3910_v13  ;;  %v6974_v57 = vpop.f32.mrf.mxu1 }
 0x1c6   : > { %v7018_v44 = vpop.f32.mrf.mxu0  ;;  %v3917_v23 = vadd.f32 %v6974_v57, %v8873_v40 }
 0x1c7   : > { %v8966_v48 = vadd.f32 %v7018_v44, %v3913_v30  ;;  %v3818_v42 = vpop.f32.mrf.mxu1 }
 0x1c8   : > { %v4252_v6 = vpop.f32.mrf.mxu0  ;;  %v3915_v13 = vadd.f32 %v3818_v42, %v8876_v8 }
 0x1c9   : > { %v8969_v15 = vadd.f32 %v4252_v6, %v3911_v22  ;;  %v6977_v3 = vpop.f32.mrf.mxu1 }
 0x1ca   : > { %v7021_v21 = vpop.f32.mrf.mxu0  ;;  %v3920_v30 = vadd.f32 %v6977_v3, %v8880_v50 }
 0x1cb   : > { %v8972_v4 = vadd.f32 %v7021_v21, %v3916_v26  ;;  %v3831_v49 = vpop.f32.mrf.mxu1 }
 0x1cc   : > { %v4265_v35 = vpop.f32.mrf.mxu0  ;;  %v3918_v22 = vadd.f32 %v3831_v49, %v8883_v19 }
 0x1cd   : > { %v8975_v37 = vadd.f32 %v4265_v35, %v3914_v1  ;;  %v6978_v40 = vpop.f32.mrf.mxu1 }
 0x1ce   : > { %v7022_v44 = vpop.f32.mrf.mxu0  ;;  %v3921_v26 = vadd.f32 %v6978_v40, %v8885_v62 }
 0x1cf   : > { %v8978_v12 = vadd.f32 %v7022_v44, %v3917_v23  ;;  %v3834_v8 = vpop.f32.mrf.mxu1 }
 0x1d0   : > { %v4268_v6 = vpop.f32.mrf.mxu0  ;;  %v3919_v1 = vadd.f32 %v3834_v8, %v8887_v25 }
 0x1d1   : > { %v8981_v57 = vadd.f32 %v4268_v6, %v3915_v13  ;;  %v6981_v50 = vpop.f32.mrf.mxu1 }
 0x1d2   : > { %v7025_v21 = vpop.f32.mrf.mxu0  ;;  %v3924_v23 = vadd.f32 %v6981_v50, %v8889_v39  ;;  %v3894_v39 = vadd.f32 %v8895_v10, %v8788_v54  ;;  %v3897_v50 = vadd.f32 %v8899_v32, %v8794_v36  ;;  %v3900_v36 = vadd.f32 %v8909_v14, %v8805_v60 }
 0x1d3   : > { %v8984_v42 = vadd.f32 %v7025_v21, %v3920_v30  ;;  %v3847_v19 = vpop.f32.mrf.mxu1  ;;  %v3896_v30 = vadd.f32 %v8891_v43, %v8785_v41  ;;  %v3901_v60 = vadd.f32 %v8917_v38, %v8814_v2 }
 0x1d4   : > { %v4281_v35 = vpop.f32.mrf.mxu0  ;;  %v3922_v13 = vadd.f32 %v3847_v19, %v8893_v16  ;;  %v4344_v54 = vadd.f32 %v8907_v46, %v3894_v39  ;;  %v4347_v32 = vadd.f32 %v8911_v53, %v3897_v50  ;;  %v4350_v14 = vadd.f32 %v8919_v7, %v3900_v36 }
 0x1d5   : > { %v8987_v3 = vadd.f32 %v4281_v35, %v3918_v22  ;;  %v6982_v62 = vpop.f32.mrf.mxu1  ;;  %v4346_v41 = vadd.f32 %v8903_v33, %v3896_v30  ;;  %v3899_v39 = vadd.f32 %v8921_v0, %v8821_v58  ;;  %v4351_v2 = vadd.f32 %v8927_v55, %v3901_v60 }
 0x1d6   : > { %v7026_v44 = vpop.f32.mrf.mxu0  ;;  %v3925_v25 = vadd.f32 %v6982_v62, %v8897_v52  ;;  %v3902_v55 = vadd.f32 %v8929_v18, %v8827_v24  ;;  %v9147_v18 = vld [vmem:[#allocation15_spill] sm:$0xff] }
 0x1d7   : > { %v8990_v49 = vadd.f32 %v7026_v44, %v3921_v26  ;;  %v3850_v22 = vpop.f32.mrf.mxu1  ;;  %v3895_v44 = vadd.f32 %v8905_v28, %v8798_v56  ;;  %v3898_v56 = vadd.f32 %v8913_v9, %v8811_v20  ;;  %v4349_v58 = vadd.f32 %v8931_v45, %v3899_v39  ;;  %v9145_v45 = vld [vmem:[#allocation2_spill] sm:$0xff] }
 0x1d8   : > { %v4284_v6 = vpop.f32.mrf.mxu0  ;;  %v3923_v26 = vadd.f32 %v3850_v22, %v8901_v34 }
 0x1d9   : > { %v8995_v40 = vadd.f32 %v4284_v6, %v3919_v1  ;;  %v4345_v28 = vadd.f32 %v8915_v27, %v3895_v44  ;;  %v4348_v9 = vadd.f32 %v8923_v31, %v3898_v56 }
 0x1da   : > { %v7029_v21 = vpop.f32.mrf.mxu0  ;;  %v7049_v16 = vpop.f32.mrf.mxu1 }
 0x1db   : > { %v9000_v8 = vadd.f32 %v7029_v21, %v3924_v23  ;;  %v5164_v10 = vadd.f32 %v7049_v16, %v4346_v41  ;;  %v3904_v41 = vadd.f32 %v8925_v63, %v8824_v17 }
 0x1dc   : > { %v4297_v35 = vpop.f32.mrf.mxu0  ;;  %v5003_v52 = vpop.f32.mrf.mxu1 }
 0x1dd   : > { %v9006_v43 = vadd.f32 %v4297_v35, %v3922_v13  ;;  %v5162_v33 = vadd.f32 %v5003_v52, %v4344_v54 }
 0x1de   : > { %v7030_v1 = vpop.f32.mrf.mxu0  ;;  %v7050_v19 = vpop.f32.mrf.mxu1 }
 0x1df   : > { %v9011_v23 = vadd.f32 %v7030_v1, %v3925_v25  ;;  %v5165_v46 = vadd.f32 %v7050_v19, %v4347_v32 }
 0x1e0   : > { %v4300_v34 = vpop.f32.mrf.mxu0  ;;  %v5006_v62 = vpop.f32.mrf.mxu1 }
 0x1e1   : > { %v9016_v13 = vadd.f32 %v4300_v34, %v3923_v26  ;;  %v5163_v53 = vadd.f32 %v5006_v62, %v4345_v28 }
 0x1e2   : > { %v7097_v6 = vpop.f32.mrf.mxu0 }
 0x1e3   : > { %v5758_v30 = vadd.f32 %v7097_v6, %v5164_v10  ;;  %v9146_v6 = vld [vmem:[#allocation3_spill] sm:$0xff] }
 0x1e4   : > { %v5597_v25 = vpop.f32.mrf.mxu0  ;;  %v4354_v62 = vadd.f32 %v9146_v6, %v3904_v41 }
 0x1e5   : > { %5790 = vst [vmem:[%s7998_s6 + $0x10] sm:$0xff] %v5758_v30  ;;  %v5756_v22 = vadd.f32 %v5597_v25, %v5162_v33  ;;  %v5892_v34 = vmul.f32 %v5758_v30, %v5758_v30  ;;  %v3905_v33 = vadd.f32 %v9145_v45, %v8832_v51 }
 0x1e6   : > { %v7053_v21 = vpop.f32.mrf.mxu1  ;;  %v7098_v26 = vpop.f32.mrf.mxu0 }
 0x1e7   : > { %5788 = vst [vmem:[%s7998_s6] sm:$0xff] %v5756_v22  ;;  %v5168_v27 = vadd.f32 %v7053_v21, %v4350_v14  ;;  %v5759_v35 = vadd.f32 %v7098_v26, %v5165_v46  ;;  %v5890_v0 = vmul.f32 %v5756_v22, %v5756_v22  ;;  %v9149_v14 = vld [vmem:[#allocation5_spill] sm:$0xff] }
 0x1e8   : > { %v5019_v20 = vpop.f32.mrf.mxu1  ;;  %v5600_v16 = vpop.f32.mrf.mxu0 }
 0x1e9   : > { %5791 = vst [vmem:[%s7998_s6 + $0x18] sm:$0xff] %v5759_v35  ;;  %v5166_v38 = vadd.f32 %v5019_v20, %v4348_v9  ;;  %v5757_v7 = vadd.f32 %v5600_v16, %v5163_v53  ;;  %v5893_v28 = vmul.f32 %v5759_v35, %v5759_v35  ;;  %v4352_v53 = vadd.f32 %v9149_v14, %v3902_v55  ;;  %v9150_v16 = vld [vmem:[#allocation6_spill] sm:$0xff] }
 0x1ea   : > { %v7054_v50 = vpop.f32.mrf.mxu1  ;;  %v7101_v1 = vpop.f32.mrf.mxu0 }
 0x1eb   : > { %5789 = vst [vmem:[%s7998_s6 + $0x8] sm:$0xff] %v5757_v7  ;;  %v5852_v31 = vadd.f32 %v5757_v7, %v5756_v22  ;;  %v5891_v44 = vmul.f32 %v5757_v7, %v5757_v7  ;;  %v5169_v54 = vadd.f32 %v7054_v50, %v4351_v2  ;;  %v5762_v10 = vadd.f32 %v7101_v1, %v5168_v27  ;;  %v9151_v1 = vld [vmem:[#allocation7_spill] sm:$0xff] }
 0x1ec   : > { %v5022_v52 = vpop.f32.mrf.mxu1  ;;  %v5613_v19 = vpop.f32.mrf.mxu0  ;;  %v4355_v50 = vadd.f32 %v9150_v16, %v3905_v33 }
 0x1ed   : > { %v5853_v36 = vadd.f32 %v5852_v31, %v5758_v30  ;;  %v5922_v32 = vadd.f32 %v5891_v44, %v5890_v0  ;;  %5794 = vst [vmem:[%s7998_s6 + $0x30] sm:$0xff] %v5762_v10  ;;  %v5167_v17 = vadd.f32 %v5022_v52, %v4349_v58  ;;  %v5760_v63 = vadd.f32 %v5613_v19, %v5166_v38  ;;  %v9148_v30 = vld [vmem:[#allocation4_spill] sm:$0xff] }
 0x1ee   : > { %v7102_v56 = vpop.f32.mrf.mxu0  ;;  %v3903_v60 = vadd.f32 %v9148_v30, %v9147_v18 }
 0x1ef   : > { %v5923_v46 = vadd.f32 %v5922_v32, %v5892_v34  ;;  %5792 = vst [vmem:[%s7998_s6 + $0x20] sm:$0xff] %v5760_v63  ;;  %v5854_v25 = vadd.f32 %v5853_v36, %v5759_v35  ;;  %v5763_v24 = vadd.f32 %v7102_v56, %v5169_v54  ;;  %v5894_v51 = vmul.f32 %v5760_v63, %v5760_v63 }
 0x1f0   : > { %v5616_v39 = vpop.f32.mrf.mxu0  ;;  %v4353_v52 = vadd.f32 %v9151_v1, %v3903_v60  ;;  %v5896_v54 = vmul.f32 %v5762_v10, %v5762_v10 }
 0x1f1   : > { %v5855_v26 = vadd.f32 %v5854_v25, %v5760_v63  ;;  %v5924_v20 = vadd.f32 %v5923_v46, %v5893_v28  ;;  %5795 = vst [vmem:[%s7998_s6 + $0x38] sm:$0xff] %v5763_v24  ;;  %v5761_v27 = vadd.f32 %v5616_v39, %v5167_v17  ;;  %v5897_v63 = vmul.f32 %v5763_v24, %v5763_v24 }
 0x1f3   : > { %v5925_v38 = vadd.f32 %v5924_v20, %v5894_v51  ;;  %5793 = vst [vmem:[%s7998_s6 + $0x28] sm:$0xff] %v5761_v27  ;;  %v5856_v7 = vadd.f32 %v5855_v26, %v5761_v27  ;;  %v5895_v41 = vmul.f32 %v5761_v27, %v5761_v27 }
 0x1f4   : > { %v7057_v21 = vpop.f32.mrf.mxu1 }
 0x1f5   : > { %v5172_v22 = vadd.f32 %v7057_v21, %v4354_v62  ;;  %v5857_v55 = vadd.f32 %v5856_v7, %v5762_v10  ;;  %v5926_v34 = vadd.f32 %v5925_v38, %v5895_v41 }
 0x1f6   : > { %v5035_v9 = vpop.f32.mrf.mxu1 }
 0x1f7   : > { %v5170_v35 = vadd.f32 %v5035_v9, %v4352_v53  ;;  %v7105_v2 = vpop.f32.mrf.mxu0  ;;  %v5927_v45 = vadd.f32 %v5926_v34, %v5896_v54  ;;  %v5858_v33 = vadd.f32 %v5857_v55, %v5763_v24 }
 0x1f8   : > { %v7058_v58 = vpop.f32.mrf.mxu1  ;;  %v5766_v0 = vadd.f32 %v7105_v2, %v5172_v22 }
 0x1f9   : > { %v5173_v31 = vadd.f32 %v7058_v58, %v4355_v50  ;;  %v5629_v44 = vpop.f32.mrf.mxu0  ;;  %v5928_v46 = vadd.f32 %v5927_v45, %v5897_v63 }
 0x1fa   : > { %5798 = vst [vmem:[%s7998_s6 + $0x50] sm:$0xff] %v5766_v0  ;;  %v5038_v19 = vpop.f32.mrf.mxu1  ;;  %v5764_v36 = vadd.f32 %v5629_v44, %v5170_v35  ;;  %v5900_v30 = vmul.f32 %v5766_v0, %v5766_v0 }
 0x1fb   : > { %v5171_v32 = vadd.f32 %v5038_v19, %v4353_v52  ;;  %v7106_v17 = vpop.f32.mrf.mxu0 }
 0x1fc   : > { %5796 = vst [vmem:[%s7998_s6 + $0x40] sm:$0xff] %v5764_v36  ;;  %v5767_v6 = vadd.f32 %v7106_v17, %v5173_v31  ;;  %v5859_v56 = vadd.f32 %v5858_v33, %v5764_v36  ;;  %v5898_v28 = vmul.f32 %v5764_v36, %v5764_v36 }
 0x1fd   : > { %v5632_v62 = vpop.f32.mrf.mxu0 }
 0x1fe   : > { %5799 = vst [vmem:[%s7998_s6 + $0x58] sm:$0xff] %v5767_v6  ;;  %v5765_v25 = vadd.f32 %v5632_v62, %v5171_v32  ;;  %v5929_v10 = vadd.f32 %v5928_v46, %v5898_v28  ;;  %v5901_v39 = vmul.f32 %v5767_v6, %v5767_v6 }
 0x200   : > { %5797 = vst [vmem:[%s7998_s6 + $0x48] sm:$0xff] %v5765_v25  ;;  %v5860_v21 = vadd.f32 %v5859_v56, %v5765_v25  ;;  %v5899_v18 = vmul.f32 %v5765_v25, %v5765_v25 }
 0x202   : > { %v7061_v60 = vpop.f32.mrf.mxu1  ;;  %v5861_v14 = vadd.f32 %v5860_v21, %v5766_v0  ;;  %v5930_v53 = vadd.f32 %v5929_v10, %v5899_v18 }
 0x203   : > { %v5176_v22 = vadd.f32 %v7061_v60, %v8948_v59 }
 0x204   : > { %v5051_v24 = vpop.f32.mrf.mxu1  ;;  %v5931_v26 = vadd.f32 %v5930_v53, %v5900_v30  ;;  %v5862_v51 = vadd.f32 %v5861_v14, %v5767_v6 }
 0x205   : > { %v5174_v20 = vadd.f32 %v5051_v24, %v8951_v11  ;;  %v7109_v9 = vpop.f32.mrf.mxu0 }
 0x206   : > { %v7062_v27 = vpop.f32.mrf.mxu1  ;;  %v5770_v16 = vadd.f32 %v7109_v9, %v5176_v22  ;;  %v5932_v50 = vadd.f32 %v5931_v26, %v5901_v39 }
 0x207   : > { %v5177_v35 = vadd.f32 %v7062_v27, %v8954_v61  ;;  %v5645_v2 = vpop.f32.mrf.mxu0 }
 0x208   : > { %5802 = vst [vmem:[%s7998_s6 + $0x70] sm:$0xff] %v5770_v16  ;;  %v5054_v38 = vpop.f32.mrf.mxu1  ;;  %v5768_v7 = vadd.f32 %v5645_v2, %v5174_v20  ;;  %v5904_v55 = vmul.f32 %v5770_v16, %v5770_v16 }
 0x209   : > { %v5175_v59 = vadd.f32 %v5054_v38, %v8957_v5  ;;  %v7110_v41 = vpop.f32.mrf.mxu0 }
 0x20a   : > { %5800 = vst [vmem:[%s7998_s6 + $0x60] sm:$0xff] %v5768_v7  ;;  %v5863_v58 = vadd.f32 %v5862_v51, %v5768_v7  ;;  %v5902_v0 = vmul.f32 %v5768_v7, %v5768_v7  ;;  %v5771_v1 = vadd.f32 %v7110_v41, %v5177_v35 }
 0x20b   : > { %v5648_v11 = vpop.f32.mrf.mxu0 }
 0x20c   : > { %v5933_v52 = vadd.f32 %v5932_v50, %v5902_v0  ;;  %5803 = vst [vmem:[%s7998_s6 + $0x78] sm:$0xff] %v5771_v1  ;;  %v5769_v31 = vadd.f32 %v5648_v11, %v5175_v59  ;;  %v5905_v5 = vmul.f32 %v5771_v1, %v5771_v1 }
 0x20e   : > { %5801 = vst [vmem:[%s7998_s6 + $0x68] sm:$0xff] %v5769_v31  ;;  %v5864_v44 = vadd.f32 %v5863_v58, %v5769_v31  ;;  %v5903_v54 = vmul.f32 %v5769_v31, %v5769_v31 }
 0x210   : > { %v7065_v61 = vpop.f32.mrf.mxu1  ;;  %v5865_v34 = vadd.f32 %v5864_v44, %v5770_v16  ;;  %v5934_v19 = vadd.f32 %v5933_v52, %v5903_v54 }
 0x211   : > { %v5180_v36 = vadd.f32 %v7065_v61, %v8960_v47 }
 0x212   : > { %v5067_v32 = vpop.f32.mrf.mxu1  ;;  %v5935_v17 = vadd.f32 %v5934_v19, %v5904_v55  ;;  %v5866_v63 = vadd.f32 %v5865_v34, %v5771_v1 }
 0x213   : > { %v5178_v45 = vadd.f32 %v5067_v32, %v8963_v29  ;;  %v7113_v33 = vpop.f32.mrf.mxu0 }
 0x214   : > { %v7066_v6 = vpop.f32.mrf.mxu1  ;;  %v5774_v62 = vadd.f32 %v7113_v33, %v5180_v36  ;;  %v5936_v56 = vadd.f32 %v5935_v17, %v5905_v5 }
 0x215   : > { %v5181_v28 = vadd.f32 %v7066_v6, %v8966_v48  ;;  %v5661_v46 = vpop.f32.mrf.mxu0 }
 0x216   : > { %5806 = vst [vmem:[%s7998_s6 + $0x90] sm:$0xff] %v5774_v62  ;;  %v5070_v25 = vpop.f32.mrf.mxu1  ;;  %v5772_v10 = vadd.f32 %v5661_v46, %v5178_v45  ;;  %v5908_v24 = vmul.f32 %v5774_v62, %v5774_v62 }
 0x217   : > { %v5179_v47 = vadd.f32 %v5070_v25, %v8969_v15  ;;  %v7114_v21 = vpop.f32.mrf.mxu0 }
 0x218   : > { %5804 = vst [vmem:[%s7998_s6 + $0x80] sm:$0xff] %v5772_v10  ;;  %v5867_v18 = vadd.f32 %v5866_v63, %v5772_v10  ;;  %v5906_v30 = vmul.f32 %v5772_v10, %v5772_v10  ;;  %v5775_v60 = vadd.f32 %v7114_v21, %v5181_v28 }
 0x219   : > { %v5664_v29 = vpop.f32.mrf.mxu0 }
 0x21a   : > { %v5937_v14 = vadd.f32 %v5936_v56, %v5906_v30  ;;  %5807 = vst [vmem:[%s7998_s6 + $0x98] sm:$0xff] %v5775_v60  ;;  %v5773_v53 = vadd.f32 %v5664_v29, %v5179_v47  ;;  %v5909_v15 = vmul.f32 %v5775_v60, %v5775_v60 }
 0x21c   : > { %5805 = vst [vmem:[%s7998_s6 + $0x88] sm:$0xff] %v5773_v53  ;;  %v5868_v22 = vadd.f32 %v5867_v18, %v5773_v53  ;;  %v5907_v39 = vmul.f32 %v5773_v53, %v5773_v53 }
 0x21e   : > { %v7069_v48 = vpop.f32.mrf.mxu1  ;;  %v5869_v26 = vadd.f32 %v5868_v22, %v5774_v62  ;;  %v5938_v51 = vadd.f32 %v5937_v14, %v5907_v39 }
 0x21f   : > { %v5184_v20 = vadd.f32 %v7069_v48, %v8972_v4 }
 0x220   : > { %v5083_v9 = vpop.f32.mrf.mxu1  ;;  %v5939_v27 = vadd.f32 %v5938_v51, %v5908_v24  ;;  %v5870_v16 = vadd.f32 %v5869_v26, %v5775_v60 }
 0x221   : > { %v5182_v50 = vadd.f32 %v5083_v9, %v8975_v37  ;;  %v7117_v35 = vpop.f32.mrf.mxu0 }
 0x222   : > { %v7070_v2 = vpop.f32.mrf.mxu1  ;;  %v5778_v38 = vadd.f32 %v7117_v35, %v5184_v20  ;;  %v5940_v7 = vadd.f32 %v5939_v27, %v5909_v15 }
 0x223   : > { %v5185_v59 = vadd.f32 %v7070_v2, %v8978_v12  ;;  %v5677_v41 = vpop.f32.mrf.mxu0 }
 0x224   : > { %5810 = vst [vmem:[%s7998_s6 + $0xb0] sm:$0xff] %v5778_v38  ;;  %v5086_v58 = vpop.f32.mrf.mxu1  ;;  %v5776_v0 = vadd.f32 %v5677_v41, %v5182_v50  ;;  %v5912_v34 = vmul.f32 %v5778_v38, %v5778_v38 }
 0x225   : > { %v5183_v4 = vadd.f32 %v5086_v58, %v8981_v57  ;;  %v7118_v1 = vpop.f32.mrf.mxu0 }
 0x226   : > { %5808 = vst [vmem:[%s7998_s6 + $0xa0] sm:$0xff] %v5776_v0  ;;  %v5871_v11 = vadd.f32 %v5870_v16, %v5776_v0  ;;  %v5910_v52 = vmul.f32 %v5776_v0, %v5776_v0  ;;  %v5779_v31 = vadd.f32 %v7118_v1, %v5185_v59 }
 0x227   : > { %v5680_v37 = vpop.f32.mrf.mxu0 }
 0x228   : > { %v5941_v44 = vadd.f32 %v5940_v7, %v5910_v52  ;;  %5811 = vst [vmem:[%s7998_s6 + $0xb8] sm:$0xff] %v5779_v31  ;;  %v5777_v54 = vadd.f32 %v5680_v37, %v5183_v4  ;;  %v5913_v57 = vmul.f32 %v5779_v31, %v5779_v31 }
 0x22a   : > { %5809 = vst [vmem:[%s7998_s6 + $0xa8] sm:$0xff] %v5777_v54  ;;  %v5872_v55 = vadd.f32 %v5871_v11, %v5777_v54  ;;  %v5911_v61 = vmul.f32 %v5777_v54, %v5777_v54 }
 0x22c   : > { %v7073_v12 = vpop.f32.mrf.mxu1  ;;  %v5873_v19 = vadd.f32 %v5872_v55, %v5778_v38  ;;  %v5942_v36 = vadd.f32 %v5941_v44, %v5911_v61 }
 0x22d   : > { %v5188_v5 = vadd.f32 %v7073_v12, %v8984_v42 }
 0x22e   : > { %v5099_v32 = vpop.f32.mrf.mxu1  ;;  %v5943_v17 = vadd.f32 %v5942_v36, %v5912_v34  ;;  %v5874_v63 = vadd.f32 %v5873_v19, %v5779_v31 }
 0x22f   : > { %v5186_v45 = vadd.f32 %v5099_v32, %v8987_v3  ;;  %v7121_v33 = vpop.f32.mrf.mxu0 }
 0x230   : > { %v7074_v6 = vpop.f32.mrf.mxu1  ;;  %v5782_v62 = vadd.f32 %v7121_v33, %v5188_v5  ;;  %v5944_v56 = vadd.f32 %v5943_v17, %v5913_v57 }
 0x231   : > { %v5189_v28 = vadd.f32 %v7074_v6, %v8990_v49  ;;  %v5693_v46 = vpop.f32.mrf.mxu0 }
 0x232   : > { %5814 = vst [vmem:[%s7998_s6 + $0xd0] sm:$0xff] %v5782_v62  ;;  %v5102_v25 = vpop.f32.mrf.mxu1  ;;  %v5780_v10 = vadd.f32 %v5693_v46, %v5186_v45  ;;  %v5916_v22 = vmul.f32 %v5782_v62, %v5782_v62 }
 0x233   : > { %v5187_v42 = vadd.f32 %v5102_v25, %v8995_v40  ;;  %v7122_v47 = vpop.f32.mrf.mxu0 }
 0x234   : > { %5812 = vst [vmem:[%s7998_s6 + $0xc0] sm:$0xff] %v5780_v10  ;;  %v5875_v21 = vadd.f32 %v5874_v63, %v5780_v10  ;;  %v5914_v18 = vmul.f32 %v5780_v10, %v5780_v10  ;;  %v5783_v30 = vadd.f32 %v7122_v47, %v5189_v28 }
 0x235   : > { %v5696_v3 = vpop.f32.mrf.mxu0 }
 0x236   : > { %v5945_v60 = vadd.f32 %v5944_v56, %v5914_v18  ;;  %5815 = vst [vmem:[%s7998_s6 + $0xd8] sm:$0xff] %v5783_v30  ;;  %v5781_v29 = vadd.f32 %v5696_v3, %v5187_v42  ;;  %v5917_v40 = vmul.f32 %v5783_v30, %v5783_v30 }
 0x238   : > { %5813 = vst [vmem:[%s7998_s6 + $0xc8] sm:$0xff] %v5781_v29  ;;  %v5876_v14 = vadd.f32 %v5875_v21, %v5781_v29  ;;  %v5915_v53 = vmul.f32 %v5781_v29, %v5781_v29 }
 0x23a   : > { %v7077_v49 = vpop.f32.mrf.mxu1  ;;  %v5877_v39 = vadd.f32 %v5876_v14, %v5782_v62  ;;  %v5946_v24 = vadd.f32 %v5945_v60, %v5915_v53 }
 0x23b   : > { %v5192_v48 = vadd.f32 %v7077_v49, %v9000_v8 }
 0x23c   : > { %v5115_v26 = vpop.f32.mrf.mxu1  ;;  %v5947_v51 = vadd.f32 %v5946_v24, %v5916_v22  ;;  %v5878_v20 = vadd.f32 %v5877_v39, %v5783_v30 }
 0x23d   : > { %v5190_v15 = vadd.f32 %v5115_v26, %v9006_v43  ;;  %v7125_v9 = vpop.f32.mrf.mxu0 }
 0x23e   : > { %v7078_v27 = vpop.f32.mrf.mxu1  ;;  %v5786_v16 = vadd.f32 %v7125_v9, %v5192_v48  ;;  %v5948_v50 = vadd.f32 %v5947_v51, %v5917_v40 }
 0x23f   : > { %v5193_v35 = vadd.f32 %v7078_v27, %v9011_v23  ;;  %v5709_v2 = vpop.f32.mrf.mxu0 }
 0x240   : > { %5818 = vst [vmem:[%s7998_s6 + $0xf0] sm:$0xff] %v5786_v16  ;;  %v5118_v38 = vpop.f32.mrf.mxu1  ;;  %v5784_v7 = vadd.f32 %v5709_v2, %v5190_v15  ;;  %v5920_v52 = vmul.f32 %v5786_v16, %v5786_v16 }
 0x241   : > { %v5191_v8 = vadd.f32 %v5118_v38, %v9016_v13  ;;  %v7126_v59 = vpop.f32.mrf.mxu0 }
 0x242   : > { %5816 = vst [vmem:[%s7998_s6 + $0xe0] sm:$0xff] %v5784_v7  ;;  %v5879_v41 = vadd.f32 %v5878_v20, %v5784_v7  ;;  %v5918_v58 = vmul.f32 %v5784_v7, %v5784_v7  ;;  %v5787_v43 = vadd.f32 %v7126_v59, %v5193_v35 }
 0x243   : > { %v5712_v0 = vpop.f32.mrf.mxu0 }
 0x244   : > { %v5949_v4 = vadd.f32 %v5948_v50, %v5918_v58  ;;  %5819 = vst [vmem:[%s7998_s6 + $0xf8] sm:$0xff] %v5787_v43  ;;  %v5785_v1 = vadd.f32 %v5712_v0, %v5191_v8  ;;  %v5921_v44 = vmul.f32 %v5787_v43, %v5787_v43 }
 0x246   : > { %5817 = vst [vmem:[%s7998_s6 + $0xe8] sm:$0xff] %v5785_v1  ;;  %v5880_v11 = vadd.f32 %v5879_v41, %v5785_v1  ;;  %v5919_v23 = vmul.f32 %v5785_v1, %v5785_v1 }
 0x248   : > { %v5881_v31 = vadd.f32 %v5880_v11, %v5786_v16  ;;  %v5950_v37 = vadd.f32 %v5949_v4, %v5919_v23 }
 0x24a   : > { %v5882_v13 = vadd.f32 %v5881_v31, %v5787_v43  ;;  %v5951_v54 = vadd.f32 %v5950_v37, %v5920_v52 }
 0x24c   : > { %v5883_v55 = vrot.slane %v5882_v13, 4  ;;  %v5952_v61 = vadd.f32 %v5951_v54, %v5921_v44 }
 0x24e   : > { %v5884_v34 = vadd.f32 %v5883_v55, %v5882_v13  ;;  %v5953_v12 = vrot.slane %v5952_v61, 4 }
 0x250   : > { %v5885_v19 = vrot.slane %v5884_v34, 2  ;;  %v5954_v36 = vadd.f32 %v5953_v12, %v5952_v61 }
 0x252   : > { %v5886_v5 = vadd.f32 %v5885_v19, %v5884_v34  ;;  %v5955_v57 = vrot.slane %v5954_v36, 2 }
 0x254   : > { %v5887_v32 = vrot.slane %v5886_v5, 1  ;;  %v5956_v17 = vadd.f32 %v5955_v57, %v5954_v36 }
 0x256   : > { %v5888_v63 = vadd.f32 %v5887_v32, %v5886_v5  ;;  %v5957_v45 = vrot.slane %v5956_v17, 1 }
 0x258   : > { %5889 = vst [vmem:[%s291_s8] sm:$0x1] %v5888_v63  ;;  %v5958_v33 = vadd.f32 %v5957_v45, %v5956_v17 }
 0x25a   : > { %5959 = vst [vmem:[%s291_s8 + $0x1] sm:$0x1] %v5958_v33 }
 0x25b PF: > { %s16_s18 = sadd.s32 1, %s7278_s18  }
 0x25c   : > { %p13_p6 = scmp.ge.s32.totalorder %s16_s18, 4  }
 0x25e   :  { %15 = sbr.rel (!%p13_p6) target bundleno = 1 (0x1), region = 92 }

</bundles_post_ra>
